<compile_context>
chip_gen: v5e
topology: v5e:2x2
jax: 0.10.0
libtpu: 0.0.40
codegen_flags: <defaults>
</compile_context>

<pallas_src>
import functools

import jax
import jax.numpy as jnp
from jax import lax
from jax.experimental import pallas as pl
from jax.experimental.pallas import tpu as pltpu


LEAKY_SLOPE = 0.2
BN_EPS = 0.8

_FUSED_MAX_ROWS = 512          # whole batch in one tile -> fully fused kernel
_B_TILE = 512                  # rows per batch tile in the multi-tile path
_VMEM_LIMIT_BYTES = 32 * 1024 * 1024   # honest budget (v7x: 64 MiB physical)


# ----------------------------------------------------------------------------- utils
def _round_up(a, m):
    return (a + m - 1) // m * m


def _lrelu(x):
    return jnp.where(x > 0, x, LEAKY_SLOPE * x)


# ------------------------------------------------------------------- fused (1-tile)
def _bn_train(z, gamma, beta, *, b_true, needs_mask):
    """Training-mode BatchNorm1d with the full batch resident in this tile.

    Two-pass (mean, then centered variance) for accuracy; padded rows are masked
    out of the statistics only when the batch was actually padded.
    """
    if needs_mask:
        rows = lax.broadcasted_iota(jnp.int32, z.shape, 0)
        keep = rows < b_true
        zs = jnp.where(keep, z, 0.0)
    else:
        zs = z
    inv_n = 1.0 / float(b_true)
    mean = jnp.sum(zs, axis=0, keepdims=True) * inv_n
    d = z - mean
    if needs_mask:
        d = jnp.where(keep, d, 0.0)
    var = jnp.sum(d * d, axis=0, keepdims=True) * inv_n
    scale = gamma * lax.rsqrt(var + BN_EPS)
    return (z - mean) * scale + beta


def _fused_kernel(x_ref,
                  w1_ref, b1_ref,
                  w2_ref, b2_ref, g2_ref, bb2_ref,
                  w3_ref, b3_ref, g3_ref, bb3_ref,
                  w4_ref, b4_ref, g4_ref, bb4_ref,
                  w5_ref, b5_ref,
                  o_ref, *, b_true, needs_mask):
    # Whole network in one kernel; weights stay VMEM-resident, activations never
    # touch HBM.  MXU operands bf16, accumulation f32, elementwise math f32.
    h = _lrelu(jnp.dot(x_ref[...], w1_ref[...],
                       preferred_element_type=jnp.float32) + b1_ref[...])

    def bn_block(h, w_ref, b_ref, g_ref, bb_ref):
        z = jnp.dot(h.astype(jnp.bfloat16), w_ref[...],
                    preferred_element_type=jnp.float32) + b_ref[...]
        return _lrelu(_bn_train(z, g_ref[...], bb_ref[...],
                                b_true=b_true, needs_mask=needs_mask))

    h = bn_block(h, w2_ref, b2_ref, g2_ref, bb2_ref)
    h = bn_block(h, w3_ref, b3_ref, g3_ref, bb3_ref)
    h = bn_block(h, w4_ref, b4_ref, g4_ref, bb4_ref)
    o_ref[...] = jnp.tanh(
        jnp.dot(h.astype(jnp.bfloat16), w5_ref[...],
                preferred_element_type=jnp.float32) + b5_ref[...])


# ------------------------------------------------------------- multi-tile (B > 512)
def _partial_moments(z, *, b_true, b_tile, needs_mask):
    """Per-tile partial [sum; sum-of-squares] over rows belonging to the real batch."""
    if needs_mask:
        row0 = pl.program_id(0) * b_tile
        rows = lax.broadcasted_iota(jnp.int32, z.shape, 0) + row0
        z = jnp.where(rows < b_true, z, 0.0)
    s = jnp.sum(z, axis=0, keepdims=True)
    q = jnp.sum(z * z, axis=0, keepdims=True)
    return jnp.concatenate([s, q], axis=0)[None]          # (1, 2, F)


def _first_block_kernel(x_ref, w1_ref, b1_ref, w2_ref, b2_ref,
                        z2_ref, sq_ref, *, b_true, b_tile, needs_mask):
    # Linear(latent,128) -> LeakyReLU -> Linear(128,256); emit bf16 z2 + BN partials.
    h1 = _lrelu(jnp.dot(x_ref[...], w1_ref[...],
                        preferred_element_type=jnp.float32) + b1_ref[...])
    z2 = jnp.dot(h1.astype(jnp.bfloat16), w2_ref[...],
                 preferred_element_type=jnp.float32) + b2_ref[...]
    z2_ref[...] = z2.astype(jnp.bfloat16)
    sq_ref[...] = _partial_moments(z2, b_true=b_true, b_tile=b_tile,
                                   needs_mask=needs_mask)


def _mid_block_kernel(z_ref, sc_ref, sh_ref, w_ref, b_ref,
                      zo_ref, sq_ref, *, b_true, b_tile, needs_mask):
    # BN as precomputed scale/shift -> LeakyReLU -> Linear; emit bf16 z + partials.
    h = _lrelu(z_ref[...].astype(jnp.float32) * sc_ref[...] + sh_ref[...])
    zo = jnp.dot(h.astype(jnp.bfloat16), w_ref[...],
                 preferred_element_type=jnp.float32) + b_ref[...]
    zo_ref[...] = zo.astype(jnp.bfloat16)
    sq_ref[...] = _partial_moments(zo, b_true=b_true, b_tile=b_tile,
                                   needs_mask=needs_mask)


def _final_block_kernel(z_ref, sc_ref, sh_ref, w_ref, b_ref, o_ref):
    # BN scale/shift -> LeakyReLU -> Linear(1024, out) -> Tanh.
    h = _lrelu(z_ref[...].astype(jnp.float32) * sc_ref[...] + sh_ref[...])
    o_ref[...] = jnp.tanh(
        jnp.dot(h.astype(jnp.bfloat16), w_ref[...],
                preferred_element_type=jnp.float32) + b_ref[...])


# ----------------------------------------------------------------------- pallas glue
def _compiler_params(parallel=True):
    return pltpu.CompilerParams(
        dimension_semantics=("parallel" if parallel else "arbitrary",),
        vmem_limit_bytes=_VMEM_LIMIT_BYTES,
    )


def _full_spec(shape):
    nd = len(shape)
    return pl.BlockSpec(shape, lambda i, _nd=nd: (0,) * _nd)


def _act_spec(rows, f):
    return pl.BlockSpec((rows, f), lambda i: (i, 0))


def _stat_spec(f):
    return pl.BlockSpec((1, 2, f), lambda i: (i, 0, 0))


def _run_fused(x_p, p, d_out_p, b_true, needs_mask):
    b_pad = x_p.shape[0]
    kernel = functools.partial(_fused_kernel, b_true=b_true, needs_mask=needs_mask)
    args = (x_p,
            p["w1"], p["b1"],
            p["w2"], p["b2"], p["g2"], p["bb2"],
            p["w3"], p["b3"], p["g3"], p["bb3"],
            p["w4"], p["b4"], p["g4"], p["bb4"],
            p["w5"], p["b5"])
    return pl.pallas_call(
        kernel,
        grid=(1,),
        in_specs=[_full_spec(a.shape) for a in args],
        out_specs=_full_spec((b_pad, d_out_p)),
        out_shape=jax.ShapeDtypeStruct((b_pad, d_out_p), jnp.float32),
        compiler_params=_compiler_params(parallel=False),
    )(*args)


def _run_first(x_p, w1, b1, w2, b2, *, b_true, b_tile, num_tiles, needs_mask):
    f2 = w2.shape[1]
    kernel = functools.partial(_first_block_kernel, b_true=b_true, b_tile=b_tile,
                               needs_mask=needs_mask)
    return pl.pallas_call(
        kernel,
        grid=(num_tiles,),
        in_specs=[_act_spec(b_tile, x_p.shape[1]),
                  _full_spec(w1.shape), _full_spec(b1.shape),
                  _full_spec(w2.shape), _full_spec(b2.shape)],
        out_specs=[_act_spec(b_tile, f2), _stat_spec(f2)],
        out_shape=[jax.ShapeDtypeStruct((num_tiles * b_tile, f2), jnp.bfloat16),
                   jax.ShapeDtypeStruct((num_tiles, 2, f2), jnp.float32)],
        compiler_params=_compiler_params(),
    )(x_p, w1, b1, w2, b2)


def _run_mid(z, scale, shift, w, b, *, b_true, b_tile, num_tiles, needs_mask):
    f_in, f_out = z.shape[1], w.shape[1]
    kernel = functools.partial(_mid_block_kernel, b_true=b_true, b_tile=b_tile,
                               needs_mask=needs_mask)
    return pl.pallas_call(
        kernel,
        grid=(num_tiles,),
        in_specs=[_act_spec(b_tile, f_in),
                  _full_spec(scale.shape), _full_spec(shift.shape),
                  _full_spec(w.shape), _full_spec(b.shape)],
        out_specs=[_act_spec(b_tile, f_out), _stat_spec(f_out)],
        out_shape=[jax.ShapeDtypeStruct((num_tiles * b_tile, f_out), jnp.bfloat16),
                   jax.ShapeDtypeStruct((num_tiles, 2, f_out), jnp.float32)],
        compiler_params=_compiler_params(),
    )(z, scale, shift, w, b)


def _run_final(z, scale, shift, w, b, *, b_tile, num_tiles):
    f_in, f_out = z.shape[1], w.shape[1]
    return pl.pallas_call(
        _final_block_kernel,
        grid=(num_tiles,),
        in_specs=[_act_spec(b_tile, f_in),
                  _full_spec(scale.shape), _full_spec(shift.shape),
                  _full_spec(w.shape), _full_spec(b.shape)],
        out_specs=_act_spec(b_tile, f_out),
        out_shape=jax.ShapeDtypeStruct((num_tiles * b_tile, f_out), jnp.float32),
        compiler_params=_compiler_params(),
    )(z, scale, shift, w, b)


def _scale_shift(sq, gamma, beta, b_true):
    # Combine per-tile partials into exact full-batch BN scale/shift (tiny JAX op).
    ssum = jnp.sum(sq, axis=0)                          # (2, F)
    mean = ssum[0] / float(b_true)
    var = jnp.maximum(ssum[1] / float(b_true) - mean * mean, 0.0)
    scale = gamma * lax.rsqrt(var + BN_EPS)             # (1, F)
    shift = beta - mean * scale
    return scale, shift


# ------------------------------------------------------------------------ params prep
def prepare_generator_params(params, latent_dim, img_shape):
    """One-time: pad to lane-dense shapes and cast MXU operands to bf16."""
    d_out = 1
    for d in img_shape:
        d_out *= int(d)
    k1 = _round_up(latent_dim, 128)
    d_out_p = _round_up(d_out, 128)
    return {
        "w1": jnp.pad(params["w1"], ((0, k1 - latent_dim), (0, 0))).astype(jnp.bfloat16),
        "b1": params["b1"],
        "w2": params["w2"].astype(jnp.bfloat16), "b2": params["b2"],
        "g2": params["g2"], "bb2": params["bb2"],
        "w3": params["w3"].astype(jnp.bfloat16), "b3": params["b3"],
        "g3": params["g3"], "bb3": params["bb3"],
        "w4": params["w4"].astype(jnp.bfloat16), "b4": params["b4"],
        "g4": params["g4"], "bb4": params["bb4"],
        "w5": jnp.pad(params["w5"], ((0, 0), (0, d_out_p - d_out))).astype(jnp.bfloat16),
        "b5": jnp.pad(params["b5"], ((0, 0), (0, d_out_p - d_out))),
    }


# ------------------------------------------------------------------------ forward API
@functools.partial(jax.jit, static_argnames=("img_shape",))
def generator_forward(x, prepared, img_shape):
    B, latent = x.shape
    d_out = 1
    for d in img_shape:
        d_out *= int(d)
    k1 = prepared["w1"].shape[0]
    d_out_p = prepared["w5"].shape[1]

    if _round_up(B, 16) <= _FUSED_MAX_ROWS:
        # ---- fully fused single-kernel path (common GAN batch sizes) ------------
        b_pad = _round_up(B, 16)             # native bf16 (16,128) tile
        x_p = jnp.pad(x, ((0, b_pad - B), (0, k1 - latent))).astype(jnp.bfloat16)
        out = _run_fused(x_p, prepared, d_out_p, B, needs_mask=(b_pad != B))
    else:
        # ---- batch-tiled two-pass path (exact full-batch BN statistics) ---------
        b_tile = _B_TILE
        num_tiles = _round_up(B, b_tile) // b_tile
        b_pad = num_tiles * b_tile
        needs_mask = b_pad != B
        x_p = jnp.pad(x, ((0, b_pad - B), (0, k1 - latent))).astype(jnp.bfloat16)

        z2, sq2 = _run_first(x_p, prepared["w1"], prepared["b1"],
                             prepared["w2"], prepared["b2"],
                             b_true=B, b_tile=b_tile, num_tiles=num_tiles,
                             needs_mask=needs_mask)
        sc2, sh2 = _scale_shift(sq2, prepared["g2"], prepared["bb2"], B)

        z3, sq3 = _run_mid(z2, sc2, sh2, prepared["w3"], prepared["b3"],
                           b_true=B, b_tile=b_tile, num_tiles=num_tiles,
                           needs_mask=needs_mask)
        sc3, sh3 = _scale_shift(sq3, prepared["g3"], prepared["bb3"], B)

        z4, sq4 = _run_mid(z3, sc3, sh3, prepared["w4"], prepared["b4"],
                           b_true=B, b_tile=b_tile, num_tiles=num_tiles,
                           needs_mask=needs_mask)
        sc4, sh4 = _scale_shift(sq4, prepared["g4"], prepared["bb4"], B)

        out = _run_final(z4, sc4, sh4, prepared["w5"], prepared["b5"],
                         b_tile=b_tile, num_tiles=num_tiles)

    return out[:B, :d_out].reshape((B,) + tuple(img_shape))


# ----------------------------------------------------------------------- init & ref
def _linear_init(key, fan_in, fan_out):
    # PyTorch nn.Linear default init: U(-1/sqrt(fan_in), 1/sqrt(fan_in))
    kw, kb = jax.random.split(key)
    bound = 1.0 / jnp.sqrt(float(fan_in))
    w = jax.random.uniform(kw, (fan_in, fan_out), jnp.float32, -bound, bound)
    b = jax.random.uniform(kb, (1, fan_out), jnp.float32, -bound, bound)
    return w, b


def init_generator_params(key, latent_dim, img_shape):
    out_dim = 1
    for d in img_shape:
        out_dim *= int(d)
    dims = [latent_dim, 128, 256, 512, 1024, out_dim]
    keys = jax.random.split(key, 5)
    params = {}
    for i in range(5):
        w, b = _linear_init(keys[i], dims[i], dims[i + 1])
        params[f"w{i + 1}"] = w
        params[f"b{i + 1}"] = b
    for i, n in zip((2, 3, 4), (256, 512, 1024)):
        params[f"g{i}"] = jnp.ones((1, n), jnp.float32)
        params[f"bb{i}"] = jnp.zeros((1, n), jnp.float32)
    return params


def generator_ref(x, params):
    """Pure-JAX reference mimicking the kernel's bf16 matmul operands (f32 accumulate)."""
    def mm(a, w):
        a16 = a.astype(jnp.bfloat16).astype(jnp.float32)
        w16 = w.astype(jnp.bfloat16).astype(jnp.float32)
        return jnp.dot(a16, w16, precision=jax.lax.Precision.HIGHEST)

    def bn(z, g, b):
        m = jnp.mean(z, axis=0, keepdims=True)
        v = jnp.mean((z - m) ** 2, axis=0, keepdims=True)
        return g * (z - m) * jax.lax.rsqrt(v + BN_EPS) + b

    def lrelu(z):
        return jnp.where(z > 0, z, LEAKY_SLOPE * z)

    h = lrelu(mm(x, params["w1"]) + params["b1"])
    h = lrelu(bn(mm(h, params["w2"]) + params["b2"], params["g2"], params["bb2"]))
    h = lrelu(bn(mm(h, params["w3"]) + params["b3"], params["g3"], params["bb3"]))
    h = lrelu(bn(mm(h, params["w4"]) + params["b4"], params["g4"], params["bb4"]))
    return jnp.tanh(mm(h, params["w5"]) + params["b5"])


if __name__ == "__main__":
    img_shape = (1, 16, 16)   # prod = 256 (already lane-dense)
    latent_dim = 32
    batch = 8

    key = jax.random.PRNGKey(0)
    k_params, k_x = jax.random.split(key)
    params = init_generator_params(k_params, latent_dim, img_shape)
    prepared = prepare_generator_params(params, latent_dim, img_shape)
    x = jax.random.normal(k_x, (batch, latent_dim), jnp.float32)

    img = generator_forward(x, prepared, img_shape)
    img = jax.block_until_ready(img)
    assert img.shape == (batch,) + img_shape, img.shape

    ref = generator_ref(x, params).reshape((batch,) + img_shape)
    err = float(jnp.max(jnp.abs(img - ref)))
    assert err < 1e-2, f"max abs err {err}"

    print("KERNEL_OK")
</pallas_src>

<mosaic_0001>
module attributes {stable_mosaic.version = 11 : i64} {
  func.func @_fused_kernel(%arg0: i32, %arg1: memref<16x128xbf16, #tpu.memory_space<vmem>>, %arg2: memref<128x128xbf16, #tpu.memory_space<vmem>>, %arg3: memref<1x128xf32, #tpu.memory_space<vmem>>, %arg4: memref<128x256xbf16, #tpu.memory_space<vmem>>, %arg5: memref<1x256xf32, #tpu.memory_space<vmem>>, %arg6: memref<1x256xf32, #tpu.memory_space<vmem>>, %arg7: memref<1x256xf32, #tpu.memory_space<vmem>>, %arg8: memref<256x512xbf16, #tpu.memory_space<vmem>>, %arg9: memref<1x512xf32, #tpu.memory_space<vmem>>, %arg10: memref<1x512xf32, #tpu.memory_space<vmem>>, %arg11: memref<1x512xf32, #tpu.memory_space<vmem>>, %arg12: memref<512x1024xbf16, #tpu.memory_space<vmem>>, %arg13: memref<1x1024xf32, #tpu.memory_space<vmem>>, %arg14: memref<1x1024xf32, #tpu.memory_space<vmem>>, %arg15: memref<1x1024xf32, #tpu.memory_space<vmem>>, %arg16: memref<1024x256xbf16, #tpu.memory_space<vmem>>, %arg17: memref<1x256xf32, #tpu.memory_space<vmem>>, %arg18: memref<16x256xf32, #tpu.memory_space<vmem>>) attributes {dimension_semantics = [#tpu.dimension_semantics<arbitrary>], iteration_bounds = array<i64: 1>, scalar_prefetch = 0 : i64, scratch_operands = 0 : i64, tpu.core_type = #tpu.core_type<tc>, window_params = [{pipeline_mode = #tpu.pipeline_mode<synchronous>, transform_indices = @transform_0, window_bounds = array<i64: 16, 128>}, {pipeline_mode = #tpu.pipeline_mode<synchronous>, transform_indices = @transform_1, window_bounds = array<i64: 128, 128>}, {pipeline_mode = #tpu.pipeline_mode<synchronous>, transform_indices = @transform_2, window_bounds = array<i64: 1, 128>}, {pipeline_mode = #tpu.pipeline_mode<synchronous>, transform_indices = @transform_3, window_bounds = array<i64: 128, 256>}, {pipeline_mode = #tpu.pipeline_mode<synchronous>, transform_indices = @transform_4, window_bounds = array<i64: 1, 256>}, {pipeline_mode = #tpu.pipeline_mode<synchronous>, transform_indices = @transform_5, window_bounds = array<i64: 1, 256>}, {pipeline_mode = #tpu.pipeline_mode<synchronous>, transform_indices = @transform_6, window_bounds = array<i64: 1, 256>}, {pipeline_mode = #tpu.pipeline_mode<synchronous>, transform_indices = @transform_7, window_bounds = array<i64: 256, 512>}, {pipeline_mode = #tpu.pipeline_mode<synchronous>, transform_indices = @transform_8, window_bounds = array<i64: 1, 512>}, {pipeline_mode = #tpu.pipeline_mode<synchronous>, transform_indices = @transform_9, window_bounds = array<i64: 1, 512>}, {pipeline_mode = #tpu.pipeline_mode<synchronous>, transform_indices = @transform_10, window_bounds = array<i64: 1, 512>}, {pipeline_mode = #tpu.pipeline_mode<synchronous>, transform_indices = @transform_11, window_bounds = array<i64: 512, 1024>}, {pipeline_mode = #tpu.pipeline_mode<synchronous>, transform_indices = @transform_12, window_bounds = array<i64: 1, 1024>}, {pipeline_mode = #tpu.pipeline_mode<synchronous>, transform_indices = @transform_13, window_bounds = array<i64: 1, 1024>}, {pipeline_mode = #tpu.pipeline_mode<synchronous>, transform_indices = @transform_14, window_bounds = array<i64: 1, 1024>}, {pipeline_mode = #tpu.pipeline_mode<synchronous>, transform_indices = @transform_15, window_bounds = array<i64: 1024, 256>}, {pipeline_mode = #tpu.pipeline_mode<synchronous>, transform_indices = @transform_16, window_bounds = array<i64: 1, 256>}, {pipeline_mode = #tpu.pipeline_mode<synchronous>, transform_indices = @transform_17, window_bounds = array<i64: 16, 256>}]} {
    %c0 = arith.constant 0 : index
    %c0_0 = arith.constant 0 : index
    %0 = vector.load %arg1[%c0, %c0_0] : memref<16x128xbf16, #tpu.memory_space<vmem>>, vector<16x128xbf16>
    %c0_1 = arith.constant 0 : index
    %c0_2 = arith.constant 0 : index
    %1 = vector.load %arg2[%c0_1, %c0_2] : memref<128x128xbf16, #tpu.memory_space<vmem>>, vector<128x128xbf16>
    %cst = arith.constant dense<0.000000e+00> : vector<16x128xf32>
    %2 = tpu.matmul %0, %1, %cst {dimension_numbers = #tpu.dot_dimension_numbers<[1], [0], [0], [1], [0, 0, 1, 1], [], []>} : vector<16x128xbf16>, vector<128x128xbf16>, vector<16x128xf32> -> vector<16x128xf32>
    %c0_3 = arith.constant 0 : index
    %c0_4 = arith.constant 0 : index
    %3 = vector.load %arg3[%c0_3, %c0_4] : memref<1x128xf32, #tpu.memory_space<vmem>>, vector<1x128xf32>
    %4 = vector.broadcast %3 : vector<1x128xf32> to vector<16x128xf32>
    %5 = arith.addf %2, %4 : vector<16x128xf32>
    %cst_5 = arith.constant 0.000000e+00 : f32
    %6 = vector.broadcast %cst_5 : f32 to vector<16x128xf32>
    %7 = arith.cmpf ogt, %5, %6 : vector<16x128xf32>
    %cst_6 = arith.constant 2.000000e-01 : f32
    %8 = vector.broadcast %cst_6 : f32 to vector<16x128xf32>
    %9 = arith.mulf %8, %5 : vector<16x128xf32>
    %10 = arith.select %7, %5, %9 : vector<16x128xi1>, vector<16x128xf32>
    %11 = arith.truncf %10 : vector<16x128xf32> to vector<16x128xbf16>
    %c0_7 = arith.constant 0 : index
    %c0_8 = arith.constant 0 : index
    %12 = vector.load %arg4[%c0_7, %c0_8] : memref<128x256xbf16, #tpu.memory_space<vmem>>, vector<128x256xbf16>
    %cst_9 = arith.constant dense<0.000000e+00> : vector<16x256xf32>
    %13 = tpu.matmul %11, %12, %cst_9 {dimension_numbers = #tpu.dot_dimension_numbers<[1], [0], [0], [1], [0, 0, 1, 1], [], []>} : vector<16x128xbf16>, vector<128x256xbf16>, vector<16x256xf32> -> vector<16x256xf32>
    %c0_10 = arith.constant 0 : index
    %c0_11 = arith.constant 0 : index
    %14 = vector.load %arg5[%c0_10, %c0_11] : memref<1x256xf32, #tpu.memory_space<vmem>>, vector<1x256xf32>
    %15 = vector.broadcast %14 : vector<1x256xf32> to vector<16x256xf32>
    %16 = arith.addf %13, %15 : vector<16x256xf32>
    %c0_12 = arith.constant 0 : index
    %c0_13 = arith.constant 0 : index
    %17 = vector.load %arg6[%c0_12, %c0_13] : memref<1x256xf32, #tpu.memory_space<vmem>>, vector<1x256xf32>
    %c0_14 = arith.constant 0 : index
    %c0_15 = arith.constant 0 : index
    %18 = vector.load %arg7[%c0_14, %c0_15] : memref<1x256xf32, #tpu.memory_space<vmem>>, vector<1x256xf32>
    %19 = tpu.iota {dimensions = array<i32: 0>} : vector<16x256xi32>
    %c8_i32 = arith.constant 8 : i32
    %20 = vector.broadcast %c8_i32 : i32 to vector<16x256xi32>
    %21 = arith.cmpi slt, %19, %20 : vector<16x256xi32>
    %cst_16 = arith.constant 0.000000e+00 : f32
    %22 = vector.broadcast %cst_16 : f32 to vector<16x256xf32>
    %23 = arith.select %21, %16, %22 : vector<16x256xi1>, vector<16x256xf32>
    %cst_17 = arith.constant dense<0.000000e+00> : vector<256xf32>
    %24 = vector.multi_reduction <add>, %23, %cst_17 [0] : vector<16x256xf32> to vector<256xf32>
    %25 = vector.shape_cast %24 : vector<256xf32> to vector<1x256xf32>
    %cst_18 = arith.constant 1.250000e-01 : f32
    %26 = vector.broadcast %cst_18 : f32 to vector<1x256xf32>
    %27 = arith.mulf %25, %26 : vector<1x256xf32>
    %28 = vector.broadcast %27 : vector<1x256xf32> to vector<16x256xf32>
    %29 = arith.subf %16, %28 : vector<16x256xf32>
    %cst_19 = arith.constant 0.000000e+00 : f32
    %30 = vector.broadcast %cst_19 : f32 to vector<16x256xf32>
    %31 = arith.select %21, %29, %30 : vector<16x256xi1>, vector<16x256xf32>
    %32 = arith.mulf %31, %31 : vector<16x256xf32>
    %cst_20 = arith.constant dense<0.000000e+00> : vector<256xf32>
    %33 = vector.multi_reduction <add>, %32, %cst_20 [0] : vector<16x256xf32> to vector<256xf32>
    %34 = vector.shape_cast %33 : vector<256xf32> to vector<1x256xf32>
    %cst_21 = arith.constant 1.250000e-01 : f32
    %35 = vector.broadcast %cst_21 : f32 to vector<1x256xf32>
    %36 = arith.mulf %34, %35 : vector<1x256xf32>
    %cst_22 = arith.constant 8.000000e-01 : f32
    %37 = vector.broadcast %cst_22 : f32 to vector<1x256xf32>
    %38 = arith.addf %36, %37 : vector<1x256xf32>
    %39 = math.rsqrt %38 : vector<1x256xf32>
    %40 = arith.mulf %17, %39 : vector<1x256xf32>
    %41 = vector.broadcast %27 : vector<1x256xf32> to vector<16x256xf32>
    %42 = arith.subf %16, %41 : vector<16x256xf32>
    %43 = vector.broadcast %40 : vector<1x256xf32> to vector<16x256xf32>
    %44 = arith.mulf %42, %43 : vector<16x256xf32>
    %45 = vector.broadcast %18 : vector<1x256xf32> to vector<16x256xf32>
    %46 = arith.addf %44, %45 : vector<16x256xf32>
    %cst_23 = arith.constant 0.000000e+00 : f32
    %47 = vector.broadcast %cst_23 : f32 to vector<16x256xf32>
    %48 = arith.cmpf ogt, %46, %47 : vector<16x256xf32>
    %cst_24 = arith.constant 2.000000e-01 : f32
    %49 = vector.broadcast %cst_24 : f32 to vector<16x256xf32>
    %50 = arith.mulf %49, %46 : vector<16x256xf32>
    %51 = arith.select %48, %46, %50 : vector<16x256xi1>, vector<16x256xf32>
    %52 = arith.truncf %51 : vector<16x256xf32> to vector<16x256xbf16>
    %c0_25 = arith.constant 0 : index
    %c0_26 = arith.constant 0 : index
    %53 = vector.load %arg8[%c0_25, %c0_26] : memref<256x512xbf16, #tpu.memory_space<vmem>>, vector<256x512xbf16>
    %cst_27 = arith.constant dense<0.000000e+00> : vector<16x512xf32>
    %54 = tpu.matmul %52, %53, %cst_27 {dimension_numbers = #tpu.dot_dimension_numbers<[1], [0], [0], [1], [0, 0, 1, 1], [], []>} : vector<16x256xbf16>, vector<256x512xbf16>, vector<16x512xf32> -> vector<16x512xf32>
    %c0_28 = arith.constant 0 : index
    %c0_29 = arith.constant 0 : index
    %55 = vector.load %arg9[%c0_28, %c0_29] : memref<1x512xf32, #tpu.memory_space<vmem>>, vector<1x512xf32>
    %56 = vector.broadcast %55 : vector<1x512xf32> to vector<16x512xf32>
    %57 = arith.addf %54, %56 : vector<16x512xf32>
    %c0_30 = arith.constant 0 : index
    %c0_31 = arith.constant 0 : index
    %58 = vector.load %arg10[%c0_30, %c0_31] : memref<1x512xf32, #tpu.memory_space<vmem>>, vector<1x512xf32>
    %c0_32 = arith.constant 0 : index
    %c0_33 = arith.constant 0 : index
    %59 = vector.load %arg11[%c0_32, %c0_33] : memref<1x512xf32, #tpu.memory_space<vmem>>, vector<1x512xf32>
    %60 = tpu.iota {dimensions = array<i32: 0>} : vector<16x512xi32>
    %c8_i32_34 = arith.constant 8 : i32
    %61 = vector.broadcast %c8_i32_34 : i32 to vector<16x512xi32>
    %62 = arith.cmpi slt, %60, %61 : vector<16x512xi32>
    %cst_35 = arith.constant 0.000000e+00 : f32
    %63 = vector.broadcast %cst_35 : f32 to vector<16x512xf32>
    %64 = arith.select %62, %57, %63 : vector<16x512xi1>, vector<16x512xf32>
    %cst_36 = arith.constant dense<0.000000e+00> : vector<512xf32>
    %65 = vector.multi_reduction <add>, %64, %cst_36 [0] : vector<16x512xf32> to vector<512xf32>
    %66 = vector.shape_cast %65 : vector<512xf32> to vector<1x512xf32>
    %cst_37 = arith.constant 1.250000e-01 : f32
    %67 = vector.broadcast %cst_37 : f32 to vector<1x512xf32>
    %68 = arith.mulf %66, %67 : vector<1x512xf32>
    %69 = vector.broadcast %68 : vector<1x512xf32> to vector<16x512xf32>
    %70 = arith.subf %57, %69 : vector<16x512xf32>
    %cst_38 = arith.constant 0.000000e+00 : f32
    %71 = vector.broadcast %cst_38 : f32 to vector<16x512xf32>
    %72 = arith.select %62, %70, %71 : vector<16x512xi1>, vector<16x512xf32>
    %73 = arith.mulf %72, %72 : vector<16x512xf32>
    %cst_39 = arith.constant dense<0.000000e+00> : vector<512xf32>
    %74 = vector.multi_reduction <add>, %73, %cst_39 [0] : vector<16x512xf32> to vector<512xf32>
    %75 = vector.shape_cast %74 : vector<512xf32> to vector<1x512xf32>
    %cst_40 = arith.constant 1.250000e-01 : f32
    %76 = vector.broadcast %cst_40 : f32 to vector<1x512xf32>
    %77 = arith.mulf %75, %76 : vector<1x512xf32>
    %cst_41 = arith.constant 8.000000e-01 : f32
    %78 = vector.broadcast %cst_41 : f32 to vector<1x512xf32>
    %79 = arith.addf %77, %78 : vector<1x512xf32>
    %80 = math.rsqrt %79 : vector<1x512xf32>
    %81 = arith.mulf %58, %80 : vector<1x512xf32>
    %82 = vector.broadcast %68 : vector<1x512xf32> to vector<16x512xf32>
    %83 = arith.subf %57, %82 : vector<16x512xf32>
    %84 = vector.broadcast %81 : vector<1x512xf32> to vector<16x512xf32>
    %85 = arith.mulf %83, %84 : vector<16x512xf32>
    %86 = vector.broadcast %59 : vector<1x512xf32> to vector<16x512xf32>
    %87 = arith.addf %85, %86 : vector<16x512xf32>
    %cst_42 = arith.constant 0.000000e+00 : f32
    %88 = vector.broadcast %cst_42 : f32 to vector<16x512xf32>
    %89 = arith.cmpf ogt, %87, %88 : vector<16x512xf32>
    %cst_43 = arith.constant 2.000000e-01 : f32
    %90 = vector.broadcast %cst_43 : f32 to vector<16x512xf32>
    %91 = arith.mulf %90, %87 : vector<16x512xf32>
    %92 = arith.select %89, %87, %91 : vector<16x512xi1>, vector<16x512xf32>
    %93 = arith.truncf %92 : vector<16x512xf32> to vector<16x512xbf16>
    %c0_44 = arith.constant 0 : index
    %c0_45 = arith.constant 0 : index
    %94 = vector.load %arg12[%c0_44, %c0_45] : memref<512x1024xbf16, #tpu.memory_space<vmem>>, vector<512x1024xbf16>
    %cst_46 = arith.constant dense<0.000000e+00> : vector<16x1024xf32>
    %95 = tpu.matmul %93, %94, %cst_46 {dimension_numbers = #tpu.dot_dimension_numbers<[1], [0], [0], [1], [0, 0, 1, 1], [], []>} : vector<16x512xbf16>, vector<512x1024xbf16>, vector<16x1024xf32> -> vector<16x1024xf32>
    %c0_47 = arith.constant 0 : index
    %c0_48 = arith.constant 0 : index
    %96 = vector.load %arg13[%c0_47, %c0_48] : memref<1x1024xf32, #tpu.memory_space<vmem>>, vector<1x1024xf32>
    %97 = vector.broadcast %96 : vector<1x1024xf32> to vector<16x1024xf32>
    %98 = arith.addf %95, %97 : vector<16x1024xf32>
    %c0_49 = arith.constant 0 : index
    %c0_50 = arith.constant 0 : index
    %99 = vector.load %arg14[%c0_49, %c0_50] : memref<1x1024xf32, #tpu.memory_space<vmem>>, vector<1x1024xf32>
    %c0_51 = arith.constant 0 : index
    %c0_52 = arith.constant 0 : index
    %100 = vector.load %arg15[%c0_51, %c0_52] : memref<1x1024xf32, #tpu.memory_space<vmem>>, vector<1x1024xf32>
    %101 = tpu.iota {dimensions = array<i32: 0>} : vector<16x1024xi32>
    %c8_i32_53 = arith.constant 8 : i32
    %102 = vector.broadcast %c8_i32_53 : i32 to vector<16x1024xi32>
    %103 = arith.cmpi slt, %101, %102 : vector<16x1024xi32>
    %cst_54 = arith.constant 0.000000e+00 : f32
    %104 = vector.broadcast %cst_54 : f32 to vector<16x1024xf32>
    %105 = arith.select %103, %98, %104 : vector<16x1024xi1>, vector<16x1024xf32>
    %cst_55 = arith.constant dense<0.000000e+00> : vector<1024xf32>
    %106 = vector.multi_reduction <add>, %105, %cst_55 [0] : vector<16x1024xf32> to vector<1024xf32>
    %107 = vector.shape_cast %106 : vector<1024xf32> to vector<1x1024xf32>
    %cst_56 = arith.constant 1.250000e-01 : f32
    %108 = vector.broadcast %cst_56 : f32 to vector<1x1024xf32>
    %109 = arith.mulf %107, %108 : vector<1x1024xf32>
    %110 = vector.broadcast %109 : vector<1x1024xf32> to vector<16x1024xf32>
    %111 = arith.subf %98, %110 : vector<16x1024xf32>
    %cst_57 = arith.constant 0.000000e+00 : f32
    %112 = vector.broadcast %cst_57 : f32 to vector<16x1024xf32>
    %113 = arith.select %103, %111, %112 : vector<16x1024xi1>, vector<16x1024xf32>
    %114 = arith.mulf %113, %113 : vector<16x1024xf32>
    %cst_58 = arith.constant dense<0.000000e+00> : vector<1024xf32>
    %115 = vector.multi_reduction <add>, %114, %cst_58 [0] : vector<16x1024xf32> to vector<1024xf32>
    %116 = vector.shape_cast %115 : vector<1024xf32> to vector<1x1024xf32>
    %cst_59 = arith.constant 1.250000e-01 : f32
    %117 = vector.broadcast %cst_59 : f32 to vector<1x1024xf32>
    %118 = arith.mulf %116, %117 : vector<1x1024xf32>
    %cst_60 = arith.constant 8.000000e-01 : f32
    %119 = vector.broadcast %cst_60 : f32 to vector<1x1024xf32>
    %120 = arith.addf %118, %119 : vector<1x1024xf32>
    %121 = math.rsqrt %120 : vector<1x1024xf32>
    %122 = arith.mulf %99, %121 : vector<1x1024xf32>
    %123 = vector.broadcast %109 : vector<1x1024xf32> to vector<16x1024xf32>
    %124 = arith.subf %98, %123 : vector<16x1024xf32>
    %125 = vector.broadcast %122 : vector<1x1024xf32> to vector<16x1024xf32>
    %126 = arith.mulf %124, %125 : vector<16x1024xf32>
    %127 = vector.broadcast %100 : vector<1x1024xf32> to vector<16x1024xf32>
    %128 = arith.addf %126, %127 : vector<16x1024xf32>
    %cst_61 = arith.constant 0.000000e+00 : f32
    %129 = vector.broadcast %cst_61 : f32 to vector<16x1024xf32>
    %130 = arith.cmpf ogt, %128, %129 : vector<16x1024xf32>
    %cst_62 = arith.constant 2.000000e-01 : f32
    %131 = vector.broadcast %cst_62 : f32 to vector<16x1024xf32>
    %132 = arith.mulf %131, %128 : vector<16x1024xf32>
    %133 = arith.select %130, %128, %132 : vector<16x1024xi1>, vector<16x1024xf32>
    %134 = arith.truncf %133 : vector<16x1024xf32> to vector<16x1024xbf16>
    %c0_63 = arith.constant 0 : index
    %c0_64 = arith.constant 0 : index
    %135 = vector.load %arg16[%c0_63, %c0_64] : memref<1024x256xbf16, #tpu.memory_space<vmem>>, vector<1024x256xbf16>
    %cst_65 = arith.constant dense<0.000000e+00> : vector<16x256xf32>
    %136 = tpu.matmul %134, %135, %cst_65 {dimension_numbers = #tpu.dot_dimension_numbers<[1], [0], [0], [1], [0, 0, 1, 1], [], []>} : vector<16x1024xbf16>, vector<1024x256xbf16>, vector<16x256xf32> -> vector<16x256xf32>
    %c0_66 = arith.constant 0 : index
    %c0_67 = arith.constant 0 : index
    %137 = vector.load %arg17[%c0_66, %c0_67] : memref<1x256xf32, #tpu.memory_space<vmem>>, vector<1x256xf32>
    %138 = vector.broadcast %137 : vector<1x256xf32> to vector<16x256xf32>
    %139 = arith.addf %136, %138 : vector<16x256xf32>
    %140 = math.tanh %139 : vector<16x256xf32>
    %c0_68 = arith.constant 0 : index
    %c0_69 = arith.constant 0 : index
    %141 = vector.load %arg18[%c0_68, %c0_69] : memref<16x256xf32, #tpu.memory_space<vmem>>, vector<16x256xf32>
    tpu.vector_store %arg18[%c0_68, %c0_69], %140 {strides = array<i32>} : memref<16x256xf32, #tpu.memory_space<vmem>>, vector<16x256xf32>,
    return
  }
  func.func @transform_0(%arg0: i32) -> (i32, i32) {
    %c0_i32 = arith.constant 0 : i32
    %c0_i32_0 = arith.constant 0 : i32
    %c0_i32_1 = arith.constant 0 : i32
    return %c0_i32, %c0_i32_0 : i32, i32
  }
  func.func @transform_1(%arg0: i32) -> (i32, i32) {
    %c0_i32 = arith.constant 0 : i32
    %c0_i32_0 = arith.constant 0 : i32
    %c0_i32_1 = arith.constant 0 : i32
    return %c0_i32, %c0_i32_0 : i32, i32
  }
  func.func @transform_2(%arg0: i32) -> (i32, i32) {
    %c0_i32 = arith.constant 0 : i32
    %c0_i32_0 = arith.constant 0 : i32
    %c0_i32_1 = arith.constant 0 : i32
    return %c0_i32, %c0_i32_0 : i32, i32
  }
  func.func @transform_3(%arg0: i32) -> (i32, i32) {
    %c0_i32 = arith.constant 0 : i32
    %c0_i32_0 = arith.constant 0 : i32
    %c0_i32_1 = arith.constant 0 : i32
    return %c0_i32, %c0_i32_0 : i32, i32
  }
  func.func @transform_4(%arg0: i32) -> (i32, i32) {
    %c0_i32 = arith.constant 0 : i32
    %c0_i32_0 = arith.constant 0 : i32
    %c0_i32_1 = arith.constant 0 : i32
    return %c0_i32, %c0_i32_0 : i32, i32
  }
  func.func @transform_5(%arg0: i32) -> (i32, i32) {
    %c0_i32 = arith.constant 0 : i32
    %c0_i32_0 = arith.constant 0 : i32
    %c0_i32_1 = arith.constant 0 : i32
    return %c0_i32, %c0_i32_0 : i32, i32
  }
  func.func @transform_6(%arg0: i32) -> (i32, i32) {
    %c0_i32 = arith.constant 0 : i32
    %c0_i32_0 = arith.constant 0 : i32
    %c0_i32_1 = arith.constant 0 : i32
    return %c0_i32, %c0_i32_0 : i32, i32
  }
  func.func @transform_7(%arg0: i32) -> (i32, i32) {
    %c0_i32 = arith.constant 0 : i32
    %c0_i32_0 = arith.constant 0 : i32
    %c0_i32_1 = arith.constant 0 : i32
    return %c0_i32, %c0_i32_0 : i32, i32
  }
  func.func @transform_8(%arg0: i32) -> (i32, i32) {
    %c0_i32 = arith.constant 0 : i32
    %c0_i32_0 = arith.constant 0 : i32
    %c0_i32_1 = arith.constant 0 : i32
    return %c0_i32, %c0_i32_0 : i32, i32
  }
  func.func @transform_9(%arg0: i32) -> (i32, i32) {
    %c0_i32 = arith.constant 0 : i32
    %c0_i32_0 = arith.constant 0 : i32
    %c0_i32_1 = arith.constant 0 : i32
    return %c0_i32, %c0_i32_0 : i32, i32
  }
  func.func @transform_10(%arg0: i32) -> (i32, i32) {
    %c0_i32 = arith.constant 0 : i32
    %c0_i32_0 = arith.constant 0 : i32
    %c0_i32_1 = arith.constant 0 : i32
    return %c0_i32, %c0_i32_0 : i32, i32
  }
  func.func @transform_11(%arg0: i32) -> (i32, i32) {
    %c0_i32 = arith.constant 0 : i32
    %c0_i32_0 = arith.constant 0 : i32
    %c0_i32_1 = arith.constant 0 : i32
    return %c0_i32, %c0_i32_0 : i32, i32
  }
  func.func @transform_12(%arg0: i32) -> (i32, i32) {
    %c0_i32 = arith.constant 0 : i32
    %c0_i32_0 = arith.constant 0 : i32
    %c0_i32_1 = arith.constant 0 : i32
    return %c0_i32, %c0_i32_0 : i32, i32
  }
  func.func @transform_13(%arg0: i32) -> (i32, i32) {
    %c0_i32 = arith.constant 0 : i32
    %c0_i32_0 = arith.constant 0 : i32
    %c0_i32_1 = arith.constant 0 : i32
    return %c0_i32, %c0_i32_0 : i32, i32
  }
  func.func @transform_14(%arg0: i32) -> (i32, i32) {
    %c0_i32 = arith.constant 0 : i32
    %c0_i32_0 = arith.constant 0 : i32
    %c0_i32_1 = arith.constant 0 : i32
    return %c0_i32, %c0_i32_0 : i32, i32
  }
  func.func @transform_15(%arg0: i32) -> (i32, i32) {
    %c0_i32 = arith.constant 0 : i32
    %c0_i32_0 = arith.constant 0 : i32
    %c0_i32_1 = arith.constant 0 : i32
    return %c0_i32, %c0_i32_0 : i32, i32
  }
  func.func @transform_16(%arg0: i32) -> (i32, i32) {
    %c0_i32 = arith.constant 0 : i32
    %c0_i32_0 = arith.constant 0 : i32
    %c0_i32_1 = arith.constant 0 : i32
    return %c0_i32, %c0_i32_0 : i32, i32
  }
  func.func @transform_17(%arg0: i32) -> (i32, i32) {
    %c0_i32 = arith.constant 0 : i32
    %c0_i32_0 = arith.constant 0 : i32
    %c0_i32_1 = arith.constant 0 : i32
    return %c0_i32, %c0_i32_0 : i32, i32
  }
}

</mosaic_0001>

<bundles_post_ra>
// kernel: generator_forward.1
= control target key start
LH: loop header
LB: loop body
LE: loop exit
PB: predicated region body
PF: predicated region fallthrough
CT: control target
= control target key end

     0   :  { %s8292_s0 = inlined_call_operand.vmem [shape: bf16[16,128], index: 0, kind: input, shape index: {}]   ;;  %s8293_s1 = inlined_call_operand.hbm [shape: bf16[128,128], index: 1, kind: input, shape index: {}]   ;;  %s8294_s2 = inlined_call_operand.hbm [shape: f32[1,128], index: 2, kind: input, shape index: {}]   ;;  %s8295_s3 = inlined_call_operand.hbm [shape: bf16[128,256], index: 3, kind: input, shape index: {}]   ;;  %s8296_s4 = inlined_call_operand.hbm [shape: f32[1,256], index: 4, kind: input, shape index: {}]   ;;  %s8297_s5 = inlined_call_operand.vmem [shape: f32[1,256], index: 5, kind: input, shape index: {}]   ;;  %s8298_s6 = inlined_call_operand.hbm [shape: f32[1,256], index: 6, kind: input, shape index: {}]   ;;  %s8299_s7 = inlined_call_operand.hbm [shape: bf16[256,512], index: 7, kind: input, shape index: {}]   ;;  %s8300_s8 = inlined_call_operand.hbm [shape: f32[1,512], index: 8, kind: input, shape index: {}]   ;;  %s8301_s9 = inlined_call_operand.vmem [shape: f32[1,512], index: 9, kind: input, shape index: {}]   ;;  %s8302_s10 = inlined_call_operand.hbm [shape: f32[1,512], index: 10, kind: input, shape index: {}]   ;;  %s8303_s11 = inlined_call_operand.hbm [shape: bf16[512,1024], index: 11, kind: input, shape index: {}]   ;;  %s8304_s12 = inlined_call_operand.vmem [shape: f32[1,1024], index: 12, kind: input, shape index: {}]   ;;  %s8305_s13 = inlined_call_operand.vmem [shape: f32[1,1024], index: 13, kind: input, shape index: {}]   ;;  %s8306_s14 = inlined_call_operand.vmem [shape: f32[1,1024], index: 14, kind: input, shape index: {}]   ;;  %s8307_s15 = inlined_call_operand.hbm [shape: bf16[1024,256], index: 15, kind: input, shape index: {}]   ;;  %s8308_s16 = inlined_call_operand.hbm [shape: f32[1,256], index: 16, kind: input, shape index: {}]   ;;  %s8309_s17 = inlined_call_operand.vmem [shape: f32[16,256], index: 17, kind: output, shape index: {}]  }
   0x1   :  { %8311 = sst [smem:[#allocation26_spill]] %s8292_s0 }
   0x2   :  { %8312 = sst [smem:[#allocation27_spill]] %s8293_s1 }
   0x3   :  { %22 = vsyncpa [#allocation3], 0 }
   0x4   :  { %23 = vsyncpa [#allocation5], 0 }
   0x5   :  { %24 = vsyncpa [#allocation8], 0 }
   0x6   :  { %25 = vsyncpa [#allocation11], 0 }
   0x7   :  { %26 = vsyncpa [#allocation14], 0  ;;  %s48_s26 = sshll.u32 %s8294_s2, 4  ;;  %s49_s26 = int_to_ptr.hbm [resolvable:$true] %s48_s26 }
   0x8   :  { %27 = vsyncpa [#allocation17], 0  ;;  %s7430_s27 = smov [#allocation4]   ;;  %s72_s30 = sshll.u32 %s8296_s4, 4  ;;  %s73_s30 = int_to_ptr.hbm [resolvable:$true] %s72_s30 }
   0x9   :  { %s50_s28 = sshll.u32 %s7430_s27, 4  ;;  %s7431_s18 = smov [#allocation7]   ;;  %s51_s28 = int_to_ptr.vmem [resolvable:$true] %s50_s28 }
   0xa   :  { %53 = dma.hbm_to_vmem [thread:$0]  %s49_s26, 16, %s51_s28, [#allocation5]  }
   0xb   :  { %s74_s19 = sshll.u32 %s7431_s18, 4  ;;  %s95_s21 = sshll.u32 %s8299_s7, 4  ;;  %s75_s19 = int_to_ptr.vmem [resolvable:$true] %s74_s19  ;;  %s96_s21 = int_to_ptr.hbm [resolvable:$true] %s95_s21 }
   0xc   :  { %77 = dma.hbm_to_vmem [thread:$0]  %s73_s30, 32, %s75_s19, [#allocation8]  }
   0xd   :  { %s7432_s2 = smov [#allocation10]   ;;  %s122_s25 = sshll.u32 %s8302_s10, 4  ;;  %s123_s25 = int_to_ptr.hbm [resolvable:$true] %s122_s25 }
   0xe   :  { %s97_s22 = sshll.u32 %s7432_s2, 4  ;;  %s7433_s27 = smov 256   ;;  %s98_s22 = int_to_ptr.vmem [resolvable:$true] %s97_s22 }
   0xf   :  { %s7434_s4 = smov 16   ;;  %s7435_s26 = smov [#allocation13]  }
  0x10   :  { %103 = dma.hbm_to_vmem [thread:$0]  %s96_s21, 8192, %s98_s22, [#allocation11], %s7433_s27, %s7433_s27, %s7434_s4  }
  0x11   :  { %s124_s28 = sshll.u32 %s7435_s26, 4  ;;  %s151_s0 = sshll.u32 %s8307_s15, 4  ;;  %s125_s28 = int_to_ptr.vmem [resolvable:$true] %s124_s28  ;;  %s152_s0 = int_to_ptr.hbm [resolvable:$true] %s151_s0 }
  0x12   :  { %127 = dma.hbm_to_vmem [thread:$0]  %s123_s25, 64, %s125_s28, [#allocation14]  }
  0x13   :  { %s7436_s30 = smov [#allocation16]   ;;  %s8313_s20 = sld [smem:[#allocation27_spill]] }
  0x14   :  { %s153_s18 = sshll.u32 %s7436_s30, 4  ;;  %s7437_s2 = smov 128   ;;  %s154_s18 = int_to_ptr.vmem [resolvable:$true] %s153_s18 }
  0x15   :  { %s7438_s23 = smov 8   ;;  %s7439_s21 = smov [#allocation2]  }
  0x16   :  { %159 = dma.hbm_to_vmem [thread:$0]  %s152_s0, 16384, %s154_s18, [#allocation17], %s7437_s2, %s7437_s2, %s7438_s23  }
  0x17   :  { %s36_s22 = sshll.u32 %s7439_s21, 4  ;;  %s7440_s24 = smov 64   ;;  %s37_s22 = int_to_ptr.vmem [resolvable:$true] %s36_s22 }
  0x18   :  { %s7441_s25 = smov 4   ;;  %s58_s4 = sshll.u32 %s8295_s3, 4  ;;  %s59_s4 = int_to_ptr.hbm [resolvable:$true] %s58_s4 }
  0x19   :  { %s34_s10 = sshll.u32 %s8313_s20, 4  ;;  %s7442_s26 = smov [#allocation6]   ;;  %s35_s10 = int_to_ptr.hbm [resolvable:$true] %s34_s10 }
  0x1a   :  { %42 = dma.hbm_to_vmem [thread:$0]  %s35_s10, 1024, %s37_s22, [#allocation3], %s7440_s24, %s7440_s24, %s7441_s25  }
  0x1b   :  { %s60_s28 = sshll.u32 %s7442_s26, 4  ;;  %s85_s30 = sshll.u32 %s8298_s6, 4  ;;  %s61_s28 = int_to_ptr.vmem [resolvable:$true] %s60_s28  ;;  %s86_s30 = int_to_ptr.hbm [resolvable:$true] %s85_s30 }
  0x1c   :  { %66 = dma.hbm_to_vmem [thread:$0]  %s59_s4, 2048, %s61_s28, [#allocation5], %s7437_s2, %s7437_s2, %s7438_s23  }
  0x1d   :  { %s7443_s0 = smov [#allocation9]   ;;  %s109_s20 = sshll.u32 %s8300_s8, 4  ;;  %s110_s20 = int_to_ptr.hbm [resolvable:$true] %s109_s20 }
  0x1e   :  { %s87_s18 = sshll.u32 %s7443_s0, 4  ;;  %s132_s21 = sshll.u32 %s8303_s11, 4  ;;  %s88_s18 = int_to_ptr.vmem [resolvable:$true] %s87_s18  ;;  %s133_s21 = int_to_ptr.hbm [resolvable:$true] %s132_s21 }
  0x1f   :  { %90 = dma.hbm_to_vmem [thread:$0]  %s86_s30, 32, %s88_s18, [#allocation8]  }
  0x20   :  { %s7444_s22 = smov [#allocation12]   ;;  %s7445_s6 = smov [#allocation15]  }
  0x21   :  { %s111_s24 = sshll.u32 %s7444_s22, 4  ;;  %s134_s2 = sshll.u32 %s7445_s6, 4  ;;  %s112_s24 = int_to_ptr.vmem [resolvable:$true] %s111_s24  ;;  %s135_s2 = int_to_ptr.vmem [resolvable:$true] %s134_s2 }
  0x22   :  { %114 = dma.hbm_to_vmem [thread:$0]  %s110_s20, 64, %s112_s24, [#allocation11]  }
  0x23   :  { %s7446_s23 = smov 512   ;;  %s7447_s25 = smov 32  }
  0x24   :  { %140 = dma.hbm_to_vmem [thread:$0]  %s133_s21, 32768, %s135_s2, [#allocation14], %s7446_s23, %s7446_s23, %s7447_s25  }
  0x25   :  { %s165_s15 = sshll.u32 %s8308_s16, 4  ;;  %s7448_s4 = smov [#allocation18]   ;;  %s166_s15 = int_to_ptr.hbm [resolvable:$true] %s165_s15 }
  0x26   :  { %s167_s26 = sshll.u32 %s7448_s4, 4  ;;  %s168_s26 = int_to_ptr.vmem [resolvable:$true] %s167_s26 }
  0x27   :  { %170 = dma.hbm_to_vmem [thread:$0]  %s166_s15, 32, %s168_s26, [#allocation17]  }
  0x28   :  { %7418 = dma.done.wait [#allocation3], 1024  }
  0x29   :  { %7419 = vsyncadd [#allocation3], 4294966272 }
  0x2a   :  { %7420 = dma.done.wait [#allocation5], 2064  }
  0x2b   :  { %7421 = vsyncadd [#allocation5], 4294965232 }
  0x2c   :  { %7422 = dma.done.wait [#allocation8], 64  }
  0x2d   :  { %7423 = vsyncadd [#allocation8], 4294967232 }
  0x2e   :  { %7424 = dma.done.wait [#allocation11], 8256  }
  0x2f   :  { %7425 = vsyncadd [#allocation11], 4294959040 }
  0x30   :  { %7426 = dma.done.wait [#allocation14], 32832  }
  0x31   :  { %7427 = vsyncadd [#allocation14], 4294934464 }
  0x32   :  { %7428 = dma.done.wait [#allocation17], 16416  }
  0x33   :  { %7429 = vsyncadd [#allocation17], 4294950880  ;;  %v6632_v0 = vld [vmem:[#allocation2 + $0x38] sm:$0xff]  ;;  %v6631_v1 = vld [vmem:[#allocation2 + $0x30] sm:$0xff]  ;;  %s8314_s28 = sld [smem:[#allocation26_spill]]  ;;  %vm522_vm7 = vcmask 1040384  }
  0x34   :  { %291 = vmatpush.bf16.msra.mxu0 %v6632_v0  ;;  %v4826_v2 = vld [vmem:[#allocation6 + $0x70] sm:$0xf]  ;;  %v6648_v3 = vld [vmem:[#allocation6 + $0x74] sm:$0xf0]  ;;  %v6647_v4 = vld [vmem:[#allocation6 + $0x74] sm:$0xf] }
  0x35   :  { %v4827_v5 = vor.u32 %v6648_v3, %v4826_v2  ;;  %v4828_v6 = vld [vmem:[#allocation6 + $0x78] sm:$0xf0]  ;;  %v4818_v7 = vld [vmem:[#allocation6 + $0x60] sm:$0xf]  ;;  %v6646_v8 = vld [vmem:[#allocation6 + $0x64] sm:$0xf0] }
  0x36   :  { %v4831_v9 = vor.u32 %v6647_v4, %v4828_v6  ;;  %v6645_v10 = vld [vmem:[#allocation6 + $0x64] sm:$0xf]  ;;  %v4820_v11 = vld [vmem:[#allocation6 + $0x68] sm:$0xf0]  ;;  %v4819_v13 = vor.u32 %v6646_v8, %v4818_v7  ;;  %v4810_v15 = vld [vmem:[#allocation6 + $0x50] sm:$0xf] }
  0x37   :  { %v6630_v12 = vld [vmem:[#allocation2 + $0x28] sm:$0xff]  ;;  %414 = vmatpush.bf16.msra.mxu1 %v4827_v5  ;;  %v4823_v14 = vor.u32 %v6645_v10, %v4820_v11  ;;  %v6644_v16 = vld [vmem:[#allocation6 + $0x54] sm:$0xf0]  ;;  %v6643_v17 = vld [vmem:[#allocation6 + $0x54] sm:$0xf] }
  0x38   :  { %292 = vmatpush.bf16.msra.mxu0 %v6631_v1  ;;  %428 = vmatpush.bf16.msra.mxu2 %v4831_v9  ;;  %v4812_v18 = vld [vmem:[#allocation6 + $0x58] sm:$0xf0]  ;;  %v4811_v20 = vor.u32 %v6644_v16, %v4810_v15  ;;  %v4802_v22 = vld [vmem:[#allocation6 + $0x40] sm:$0xf]  ;;  %v6642_v23 = vld [vmem:[#allocation6 + $0x44] sm:$0xf0] }
  0x39   :  { %v6629_v19 = vld [vmem:[#allocation2 + $0x20] sm:$0xff]  ;;  %v4815_v21 = vor.u32 %v6643_v17, %v4812_v18  ;;  %v4804_v25 = vld [vmem:[#allocation6 + $0x48] sm:$0xf0]  ;;  %v6628_v26 = vld [vmem:[#allocation2 + $0x18] sm:$0xff]  ;;  %v4803_v27 = vor.u32 %v6642_v23, %v4802_v22 }
  0x3a   :  { %v6641_v24 = vld [vmem:[#allocation6 + $0x44] sm:$0xf]  ;;  %v6627_v29 = vld [vmem:[#allocation2 + $0x10] sm:$0xff]  ;;  %v6640_v34 = vld [vmem:[#allocation6 + $0x34] sm:$0xf0] }
  0x3b   :  { %415 = vmatpush.bf16.msra.mxu1 %v4819_v13  ;;  %v4807_v28 = vor.u32 %v6641_v24, %v4804_v25  ;;  %v6626_v30 = vld [vmem:[#allocation2 + $0x8] sm:$0xff]  ;;  %v6625_v31 = vld [vmem:[#allocation2] sm:$0xff]  ;;  %v4794_v33 = vld [vmem:[#allocation6 + $0x30] sm:$0xf] }
  0x3c   :  { %293 = vmatpush.bf16.msra.mxu0 %v6630_v12  ;;  %429 = vmatpush.bf16.msra.mxu2 %v4823_v14  ;;  %v6624_v32 = vld [vmem:[%s8314_s28] sm:$0xff]  ;;  %v6639_v35 = vld [vmem:[#allocation6 + $0x34] sm:$0xf]  ;;  %v4795_v36 = vor.u32 %v6640_v34, %v4794_v33  ;;  %v6638_v40 = vld [vmem:[#allocation6 + $0x24] sm:$0xf0] }
  0x3d   :  { %v4796_v37 = vld [vmem:[#allocation6 + $0x38] sm:$0xf0]  ;;  %v4786_v39 = vld [vmem:[#allocation6 + $0x20] sm:$0xf]  ;;  %v6637_v41 = vld [vmem:[#allocation6 + $0x24] sm:$0xf] }
  0x3e   :  { %v4799_v38 = vor.u32 %v6639_v35, %v4796_v37  ;;  %v4787_v42 = vor.u32 %v6638_v40, %v4786_v39  ;;  %v4788_v43 = vld [vmem:[#allocation6 + $0x28] sm:$0xf0]  ;;  %v4778_v45 = vld [vmem:[#allocation6 + $0x10] sm:$0xf]  ;;  %v6636_v46 = vld [vmem:[#allocation6 + $0x14] sm:$0xf0] }
  0x3f   :  { %416 = vmatpush.bf16.msra.mxu1 %v4811_v20  ;;  %v4791_v44 = vor.u32 %v6637_v41, %v4788_v43  ;;  %v6635_v47 = vld [vmem:[#allocation6 + $0x14] sm:$0xf]  ;;  %v4779_v48 = vor.u32 %v6636_v46, %v4778_v45  ;;  %v4780_v49 = vld [vmem:[#allocation6 + $0x18] sm:$0xf0]  ;;  %v4770_v51 = vld [vmem:[#allocation6] sm:$0xf] }
  0x40   :  { %294 = vmatpush.bf16.msra.mxu0 %v6629_v19  ;;  %430 = vmatpush.bf16.msra.mxu2 %v4815_v21  ;;  %v4783_v50 = vor.u32 %v6635_v47, %v4780_v49  ;;  %v6634_v52 = vld [vmem:[#allocation6 + $0x4] sm:$0xf0]  ;;  %v6633_v53 = vld [vmem:[#allocation6 + $0x4] sm:$0xf]  ;;  %v4772_v55 = vld [vmem:[#allocation6 + $0x8] sm:$0xf0] }
  0x41   :  { %v4771_v54 = vor.u32 %v6634_v52, %v4770_v51  ;;  %v4775_v56 = vor.u32 %v6633_v53, %v4772_v55  ;;  %v7116_v58 = vld [vmem:[#allocation4] ss:$0 sm:$0xff]  ;;  %v7575_v3 = vld [vmem:[#allocation7] sm:$0x3]  ;;  %v4946_v5 = vld [vmem:[#allocation10 + $0xe0] sm:$0xf] }
  0x42   :  { %v330_v4 = vperm.slane %v7575_v3, 0  ;;  %v6679_v6 = vld [vmem:[#allocation10 + $0xec] sm:$0xf0]  ;;  %v5074_v7 = vld [vmem:[#allocation10 + $0x1e0] sm:$0xf]  ;;  %v331_v23 = vperm.slane %v7575_v3, 1 }
  0x43   :  { %417 = vmatpush.bf16.msra.mxu1 %v4803_v27  ;;  %v4947_v8 = vor.u32 %v6679_v6, %v4946_v5  ;;  %v6711_v9 = vld [vmem:[#allocation10 + $0x1ec] sm:$0xf0]  ;;  %v6677_v10 = vld [vmem:[#allocation10 + $0xe4] sm:$0xf]  ;;  %v4948_v11 = vld [vmem:[#allocation10 + $0xf0] sm:$0xf0] }
  0x44   :  { %295 = vmatpush.bf16.msra.mxu0 %v6628_v26  ;;  %431 = vmatpush.bf16.msra.mxu2 %v4807_v28  ;;  %v5075_v13 = vor.u32 %v6711_v9, %v5074_v7  ;;  %v4951_v14 = vor.u32 %v6677_v10, %v4948_v11  ;;  %v6709_v15 = vld [vmem:[#allocation10 + $0x1e4] sm:$0xf]  ;;  %v5076_v16 = vld [vmem:[#allocation10 + $0x1f0] sm:$0xf0]  ;;  %v4930_v19 = vld [vmem:[#allocation10 + $0xc0] sm:$0xf] }
  0x45   :  { %952 = vmatpush.bf16.msra.mxu3 %v4947_v8  ;;  %v5079_v18 = vor.u32 %v6709_v15, %v5076_v16  ;;  %v6675_v20 = vld [vmem:[#allocation10 + $0xcc] sm:$0xf0]  ;;  %v5058_v21 = vld [vmem:[#allocation10 + $0x1c0] sm:$0xf]  ;;  %v6673_v26 = vld [vmem:[#allocation10 + $0xc4] sm:$0xf] }
  0x46   :  { %v4931_v24 = vor.u32 %v6675_v20, %v4930_v19  ;;  %v6707_v25 = vld [vmem:[#allocation10 + $0x1cc] sm:$0xf0]  ;;  %v4932_v28 = vld [vmem:[#allocation10 + $0xd0] sm:$0xf0]  ;;  %v4914_v35 = vld [vmem:[#allocation10 + $0xa0] sm:$0xf] }
  0x47   :  { %418 = vmatpush.bf16.msra.mxu1 %v4795_v36  ;;  %v5059_v27 = vor.u32 %v6707_v25, %v5058_v21  ;;  %v6671_v36 = vld [vmem:[#allocation10 + $0xac] sm:$0xf0]  ;;  %v5042_v37 = vld [vmem:[#allocation10 + $0x1a0] sm:$0xf]  ;;  %v6701_v45 = vld [vmem:[#allocation10 + $0x1a4] sm:$0xf] }
  0x48   :  { %296 = vmatpush.bf16.msra.mxu0 %v6627_v29  ;;  %432 = vmatpush.bf16.msra.mxu2 %v4799_v38  ;;  %v6705_v29 = vld [vmem:[#allocation10 + $0x1c4] sm:$0xf]  ;;  %v4915_v40 = vor.u32 %v6671_v36, %v4914_v35  ;;  %v6703_v41 = vld [vmem:[#allocation10 + $0x1ac] sm:$0xf0]  ;;  %v5044_v46 = vld [vmem:[#allocation10 + $0x1b0] sm:$0xf0] }
  0x49   :  { %953 = vmatpush.bf16.msra.mxu3 %v4931_v24  ;;  %v5043_v43 = vor.u32 %v6703_v41, %v5042_v37  ;;  %v4898_v51 = vld [vmem:[#allocation10 + $0x80] sm:$0xf]  ;;  %v6667_v52 = vld [vmem:[#allocation10 + $0x8c] sm:$0xf0]  ;;  %v6693_v19 = vld [vmem:[#allocation10 + $0x164] sm:$0xf] }
  0x4a   :  { %v5026_v53 = vld [vmem:[#allocation10 + $0x180] sm:$0xf]  ;;  %v6663_v6 = vld [vmem:[#allocation10 + $0x6c] sm:$0xf0]  ;;  %v5012_v20 = vld [vmem:[#allocation10 + $0x170] sm:$0xf0] }
  0x4b   :  { %419 = vmatpush.bf16.msra.mxu1 %v4787_v42  ;;  %v6669_v42 = vld [vmem:[#allocation10 + $0xa4] sm:$0xf]  ;;  %v4882_v5 = vld [vmem:[#allocation10 + $0x60] sm:$0xf]  ;;  %v6695_v11 = vld [vmem:[#allocation10 + $0x16c] sm:$0xf0]  ;;  %v5015_v21 = vor.u32 %v6693_v19, %v5012_v20 }
  0x4c   :  { %297 = vmatpush.bf16.msra.mxu0 %v6626_v30  ;;  %433 = vmatpush.bf16.msra.mxu2 %v4791_v44  ;;  %v5060_v30 = vld [vmem:[#allocation10 + $0x1d0] sm:$0xf0]  ;;  %v5010_v7 = vld [vmem:[#allocation10 + $0x160] sm:$0xf]  ;;  %v4883_v10 = vor.u32 %v6663_v6, %v4882_v5  ;;  %v6659_v24 = vld [vmem:[#allocation10 + $0x4c] sm:$0xf0] }
  0x4d   :  { %v5063_v33 = vor.u32 %v6705_v29, %v5060_v30  ;;  %v4916_v44 = vld [vmem:[#allocation10 + $0xb0] sm:$0xf0]  ;;  %954 = vmatpush.bf16.msra.mxu3 %v4915_v40  ;;  %v4994_v25 = vld [vmem:[#allocation10 + $0x140] sm:$0xf]  ;;  %v6691_v29 = vld [vmem:[#allocation10 + $0x14c] sm:$0xf0] }
  0x4e   :  { %v4919_v49 = vor.u32 %v6669_v42, %v4916_v44  ;;  %v6657_v30 = vld [vmem:[#allocation10 + $0x44] sm:$0xf]  ;;  %v6655_v40 = vld [vmem:[#allocation10 + $0x2c] sm:$0xf0]  ;;  %v4978_v41 = vld [vmem:[#allocation10 + $0x120] sm:$0xf] }
  0x4f   :  { %420 = vmatpush.bf16.msra.mxu1 %v4779_v48  ;;  %v4956_v20 = vld [vmem:[#allocation10 + $0xf8] sm:$0xf0] }
  0x50   :  { %298 = vmatpush.bf16.msra.mxu0 %v6625_v31  ;;  %434 = vmatpush.bf16.msra.mxu2 %v4783_v50  ;;  %v5047_v50 = vor.u32 %v6701_v45, %v5044_v46  ;;  %v6687_v45 = vld [vmem:[#allocation10 + $0x12c] sm:$0xf0]  ;;  %v6653_v46 = vld [vmem:[#allocation10 + $0x24] sm:$0xf] }
  0x53   :  { %299 = vmatmul.bf16.vlgmr.msra.gmra.mxu0 %v6624_v32  ;;  %421 = vmatpush.bf16.msra.mxu1 %v4771_v54  ;;  %v4935_v32 = vor.u32 %v6673_v26, %v4932_v28 }
  0x54   :  { %435 = vmatpush.bf16.msra.mxu2 %v4775_v56  ;;  %966 = vmatpush.bf16.msrb.mxu0 %v5075_v13  ;;  %v4899_v56 = vor.u32 %v6667_v52, %v4898_v51  ;;  %v5011_v13 = vor.u32 %v6695_v11, %v5010_v7  ;;  %v4980_v51 = vld [vmem:[#allocation10 + $0x130] sm:$0xf0]  ;;  %v4954_v7 = vld [vmem:[#allocation10 + $0xe8] sm:$0xf] }
  0x56   :  { %955 = vmatpush.bf16.msra.mxu3 %v4899_v56  ;;  %v4962_v56 = vld [vmem:[#allocation10 + $0x100] sm:$0xf] }
  0x57   :  { %980 = vmatpush.bf16.msrb.mxu1 %v4951_v14  ;;  %v4884_v14 = vld [vmem:[#allocation10 + $0x70] sm:$0xf0] }
  0x58   :  { %994 = vmatpush.bf16.msrb.mxu2 %v5079_v18  ;;  %967 = vmatpush.bf16.msrb.mxu0 %v5059_v27 }
  0x5a   :  { %956 = vmatpush.bf16.msra.mxu3 %v4883_v10 }
  0x5b   :  { %981 = vmatpush.bf16.msrb.mxu1 %v4935_v32 }
  0x5c   :  { %995 = vmatpush.bf16.msrb.mxu2 %v5063_v33  ;;  %968 = vmatpush.bf16.msrb.mxu0 %v5043_v43  ;;  %v6689_v33 = vld [vmem:[#allocation10 + $0x144] sm:$0xf] }
  0x5f   :  { %982 = vmatpush.bf16.msrb.mxu1 %v4919_v49 }
  0x60   :  { %996 = vmatpush.bf16.msrb.mxu2 %v5047_v50  ;;  %v6685_v50 = vld [vmem:[#allocation10 + $0x124] sm:$0xf] }
  0xd0   :  { %v300_v57 = vpop.f32.mrf.mxu0 }
  0xd1   :  { %v301_v59 = vadd.f32 %v7116_v58, %v300_v57  ;;  %v6699_v57 = vld [vmem:[#allocation10 + $0x18c] sm:$0xf0] }
  0xd3   :  { %v307_v61 = vmul.f32 0.2, %v301_v59  ;;  %vm305_vm0 = vcmp.gt.f32.partialorder %v301_v59, 0.0 }
  0xd5   :  { %v309_v0 = vsel %vm305_vm0, %v301_v59, %v307_v61  ;;  %v5027_v59 = vor.u32 %v6699_v57, %v5026_v53  ;;  %v6697_v61 = vld [vmem:[#allocation10 + $0x184] sm:$0xf] }
  0xd7   :  { %969 = vmatpush.bf16.msrb.mxu0 %v5027_v59 }
  0xd8   :  { %v302_v60 = vpop.f32.mrf.mxu0 }
  0xd9   :  { %v303_v62 = vadd.f32 %v7116_v58, %v302_v60  ;;  %v6665_v58 = vld [vmem:[#allocation10 + $0x84] sm:$0xf]  ;;  %v4900_v60 = vld [vmem:[#allocation10 + $0x90] sm:$0xf0] }
  0xdb   :  { %v308_v63 = vmul.f32 0.2, %v303_v62  ;;  %vm306_vm1 = vcmp.gt.f32.partialorder %v303_v62, 0.0  ;;  %970 = vmatpush.bf16.msrb.mxu0 %v5011_v13  ;;  %v6712_v13 = vld [vmem:[#allocation10 + $0x1f4] sm:$0xf0] }
  0xdd   :  { %v310_v1 = vsel %vm306_vm1, %v303_v62, %v308_v63  ;;  %v5028_v62 = vld [vmem:[#allocation10 + $0x190] sm:$0xf0] }
  0xde   :  { %v311_v2 = vpack.c.bf16 %v310_v1, %v309_v0  ;;  %v4903_v1 = vor.u32 %v6665_v58, %v4900_v60  ;;  %v6683_v60 = vld [vmem:[#allocation10 + $0x10c] sm:$0xf0] }
  0xe0   :  { %422 = vmatmul.bf16.vlgmr.msra.gmra.mxu1 %v311_v2  ;;  %436 = vmatmul.bf16.vlgmr.msra.gmra.mxu2 %v311_v2  ;;  %v5031_v2 = vor.u32 %v6697_v61, %v5028_v62  ;;  %v6649_v61 = vld [vmem:[#allocation10 + $0x4] sm:$0xf]  ;;  %v4963_v62 = vor.u32 %v6683_v60, %v4962_v56  ;;  %v5034_v60 = vld [vmem:[#allocation10 + $0x188] sm:$0xf] }
  0xe1   :  { %983 = vmatpush.bf16.msrb.mxu1 %v4903_v1  ;;  %v4964_v1 = vld [vmem:[#allocation10 + $0x110] sm:$0xf0] }
  0xe2   :  { %997 = vmatpush.bf16.msrb.mxu2 %v5031_v2 }
  0xe6   :  { %998 = vmatpush.bf16.msrb.mxu2 %v5015_v21  ;;  %v6710_v21 = vld [vmem:[#allocation10 + $0x1ec] sm:$0xf] }
 0x15d   :  { %v423_v12 = vpop.f32.mrf.mxu1 }
 0x15e   :  { %v7580_v17 = vadd.f32 %v423_v12, %v330_v4  ;;  %v6661_v12 = vld [vmem:[#allocation10 + $0x64] sm:$0xf] }
 0x15f   :  { %v4887_v18 = vor.u32 %v6661_v12, %v4884_v14  ;;  %v5082_v12 = vld [vmem:[#allocation10 + $0x1e8] sm:$0xf]  ;;  %v6678_v14 = vld [vmem:[#allocation10 + $0xec] sm:$0xf] }
 0x160   :  { %v454_v22 = vrot.slane %v7580_v17, 4  ;;  %v5083_v19 = vor.u32 %v6712_v13, %v5082_v12  ;;  %v6664_v12 = vld [vmem:[#allocation10 + $0x74] sm:$0xf0] }
 0x161   :  { %984 = vmatpush.bf16.msrb.mxu1 %v4887_v18 }
 0x162   :  { %v455_v31 = vadd.f32 %v454_v22, %v7580_v17  ;;  %v4866_v22 = vld [vmem:[#allocation10 + $0x40] sm:$0xf] }
 0x163   :  { %v437_v34 = vpop.f32.mrf.mxu2  ;;  %v4867_v28 = vor.u32 %v6659_v24, %v4866_v22  ;;  %v4959_v22 = vor.u32 %v6678_v14, %v4956_v20  ;;  %v5084_v24 = vld [vmem:[#allocation10 + $0x1f8] sm:$0xf0] }
 0x164   :  { %v456_v38 = vrot.slane %v455_v31, 2  ;;  %v7587_v39 = vadd.f32 %v437_v34, %v331_v23  ;;  %v4996_v34 = vld [vmem:[#allocation10 + $0x150] sm:$0xf0] }
 0x165   :  { %957 = vmatpush.bf16.msra.mxu3 %v4867_v28  ;;  %v4999_v37 = vor.u32 %v6689_v33, %v4996_v34  ;;  %v6674_v33 = vld [vmem:[#allocation10 + $0xcc] sm:$0xf]  ;;  %v4940_v34 = vld [vmem:[#allocation10 + $0xd8] sm:$0xf0] }
 0x166   :  { %v457_v47 = vadd.f32 %v456_v38, %v455_v31  ;;  %v461_v48 = vrot.slane %v7587_v39, 4  ;;  %v4995_v31 = vor.u32 %v6691_v29, %v4994_v25  ;;  %v4850_v38 = vld [vmem:[#allocation10 + $0x20] sm:$0xf]  ;;  %v4938_v25 = vld [vmem:[#allocation10 + $0xc8] sm:$0xf]  ;;  %v5087_v29 = vor.u32 %v6710_v21, %v5084_v24 }
 0x167   :  { %v4851_v44 = vor.u32 %v6655_v40, %v4850_v38  ;;  %999 = vmatpush.bf16.msrb.mxu2 %v4999_v37  ;;  %v4943_v40 = vor.u32 %v6674_v33, %v4940_v34  ;;  %v4892_v21 = vld [vmem:[#allocation10 + $0x78] sm:$0xf0] }
 0x168   :  { %v458_v54 = vrot.slane %v457_v47, 1  ;;  %v462_v55 = vadd.f32 %v461_v48, %v7587_v39  ;;  %971 = vmatpush.bf16.msrb.mxu0 %v4995_v31  ;;  %v4979_v48 = vor.u32 %v6687_v45, %v4978_v41  ;;  %v6708_v31 = vld [vmem:[#allocation10 + $0x1d4] sm:$0xf0]  ;;  %v5068_v41 = vld [vmem:[#allocation10 + $0x1d8] sm:$0xf0] }
 0x169   :  { %958 = vmatpush.bf16.msra.mxu3 %v4851_v44  ;;  %v4922_v44 = vld [vmem:[#allocation10 + $0xa8] sm:$0xf]  ;;  %v6672_v45 = vld [vmem:[#allocation10 + $0xb4] sm:$0xf0]  ;;  %v5020_v24 = vld [vmem:[#allocation10 + $0x178] sm:$0xf0] }
 0x16a   :  { %v459_v63 = vadd.f32 %v458_v54, %v457_v47  ;;  %v463_v0 = vrot.slane %v462_v55, 2  ;;  %v4852_v47 = vld [vmem:[#allocation10 + $0x30] sm:$0xf0]  ;;  %v4983_v54 = vor.u32 %v6685_v50, %v4980_v51  ;;  %v6670_v50 = vld [vmem:[#allocation10 + $0xac] sm:$0xf] }
 0x16b   :  { %v4855_v49 = vor.u32 %v6653_v46, %v4852_v47  ;;  %v4923_v47 = vor.u32 %v6672_v45, %v4922_v44  ;;  %v4858_v44 = vld [vmem:[#allocation10 + $0x28] sm:$0xf] }
 0x16c   :  { %v7591_v8 = vmul.f32 0.125, %v459_v63  ;;  %v464_v9 = vadd.f32 %v463_v0, %v462_v55  ;;  %972 = vmatpush.bf16.msrb.mxu0 %v4979_v48  ;;  %v4834_v55 = vld [vmem:[#allocation10] sm:$0xf]  ;;  %1000 = vmatpush.bf16.msrb.mxu2 %v4983_v54  ;;  %v4836_v63 = vld [vmem:[#allocation10 + $0x10] sm:$0xf0] }
 0x16d   :  { %v6681_v0 = vld [vmem:[#allocation10 + $0x104] sm:$0xf]  ;;  %v4839_v6 = vor.u32 %v6649_v61, %v4836_v63  ;;  %v5050_v48 = vld [vmem:[#allocation10 + $0x1a8] sm:$0xf]  ;;  %v5052_v54 = vld [vmem:[#allocation10 + $0x1b8] sm:$0xf0] }
 0x16e   :  { %v7595_v15 = vsub.f32 %v7580_v17, %v7591_v8  ;;  %v465_v16 = vrot.slane %v464_v9, 1  ;;  %v4868_v17 = vld [vmem:[#allocation10 + $0x50] sm:$0xf0]  ;;  %v4967_v10 = vor.u32 %v6681_v0, %v4964_v1  ;;  %v6700_v61 = vld [vmem:[#allocation10 + $0x194] sm:$0xf0] }
 0x16f   :  { %v4871_v32 = vor.u32 %v6657_v30, %v4868_v17  ;;  %v5066_v17 = vld [vmem:[#allocation10 + $0x1c8] sm:$0xf]  ;;  %v5035_v0 = vor.u32 %v6700_v61, %v5034_v60  ;;  %v4908_v1 = vld [vmem:[#allocation10 + $0x98] sm:$0xf0]  ;;  %v6652_v60 = vld [vmem:[#allocation10 + $0x14] sm:$0xf0] }
 0x170   :  { %v477_v26 = vmul.f32 %v7595_v15, %v7595_v15  ;;  %v466_v27 = vadd.f32 %v465_v16, %v464_v9  ;;  %v6680_v9 = vld [vmem:[#allocation10 + $0xf4] sm:$0xf0]  ;;  %973 = vmatpush.bf16.msrb.mxu0 %v4963_v62  ;;  %1001 = vmatpush.bf16.msrb.mxu2 %v4967_v10  ;;  %v6666_v62 = vld [vmem:[#allocation10 + $0x8c] sm:$0xf]  ;;  %v4970_v61 = vld [vmem:[#allocation10 + $0x108] sm:$0xf] }
 0x171   :  { %985 = vmatpush.bf16.msrb.mxu1 %v4871_v32  ;;  %v4955_v11 = vor.u32 %v6680_v9, %v4954_v7  ;;  %v5067_v32 = vor.u32 %v6708_v31, %v5066_v17  ;;  %v5002_v17 = vld [vmem:[#allocation10 + $0x148] sm:$0xf]  ;;  %v6692_v31 = vld [vmem:[#allocation10 + $0x154] sm:$0xf0] }
 0x172   :  { %v482_v35 = vrot.slane %v477_v26, 4  ;;  %v7599_v36 = vmul.f32 0.125, %v466_v27 }
 0x174   :  { %v483_v42 = vadd.f32 %v482_v35, %v477_v26  ;;  %v7603_v43 = vsub.f32 %v7587_v39, %v7599_v36  ;;  %v6651_v39 = vld [vmem:[#allocation10 + $0xc] sm:$0xf0]  ;;  %v6676_v26 = vld [vmem:[#allocation10 + $0xd4] sm:$0xf0]  ;;  %1022 = vmatpush.bf16.msra.mxu0 %v5083_v19  ;;  %v6706_v35 = vld [vmem:[#allocation10 + $0x1cc] sm:$0xf]  ;;  %1050 = vmatpush.bf16.msra.mxu2 %v5087_v29 }
 0x175   :  { %986 = vmatpush.bf16.msrb.mxu1 %v4855_v49  ;;  %v4835_v59 = vor.u32 %v6651_v39, %v4834_v55  ;;  %v4939_v30 = vor.u32 %v6676_v26, %v4938_v25  ;;  %v6704_v49 = vld [vmem:[#allocation10 + $0x1b4] sm:$0xf0]  ;;  %v6662_v19 = vld [vmem:[#allocation10 + $0x6c] sm:$0xf] }
 0x176   :  { %v484_v52 = vrot.slane %v483_v42, 2  ;;  %v478_v53 = vmul.f32 %v7603_v43, %v7603_v43  ;;  %v5051_v51 = vor.u32 %v6704_v49, %v5050_v48  ;;  %v4895_v25 = vor.u32 %v6662_v19, %v4892_v21  ;;  %v4986_v48 = vld [vmem:[#allocation10 + $0x128] sm:$0xf]  ;;  %v6688_v49 = vld [vmem:[#allocation10 + $0x134] sm:$0xf0] }
 0x177   :  { %959 = vmatpush.bf16.msra.mxu3 %v4835_v59  ;;  %v442_v19 = vld [vmem:[%s8297_s5] sm:$0x3] }
 0x178   :  { %v485_v57 = vadd.f32 %v484_v52, %v483_v42  ;;  %v489_v58 = vrot.slane %v478_v53, 4  ;;  %v5071_v42 = vor.u32 %v6706_v35, %v5068_v41  ;;  %1023 = vmatpush.bf16.msra.mxu0 %v5067_v32  ;;  %v4924_v52 = vld [vmem:[#allocation10 + $0xb8] sm:$0xf0]  ;;  %v6658_v32 = vld [vmem:[#allocation10 + $0x4c] sm:$0xf]  ;;  %v5003_v35 = vor.u32 %v6692_v31, %v5002_v17 }
 0x179   :  { %987 = vmatpush.bf16.msrb.mxu1 %v4839_v6  ;;  %v4927_v39 = vor.u32 %v6670_v50, %v4924_v52  ;;  %v5036_v6 = vld [vmem:[#allocation10 + $0x198] sm:$0xf0]  ;;  %v6654_v52 = vld [vmem:[#allocation10 + $0x2c] sm:$0xf] }
 0x17a   :  { %v486_v2 = vrot.slane %v485_v57, 1  ;;  %v490_v5 = vadd.f32 %v489_v58, %v478_v53  ;;  %v6702_v53 = vld [vmem:[#allocation10 + $0x1ac] sm:$0xf]  ;;  %1051 = vmatpush.bf16.msra.mxu2 %v5071_v42  ;;  %v6668_v58 = vld [vmem:[#allocation10 + $0x94] sm:$0xf0] }
 0x17b   :  { %1008 = vmatpush.bf16.msrb.mxu3 %v4955_v11  ;;  %v5055_v56 = vor.u32 %v6702_v53, %v5052_v54  ;;  %v4890_v11 = vld [vmem:[#allocation10 + $0x68] sm:$0xf]  ;;  %v5004_v42 = vld [vmem:[#allocation10 + $0x158] sm:$0xf0]  ;;  %v6686_v54 = vld [vmem:[#allocation10 + $0x12c] sm:$0xf] }
 0x17c   :  { %v487_v16 = vadd.f32 %v486_v2, %v485_v57  ;;  %v491_v18 = vrot.slane %v490_v5, 2  ;;  %v4906_v57 = vld [vmem:[#allocation10 + $0x88] sm:$0xf]  ;;  %1024 = vmatpush.bf16.msra.mxu0 %v5051_v51  ;;  %v6698_v2 = vld [vmem:[#allocation10 + $0x18c] sm:$0xf]  ;;  %v4891_v14 = vor.u32 %v6664_v12, %v4890_v11  ;;  %v4987_v51 = vor.u32 %v6688_v49, %v4986_v48 }
 0x17d   :  { %1036 = vmatpush.bf16.msra.mxu1 %v4959_v22  ;;  %v4907_v59 = vor.u32 %v6668_v58, %v4906_v57  ;;  %v5039_v9 = vor.u32 %v6698_v2, %v5036_v6  ;;  %v6694_v22 = vld [vmem:[#allocation10 + $0x16c] sm:$0xf]  ;;  %v4860_v53 = vld [vmem:[#allocation10 + $0x38] sm:$0xf0]  ;;  %v4842_v58 = vld [vmem:[#allocation10 + $0x8] sm:$0xf] }
 0x17e   :  { %v495_v27 = vmul.f32 0.125, %v487_v16  ;;  %v492_v28 = vadd.f32 %v491_v18, %v490_v5  ;;  %v4911_v5 = vor.u32 %v6666_v62, %v4908_v1  ;;  %1052 = vmatpush.bf16.msra.mxu2 %v5055_v56  ;;  %v5018_v16 = vld [vmem:[#allocation10 + $0x168] sm:$0xf]  ;;  %v6696_v18 = vld [vmem:[#allocation10 + $0x174] sm:$0xf0]  ;;  %v5023_v26 = vor.u32 %v6694_v22, %v5020_v24 }
 0x17f   :  { %1009 = vmatpush.bf16.msrb.mxu3 %v4939_v30  ;;  %v5019_v20 = vor.u32 %v6696_v18, %v5018_v16  ;;  %v4863_v56 = vor.u32 %v6654_v52, %v4860_v53  ;;  %v4988_v57 = vld [vmem:[#allocation10 + $0x138] sm:$0xf0]  ;;  %v6684_v62 = vld [vmem:[#allocation10 + $0x114] sm:$0xf0]  ;;  %v4843_v1 = vor.u32 %v6652_v60, %v4842_v58  ;;  %v6650_v2 = vld [vmem:[#allocation10 + $0xc] sm:$0xf]  ;;  %v425_v16 = vpop.f32.mrf.mxu1  ;;  %v439_v18 = vpop.f32.mrf.mxu2 }
 0x180   :  { %v7607_v37 = vadd.f32 0.8, %v495_v27  ;;  %v493_v38 = vrot.slane %v492_v28, 1  ;;  %1025 = vmatpush.bf16.msra.mxu0 %v5035_v0  ;;  %v4874_v27 = vld [vmem:[#allocation10 + $0x48] sm:$0xf]  ;;  %v4971_v6 = vor.u32 %v6684_v62, %v4970_v61 }
 0x181   :  { %1037 = vmatpush.bf16.msra.mxu1 %v4943_v40  ;;  %v6690_v40 = vld [vmem:[#allocation10 + $0x14c] sm:$0xf]  ;;  %v443_v22 = vld [vmem:[#allocation9] sm:$0x3]  ;;  %v6773_v58 = vld [vmem:[#allocation15 + $0x1dc] sm:$0xf0] }
 0x182   :  { %7117 = vrsqrt.f32 %v7607_v37  ;;  %v494_v46 = vadd.f32 %v493_v38, %v492_v28  ;;  %1053 = vmatpush.bf16.msra.mxu2 %v5039_v9  ;;  %v6660_v28 = vld [vmem:[#allocation10 + $0x54] sm:$0xf0]  ;;  %v4876_v38 = vld [vmem:[#allocation10 + $0x58] sm:$0xf0]  ;;  %v6682_v9 = vld [vmem:[#allocation10 + $0x10c] sm:$0xf]  ;;  %vm505_vm6 = vweird.f32 %v7607_v37 }
 0x183   :  { %1010 = vmatpush.bf16.msrb.mxu3 %v4923_v47  ;;  %v4875_v30 = vor.u32 %v6660_v28, %v4874_v27  ;;  %v4879_v41 = vor.u32 %v6658_v32, %v4876_v38  ;;  %v6656_v47 = vld [vmem:[#allocation10 + $0x34] sm:$0xf0]  ;;  %v6837_v62 = vld [vmem:[#allocation15 + $0x3dc] sm:$0xf0] }
 0x184   :  { %v496_v55 = vmul.f32 0.125, %v494_v46  ;;  %1026 = vmatpush.bf16.msra.mxu0 %v5019_v20  ;;  %v5007_v46 = vor.u32 %v6690_v40, %v5004_v42  ;;  %v4859_v50 = vor.u32 %v6656_v47, %v4858_v44 }
 0x185   :  { %1038 = vmatpush.bf16.msra.mxu1 %v4927_v39 }
 0x186   :  { %v7610_v63 = vadd.f32 0.8, %v496_v55  ;;  %1054 = vmatpush.bf16.msra.mxu2 %v5023_v26 }
 0x187   :  { %1011 = vmatpush.bf16.msrb.mxu3 %v4907_v59  ;;  %v4991_v59 = vor.u32 %v6686_v54, %v4988_v57  ;;  %v5314_v57 = vld [vmem:[#allocation15 + $0x1c0] sm:$0xf] }
 0x188   :  { %v7612_v7 = vpop.eup %7117  ;;  %7119 = vrsqrt.f32 %v7610_v63  ;;  %1027 = vmatpush.bf16.msra.mxu0 %v5003_v35  ;;  %vm515_vm3 = vweird.f32 %v7610_v63  ;;  %v5315_v61 = vor.u32 %v6773_v58, %v5314_v57 }
 0x189   :  { %v500_v10 = vmul.f32 %v7612_v7, %v7607_v37  ;;  %1039 = vmatpush.bf16.msra.mxu1 %v4911_v5  ;;  %v4844_v5 = vld [vmem:[#allocation10 + $0x18] sm:$0xf0]  ;;  %vm506_vm4 = vweird.f32 %v7612_v7  ;;  %v426_v37 = vadd.f32 %v425_v16, %v330_v4  ;;  %v5538_v16 = vld [vmem:[#allocation15 + $0x380] sm:$0xf] }
 0x18a   :  { %1055 = vmatpush.bf16.msra.mxu2 %v5007_v46  ;;  %vm507_vm8 = vmor %vm505_vm6, %vm506_vm4  ;;  %v7645_v46 = vld [vmem:[#allocation12] sm:$0xf] }
 0x18b   :  { %v501_v13 = vmul.f32 %v7612_v7, %v500_v10  ;;  %1012 = vmatpush.bf16.msrb.mxu3 %v4891_v14  ;;  %v4972_v10 = vld [vmem:[#allocation10 + $0x118] sm:$0xf0]  ;;  %v471_v27 = vsub.f32 %v426_v37, %v7591_v8  ;;  %v625_v48 = vperm.slane %v7645_v46, 1  ;;  %v624_v49 = vperm.slane %v7645_v46, 0 }
 0x18c   :  { %1028 = vmatpush.bf16.msra.mxu0 %v4987_v51  ;;  %v4975_v14 = vor.u32 %v6682_v9, %v4972_v10 }
 0x18d   :  { %v502_v33 = vmul.f32 0.5, %v501_v13  ;;  %1040 = vmatpush.bf16.msra.mxu1 %v4895_v25  ;;  %v4847_v13 = vor.u32 %v6650_v2, %v4844_v5  ;;  %v440_v25 = vadd.f32 %v439_v18, %v331_v23  ;;  %v6901_v5 = vld [vmem:[#allocation15 + $0x5dc] sm:$0xf0] }
 0x18e   :  { %v7618_v29 = vpop.eup %7119  ;;  %1056 = vmatpush.bf16.msra.mxu2 %v4991_v59  ;;  %v5570_v59 = vld [vmem:[#allocation15 + $0x3c0] sm:$0xf] }
 0x18f   :  { %v510_v34 = vmul.f32 %v7618_v29, %v7610_v63  ;;  %1013 = vmatpush.bf16.msrb.mxu3 %v4875_v30  ;;  %v503_v55 = vsub.f32 1.5, %v502_v33  ;;  %vm516_vm2 = vweird.f32 %v7618_v29  ;;  %v472_v28 = vsub.f32 %v440_v25, %v7599_v36 }
 0x190   :  { %vm517_vm5 = vmor %vm515_vm3, %vm516_vm2  ;;  %1029 = vmatpush.bf16.msra.mxu0 %v4971_v6  ;;  %v537_v30 = vperm.slane %v443_v22, 1  ;;  %v5571_v2 = vor.u32 %v6837_v62, %v5570_v59  ;;  %v6082_v6 = vld [vmem:[#allocation15 + $0x7c0] sm:$0xf] }
 0x191   :  { %v511_v45 = vmul.f32 %v7618_v29, %v510_v34  ;;  %1041 = vmatpush.bf16.msra.mxu1 %v4879_v41  ;;  %v504_v11 = vmul.f32 %v7612_v7, %v503_v55 }
 0x192   :  { %1057 = vmatpush.bf16.msra.mxu2 %v4975_v14  ;;  %v5282_v14 = vld [vmem:[#allocation15 + $0x180] sm:$0xf] }
 0x193   :  { %v512_v39 = vmul.f32 0.5, %v511_v45  ;;  %1014 = vmatpush.bf16.msrb.mxu3 %v4859_v50  ;;  %v508_v21 = vsel %vm507_vm8, %v7612_v7, %v504_v11  ;;  %v536_v7 = vperm.slane %v443_v22, 0  ;;  %v6965_v11 = vld [vmem:[#allocation15 + $0x7dc] sm:$0xf0] }
 0x194   :  { %v6829_v22 = vld [vmem:[#allocation15 + $0x39c] sm:$0xf0] }
 0x195   :  { %v513_v0 = vsub.f32 1.5, %v512_v39  ;;  %1042 = vmatpush.bf16.msra.mxu1 %v4863_v56 }
 0x197   :  { %v514_v12 = vmul.f32 %v7618_v29, %v513_v0  ;;  %1015 = vmatpush.bf16.msrb.mxu3 %v4843_v1  ;;  %v5826_v0 = vld [vmem:[#allocation15 + $0x5c0] sm:$0xf] }
 0x198   :  { %v5827_v10 = vor.u32 %v6901_v5, %v5826_v0  ;;  %v6877_v5 = vld [vmem:[#allocation15 + $0x51c] sm:$0xf0] }
 0x199   :  { %v518_v63 = vsel %vm517_vm5, %v7618_v29, %v514_v12  ;;  %1043 = vmatpush.bf16.msra.mxu1 %v4847_v13  ;;  %v6083_v13 = vor.u32 %v6965_v11, %v6082_v6  ;;  %v5986_v6 = vld [vmem:[#allocation15 + $0x700] sm:$0xf] }
 0x19a   :  { %v521_v20 = vrot.slane %v518_v63, 7  ;;  %v6765_v63 = vld [vmem:[#allocation15 + $0x19c] sm:$0xf0] }
 0x19c   :  { %v523_v24 = vsel %vm522_vm7, %v508_v21, %v521_v20  ;;  %v5283_v21 = vor.u32 %v6765_v63, %v5282_v14 }
 0x19d   :  { %v525_v26 = vmul.f32 %v523_v24, %v442_v19  ;;  %v5794_v24 = vld [vmem:[#allocation15 + $0x580] sm:$0xf] }
 0x19f   :  { %v528_v29 = vperm.slane %v525_v26, 1  ;;  %v527_v17 = vperm.slane %v525_v26, 0  ;;  %v5539_v26 = vor.u32 %v6829_v22, %v5538_v16  ;;  %v5442_v22 = vld [vmem:[#allocation15 + $0x2c0] sm:$0xf] }
 0x1a1   :  { %v532_v31 = vmul.f32 %v528_v29, %v7603_v43  ;;  %v531_v32 = vmul.f32 %v527_v17, %v7595_v15  ;;  %v533_v33 = vmul.f32 %v527_v17, %v471_v27  ;;  %v534_v34 = vmul.f32 %v528_v29, %v472_v28  ;;  %v6893_v27 = vld [vmem:[#allocation15 + $0x59c] sm:$0xf0] }
 0x1a2   :  { %v6050_v28 = vld [vmem:[#allocation15 + $0x780] sm:$0xf] }
 0x1a3   :  { %v541_v4 = vadd.f32 %v537_v30, %v532_v31  ;;  %v540_v35 = vadd.f32 %v536_v7, %v531_v32  ;;  %v542_v3 = vadd.f32 %v536_v7, %v533_v33  ;;  %v543_v23 = vadd.f32 %v537_v30, %v534_v34  ;;  %v6957_v17 = vld [vmem:[#allocation15 + $0x79c] sm:$0xf0] }
 0x1a4   :  { %v5795_v30 = vor.u32 %v6893_v27, %v5794_v24  ;;  %v6051_v31 = vor.u32 %v6957_v17, %v6050_v28  ;;  %v5250_v32 = vld [vmem:[#allocation15 + $0x140] sm:$0xf] }
 0x1a5   :  { %v550_v38 = vmul.f32 0.2, %v542_v3  ;;  %v551_v40 = vmul.f32 0.2, %v543_v23  ;;  %vm544_vm9 = vcmp.gt.f32.partialorder %v540_v35, 0.0  ;;  %vm546_vm10 = vcmp.gt.f32.partialorder %v542_v3, 0.0 }
 0x1a6   :  { %v548_v8 = vmul.f32 0.2, %v540_v35  ;;  %vm545_vm11 = vcmp.gt.f32.partialorder %v541_v4, 0.0  ;;  %vm547_vm12 = vcmp.gt.f32.partialorder %v543_v23, 0.0  ;;  %v549_v36 = vmul.f32 0.2, %v541_v4 }
 0x1a7   :  { %v554_v41 = vsel %vm546_vm10, %v542_v3, %v550_v38  ;;  %v555_v42 = vsel %vm547_vm12, %v543_v23, %v551_v40  ;;  %v6757_v33 = vld [vmem:[#allocation15 + $0x15c] sm:$0xf0]  ;;  %vm1214_vm10 = vcmask 1042434  }
 0x1a8   :  { %v552_v44 = vsel %vm544_vm9, %v540_v35, %v548_v8  ;;  %v553_v43 = vsel %vm545_vm11, %v541_v4, %v549_v36  ;;  %v5506_v34 = vld [vmem:[#allocation15 + $0x340] sm:$0xf]  ;;  %v627_v35 = vperm.slane %v7645_v46, 3  ;;  %v5251_v3 = vor.u32 %v6757_v33, %v5250_v32 }
 0x1a9   :  { %v556_v45 = vpack.c.bf16 %v554_v41, %v552_v44  ;;  %v557_v15 = vpack.c.bf16 %v555_v42, %v553_v43  ;;  %v6821_v23 = vld [vmem:[#allocation15 + $0x35c] sm:$0xf0]  ;;  %v626_v36 = vperm.slane %v7645_v46, 2  ;;  %vm1216_vm11 = vcmask 1041408  }
 0x1aa   :  { %v5762_v38 = vld [vmem:[#allocation15 + $0x540] sm:$0xf]  ;;  %v5507_v41 = vor.u32 %v6821_v23, %v5506_v34 }
 0x1ab   :  { %960 = vmatmul.bf16.vlgmr.msra.gmra.mxu3 %v556_v45  ;;  %974 = vmatmul.bf16.vlgmr.msrb.gmra.mxu0 %v557_v15  ;;  %v6885_v42 = vld [vmem:[#allocation15 + $0x55c] sm:$0xf0] }
 0x1ac   :  { %988 = vmatmul.bf16.vlgmr.msrb.gmra.mxu1 %v556_v45  ;;  %1002 = vmatmul.bf16.vlgmr.msrb.gmra.mxu2 %v557_v15  ;;  %v6018_v44 = vld [vmem:[#allocation15 + $0x740] sm:$0xf] }
 0x1ad   :  { %2836 = vmatpush.bf16.msra.mxu3 %v5315_v61  ;;  %2850 = vmatpush.bf16.msrb.mxu0 %v5571_v2  ;;  %v5730_v61 = vld [vmem:[#allocation15 + $0x500] sm:$0xf] }
 0x1ae   :  { %2864 = vmatpush.bf16.msrb.mxu1 %v5827_v10  ;;  %2878 = vmatpush.bf16.msrb.mxu2 %v6083_v13  ;;  %v6941_v13 = vld [vmem:[#allocation15 + $0x71c] sm:$0xf0] }
 0x1af   :  { %v5987_v16 = vor.u32 %v6941_v13, %v5986_v6  ;;  %v5698_v27 = vld [vmem:[#allocation15 + $0x4c0] sm:$0xf] }
 0x1b0   :  { %v5954_v17 = vld [vmem:[#allocation15 + $0x6c0] sm:$0xf] }
 0x1b1   :  { %2837 = vmatpush.bf16.msra.mxu3 %v5283_v21  ;;  %2851 = vmatpush.bf16.msrb.mxu0 %v5539_v26  ;;  %v6741_v21 = vld [vmem:[#allocation15 + $0xdc] sm:$0xf0] }
 0x1b2   :  { %2865 = vmatpush.bf16.msrb.mxu1 %v5795_v30  ;;  %2879 = vmatpush.bf16.msrb.mxu2 %v6051_v31  ;;  %v6805_v26 = vld [vmem:[#allocation15 + $0x2dc] sm:$0xf0] }
 0x1b3   :  { %v6869_v30 = vld [vmem:[#allocation15 + $0x4dc] sm:$0xf0] }
 0x1b4   :  { %v5699_v32 = vor.u32 %v6869_v30, %v5698_v27  ;;  %v6933_v33 = vld [vmem:[#allocation15 + $0x6dc] sm:$0xf0] }
 0x1b5   :  { %2838 = vmatpush.bf16.msra.mxu3 %v5251_v3  ;;  %2852 = vmatpush.bf16.msrb.mxu0 %v5507_v41  ;;  %v5955_v3 = vor.u32 %v6933_v33, %v5954_v17  ;;  %v5154_v23 = vld [vmem:[#allocation15 + $0x80] sm:$0xf] }
 0x1b6   :  { %v6917_v27 = vld [vmem:[#allocation15 + $0x65c] sm:$0xf0] }
 0x1b7   :  { %v5090_v30 = vld [vmem:[#allocation15] sm:$0xf] }
 0x1b8   :  { %v6717_v17 = vld [vmem:[#allocation15 + $0x1c] sm:$0xf0] }
 0x1b9   :  { %v5346_v33 = vld [vmem:[#allocation15 + $0x200] sm:$0xf] }
 0x1bb   :  { %1016 = vmatmul.bf16.vlgmr.msrb.gmra.mxu3 %v556_v45  ;;  %1030 = vmatmul.bf16.vlgmr.msra.gmra.mxu0 %v557_v15 }
 0x1bc   :  { %1044 = vmatmul.bf16.vlgmr.msra.gmra.mxu1 %v556_v45  ;;  %1058 = vmatmul.bf16.vlgmr.msra.gmra.mxu2 %v557_v15  ;;  %v5763_v45 = vor.u32 %v6885_v42, %v5762_v38  ;;  %v6949_v15 = vld [vmem:[#allocation15 + $0x75c] sm:$0xf0] }
 0x1bd   :  { %v6733_v38 = vld [vmem:[#allocation15 + $0x9c] sm:$0xf0] }
 0x1be   :  { %2866 = vmatpush.bf16.msrb.mxu1 %v5763_v45  ;;  %v5155_v41 = vor.u32 %v6733_v38, %v5154_v23  ;;  %v5410_v42 = vld [vmem:[#allocation15 + $0x280] sm:$0xf] }
 0x1bf   :  { %v5602_v38 = vld [vmem:[#allocation15 + $0x400] sm:$0xf] }
 0x228   :  { %v975_v50 = vpop.f32.mrf.mxu0 }
 0x229   :  { %v989_v47 = vpop.f32.mrf.mxu1 }
 0x22a   :  { %v990_v51 = vadd.f32 %v989_v47, %v625_v48 }
 0x22e   :  { %v961_v52 = vpop.f32.mrf.mxu3 }
 0x22f   :  { %v962_v53 = vadd.f32 %v961_v52, %v624_v49  ;;  %v1003_v54 = vpop.f32.mrf.mxu2  ;;  %v6749_v52 = vld [vmem:[#allocation15 + $0x11c] sm:$0xf0] }
 0x230   :  { %v7653_v55 = vadd.f32 %v1003_v54, %v990_v51  ;;  %v7663_v19 = vpop.f32.mrf.mxu0  ;;  %v5218_v51 = vld [vmem:[#allocation15 + $0x100] sm:$0xf] }
 0x231   :  { %v7655_v39 = vadd.f32 %v975_v50, %v962_v53  ;;  %v7657_v56 = vpop.f32.mrf.mxu1  ;;  %v6019_v50 = vor.u32 %v6949_v15, %v6018_v44  ;;  %v5474_v53 = vld [vmem:[#allocation15 + $0x300] sm:$0xf]  ;;  %v5219_v59 = vor.u32 %v6749_v52, %v5218_v51 }
 0x232   :  { %v1082_v60 = vrot.slane %v7653_v55, 4  ;;  %v6797_v44 = vld [vmem:[#allocation15 + $0x29c] sm:$0xf0] }
 0x233   :  { %v1075_v1 = vrot.slane %v7655_v39, 4  ;;  %2880 = vmatpush.bf16.msrb.mxu2 %v6019_v50  ;;  %2839 = vmatpush.bf16.msra.mxu3 %v5219_v59  ;;  %v5411_v15 = vor.u32 %v6797_v44, %v5410_v42  ;;  %v6861_v50 = vld [vmem:[#allocation15 + $0x49c] sm:$0xf0] }
 0x234   :  { %v1083_v9 = vadd.f32 %v1082_v60, %v7653_v55  ;;  %v6813_v60 = vld [vmem:[#allocation15 + $0x31c] sm:$0xf0] }
 0x235   :  { %v1076_v12 = vadd.f32 %v1075_v1, %v7655_v39  ;;  %v5475_v2 = vor.u32 %v6813_v60, %v5474_v53  ;;  %v5858_v44 = vld [vmem:[#allocation15 + $0x600] sm:$0xf] }
 0x236   :  { %v1084_v18 = vrot.slane %v1083_v9, 2  ;;  %v7665_v20 = vpop.f32.mrf.mxu3 }
 0x237   :  { %v1077_v37 = vrot.slane %v1076_v12, 2  ;;  %v7667_v25 = vpop.f32.mrf.mxu2  ;;  %2853 = vmatpush.bf16.msrb.mxu0 %v5475_v2  ;;  %2881 = vmatpush.bf16.msrb.mxu2 %v5987_v16 }
 0x238   :  { %v1085_v29 = vadd.f32 %v1084_v18, %v1083_v9  ;;  %v1031_v10 = vpop.f32.mrf.mxu0  ;;  %v5186_v18 = vld [vmem:[#allocation15 + $0xc0] sm:$0xf] }
 0x239   :  { %v1078_v7 = vadd.f32 %v1077_v37, %v1076_v12  ;;  %v1045_v8 = vpop.f32.mrf.mxu1  ;;  %v5731_v12 = vor.u32 %v6877_v5, %v5730_v61  ;;  %v5187_v37 = vor.u32 %v6741_v21, %v5186_v18  ;;  %v5634_v21 = vld [vmem:[#allocation15 + $0x440] sm:$0xf] }
 0x23a   :  { %v1086_v4 = vrot.slane %v1085_v29, 1  ;;  %v1046_v57 = vadd.f32 %v1045_v8, %v627_v35 }
 0x23b   :  { %v1079_v40 = vrot.slane %v1078_v7, 1  ;;  %2867 = vmatpush.bf16.msrb.mxu1 %v5731_v12  ;;  %2840 = vmatpush.bf16.msra.mxu3 %v5187_v37  ;;  %v6789_v12 = vld [vmem:[#allocation15 + $0x25c] sm:$0xf0] }
 0x23c   :  { %v1087_v43 = vadd.f32 %v1086_v4, %v1085_v29  ;;  %v5443_v29 = vor.u32 %v6805_v26, %v5442_v22  ;;  %2882 = vmatpush.bf16.msrb.mxu2 %v5955_v3  ;;  %v6853_v22 = vld [vmem:[#allocation15 + $0x45c] sm:$0xf0] }
 0x23d   :  { %v1080_v47 = vadd.f32 %v1079_v40, %v1078_v7  ;;  %v5635_v37 = vor.u32 %v6853_v22, %v5634_v21  ;;  %v5890_v26 = vld [vmem:[#allocation15 + $0x640] sm:$0xf]  ;;  %v6825_v22 = vld [vmem:[#allocation15 + $0x384] sm:$0xf] }
 0x23e   :  { %v7671_v54 = vmul.f32 0.125, %v1087_v43  ;;  %v1017_v58 = vpop.f32.mrf.mxu3  ;;  %2854 = vmatpush.bf16.msrb.mxu0 %v5443_v29  ;;  %v5891_v29 = vor.u32 %v6917_v27, %v5890_v26 }
 0x23f   :  { %v7675_v62 = vmul.f32 0.125, %v1080_v47  ;;  %v1018_v0 = vadd.f32 %v1017_v58, %v626_v36  ;;  %v1059_v1 = vpop.f32.mrf.mxu2  ;;  %2868 = vmatpush.bf16.msrb.mxu1 %v5699_v32  ;;  %v5666_v47 = vld [vmem:[#allocation15 + $0x480] sm:$0xf]  ;;  %2841 = vmatpush.bf16.msra.mxu3 %v5155_v41  ;;  %v5091_v32 = vor.u32 %v6717_v17, %v5090_v30  ;;  %v6052_v17 = vld [vmem:[#allocation15 + $0x7a0] sm:$0xf0] }
 0x240   :  { %v7681_v9 = vsub.f32 %v7653_v55, %v7671_v54  ;;  %v7683_v11 = vadd.f32 %v1059_v1, %v1046_v57  ;;  %v5667_v53 = vor.u32 %v6861_v50, %v5666_v47  ;;  %v5922_v57 = vld [vmem:[#allocation15 + $0x680] sm:$0xf]  ;;  %v6769_v50 = vld [vmem:[#allocation15 + $0x1c4] sm:$0xf] }
 0x241   :  { %v7687_v14 = vsub.f32 %v7655_v39, %v7675_v62  ;;  %v7689_v63 = vadd.f32 %v1031_v10, %v1018_v0  ;;  %v6925_v58 = vld [vmem:[#allocation15 + $0x69c] sm:$0xf0] }
 0x242   :  { %v1123_v55 = vmul.f32 %v7681_v9, %v7681_v9  ;;  %v1096_v24 = vrot.slane %v7683_v11, 4  ;;  %2855 = vmatpush.bf16.msrb.mxu0 %v5411_v15  ;;  %v5923_v61 = vor.u32 %v6925_v58, %v5922_v57  ;;  %v5122_v0 = vld [vmem:[#allocation15 + $0x40] sm:$0xf]  ;;  %v6833_v57 = vld [vmem:[#allocation15 + $0x3c4] sm:$0xf] }
 0x243   :  { %v1122_v39 = vmul.f32 %v7687_v14, %v7687_v14  ;;  %v1089_v28 = vrot.slane %v7689_v63, 4  ;;  %v6725_v1 = vld [vmem:[#allocation15 + $0x5c] sm:$0xf0]  ;;  %2869 = vmatpush.bf16.msrb.mxu1 %v5667_v53  ;;  %v5572_v58 = vld [vmem:[#allocation15 + $0x3e0] sm:$0xf0] }
 0x244   :  { %v1138_v7 = vrot.slane %v1123_v55, 4  ;;  %v1097_v31 = vadd.f32 %v1096_v24, %v7683_v11  ;;  %v5123_v6 = vor.u32 %v6725_v1, %v5122_v0  ;;  %v5378_v10 = vld [vmem:[#allocation15 + $0x240] sm:$0xf]  ;;  %2883 = vmatpush.bf16.msrb.mxu2 %v5923_v61  ;;  %v6897_v61 = vld [vmem:[#allocation15 + $0x5c4] sm:$0xf] }
 0x245   :  { %v1131_v34 = vrot.slane %v1122_v39, 4  ;;  %v1090_v4 = vadd.f32 %v1089_v28, %v7689_v63  ;;  %v5379_v18 = vor.u32 %v6789_v12, %v5378_v10  ;;  %v5828_v0 = vld [vmem:[#allocation15 + $0x5e0] sm:$0xf0] }
 0x246   :  { %v1139_v40 = vadd.f32 %v1138_v7, %v1123_v55  ;;  %v1098_v8 = vrot.slane %v1097_v31, 2  ;;  %2842 = vmatpush.bf16.msra.mxu3 %v5123_v6  ;;  %v6084_v6 = vld [vmem:[#allocation15 + $0x7e0] sm:$0xf0] }
 0x247   :  { %v1132_v43 = vadd.f32 %v1131_v34, %v1122_v39  ;;  %v1091_v45 = vrot.slane %v1090_v4, 2  ;;  %2856 = vmatpush.bf16.msrb.mxu0 %v5379_v18  ;;  %2870 = vmatpush.bf16.msrb.mxu1 %v5635_v37  ;;  %v6781_v34 = vld [vmem:[#allocation15 + $0x21c] sm:$0xf0] }
 0x248   :  { %v1140_v51 = vrot.slane %v1139_v40, 2  ;;  %v1099_v52 = vadd.f32 %v1098_v8, %v1097_v31  ;;  %2884 = vmatpush.bf16.msrb.mxu2 %v5891_v29  ;;  %v5347_v23 = vor.u32 %v6781_v34, %v5346_v33 }
 0x249   :  { %v1133_v59 = vrot.slane %v1132_v43, 2  ;;  %v1092_v60 = vadd.f32 %v1091_v45, %v1090_v4 }
 0x24a   :  { %v1141_v2 = vadd.f32 %v1140_v51, %v1139_v40  ;;  %v1100_v5 = vrot.slane %v1099_v52, 1  ;;  %v6845_v40 = vld [vmem:[#allocation15 + $0x41c] sm:$0xf0]  ;;  %2843 = vmatpush.bf16.msra.mxu3 %v5091_v32  ;;  %v5316_v51 = vld [vmem:[#allocation15 + $0x1e0] sm:$0xf0] }
 0x24b   :  { %v1134_v13 = vadd.f32 %v1133_v59, %v1132_v43  ;;  %v1093_v16 = vrot.slane %v1092_v60, 1  ;;  %v5603_v42 = vor.u32 %v6845_v40, %v5602_v38  ;;  %v6909_v43 = vld [vmem:[#allocation15 + $0x61c] sm:$0xf0]  ;;  %2857 = vmatpush.bf16.msrb.mxu0 %v5347_v23  ;;  %v6817_v23 = vld [vmem:[#allocation15 + $0x344] sm:$0xf] }
 0x24c   :  { %v1142_v55 = vrot.slane %v1141_v2, 1  ;;  %v1101_v24 = vadd.f32 %v1100_v5, %v1099_v52  ;;  %v5859_v47 = vor.u32 %v6909_v43, %v5858_v44  ;;  %v6961_v5 = vld [vmem:[#allocation15 + $0x7c4] sm:$0xf] }
 0x24d   :  { %v1135_v39 = vrot.slane %v1134_v13, 1  ;;  %v1094_v28 = vadd.f32 %v1093_v16, %v1092_v60  ;;  %2871 = vmatpush.bf16.msrb.mxu1 %v5603_v42  ;;  %v6087_v12 = vor.u32 %v6961_v5, %v6084_v6  ;;  %v5284_v16 = vld [vmem:[#allocation15 + $0x1a0] sm:$0xf0] }
 0x24e   :  { %v1143_v7 = vadd.f32 %v1142_v55, %v1141_v2  ;;  %v7699_v31 = vmul.f32 0.125, %v1101_v24  ;;  %2885 = vmatpush.bf16.msrb.mxu2 %v5859_v47  ;;  %v5831_v2 = vor.u32 %v6897_v61, %v5828_v0  ;;  %v5540_v55 = vld [vmem:[#allocation15 + $0x3a0] sm:$0xf0] }
 0x24f   :  { %v1136_v4 = vadd.f32 %v1135_v39, %v1134_v13  ;;  %v7701_v3 = vmul.f32 0.125, %v1094_v28  ;;  %v6761_v13 = vld [vmem:[#allocation15 + $0x184] sm:$0xf]  ;;  %v5543_v26 = vor.u32 %v6825_v22, %v5540_v55 }
 0x250   :  { %v1159_v8 = vmul.f32 0.125, %v1143_v7  ;;  %v7705_v41 = vsub.f32 %v7683_v11, %v7699_v31  ;;  %v5319_v11 = vor.u32 %v6769_v50, %v5316_v51  ;;  %v5287_v21 = vor.u32 %v6761_v13, %v5284_v16  ;;  %v6889_v24 = vld [vmem:[#allocation15 + $0x584] sm:$0xf] }
 0x251   :  { %v1158_v45 = vmul.f32 0.125, %v1136_v4  ;;  %v7709_v15 = vsub.f32 %v7689_v63, %v7701_v3  ;;  %v5575_v63 = vor.u32 %v6833_v57, %v5572_v58  ;;  %2920 = vmatpush.bf16.msra.mxu1 %v5831_v2  ;;  %v5796_v39 = vld [vmem:[#allocation15 + $0x5a0] sm:$0xf0] }
 0x252   :  { %v7711_v52 = vadd.f32 0.8, %v1159_v8  ;;  %v1125_v53 = vmul.f32 %v7705_v41, %v7705_v41  ;;  %2892 = vmatpush.bf16.msrb.mxu3 %v5319_v11  ;;  %2934 = vmatpush.bf16.msra.mxu2 %v6087_v12  ;;  %v6953_v28 = vld [vmem:[#allocation15 + $0x784] sm:$0xf]  ;;  %v5799_v30 = vor.u32 %v6889_v24, %v5796_v39 }
 0x253   :  { %v7715_v59 = vadd.f32 0.8, %v1158_v45  ;;  %v1124_v60 = vmul.f32 %v7709_v15, %v7709_v15  ;;  %2906 = vmatpush.bf16.msra.mxu0 %v5575_v63  ;;  %v6753_v7 = vld [vmem:[#allocation15 + $0x144] sm:$0xf]  ;;  %v6055_v34 = vor.u32 %v6953_v28, %v6052_v17 }
 0x254   :  { %7121 = vrsqrt.f32 %v7711_v52  ;;  %v1152_v1 = vrot.slane %v1125_v53, 4  ;;  %v5252_v4 = vld [vmem:[#allocation15 + $0x160] sm:$0xf0]  ;;  %vm1182_vm15 = vweird.f32 %v7711_v52 }
 0x255   :  { %7123 = vrsqrt.f32 %v7715_v59  ;;  %v1145_v10 = vrot.slane %v1124_v60, 4  ;;  %v5508_v38 = vld [vmem:[#allocation15 + $0x360] sm:$0xf0]  ;;  %2921 = vmatpush.bf16.msra.mxu1 %v5799_v30  ;;  %v5255_v44 = vor.u32 %v6753_v7, %v5252_v4  ;;  %vm1172_vm0 = vweird.f32 %v7715_v59 }
 0x256   :  { %v1153_v18 = vadd.f32 %v1152_v1, %v1125_v53  ;;  %2893 = vmatpush.bf16.msrb.mxu3 %v5287_v21  ;;  %v6881_v43 = vld [vmem:[#allocation15 + $0x544] sm:$0xf]  ;;  %2935 = vmatpush.bf16.msra.mxu2 %v6055_v34  ;;  %v5511_v51 = vor.u32 %v6817_v23, %v5508_v38 }
 0x257   :  { %v1146_v37 = vadd.f32 %v1145_v10, %v1124_v60  ;;  %2907 = vmatpush.bf16.msra.mxu0 %v5543_v26  ;;  %v5764_v45 = vld [vmem:[#allocation15 + $0x560] sm:$0xf0] }
 0x258   :  { %v1154_v27 = vrot.slane %v1153_v18, 2  ;;  %v6945_v47 = vld [vmem:[#allocation15 + $0x744] sm:$0xf]  ;;  %v5767_v60 = vor.u32 %v6881_v43, %v5764_v45 }
 0x259   :  { %v1147_v29 = vrot.slane %v1146_v37, 2  ;;  %v6020_v53 = vld [vmem:[#allocation15 + $0x760] sm:$0xf0] }
 0x25a   :  { %v7721_v32 = vpop.eup %7121  ;;  %v1155_v33 = vadd.f32 %v1154_v27, %v1153_v18  ;;  %v6745_v11 = vld [vmem:[#allocation15 + $0x104] sm:$0xf]  ;;  %2894 = vmatpush.bf16.msrb.mxu3 %v5255_v44  ;;  %v6023_v63 = vor.u32 %v6945_v47, %v6020_v53  ;;  %2922 = vmatpush.bf16.msra.mxu1 %v5767_v60 }
 0x25b   :  { %v7723_v40 = vpop.eup %7123  ;;  %v1177_v8 = vmul.f32 %v7721_v32, %v7711_v52  ;;  %v1148_v42 = vadd.f32 %v1147_v29, %v1146_v37  ;;  %v5220_v61 = vld [vmem:[#allocation15 + $0x120] sm:$0xf0]  ;;  %2908 = vmatpush.bf16.msra.mxu0 %v5511_v51  ;;  %vm1183_vm13 = vweird.f32 %v7721_v32 }
 0x25c   :  { %v1156_v50 = vrot.slane %v1155_v33, 1  ;;  %v1167_v57 = vmul.f32 %v7723_v40, %v7715_v59  ;;  %v6809_v0 = vld [vmem:[#allocation15 + $0x304] sm:$0xf]  ;;  %v5223_v5 = vor.u32 %v6745_v11, %v5220_v61  ;;  %2936 = vmatpush.bf16.msra.mxu2 %v6023_v63  ;;  %vm1173_vm14 = vweird.f32 %v7723_v40  ;;  %vm7756_vm1 = vmor %vm1182_vm15, %vm1183_vm13 }
 0x25d   :  { %v1149_v58 = vrot.slane %v1148_v42, 1  ;;  %v1178_v1 = vmul.f32 %v7721_v32, %v1177_v8  ;;  %v5476_v6 = vld [vmem:[#allocation15 + $0x320] sm:$0xf0]  ;;  %vm7767_vm4 = vmor %vm1172_vm0, %vm1173_vm14 }
 0x25e   :  { %v1157_v2 = vadd.f32 %v1156_v50, %v1155_v33  ;;  %v6873_v10 = vld [vmem:[#allocation15 + $0x504] sm:$0xf]  ;;  %v5479_v16 = vor.u32 %v6809_v0, %v5476_v6  ;;  %v1168_v37 = vmul.f32 %v7723_v40, %v1167_v57  ;;  %2895 = vmatpush.bf16.msrb.mxu3 %v5223_v5 }
 0x25f   :  { %v5732_v12 = vld [vmem:[#allocation15 + $0x520] sm:$0xf0]  ;;  %v1150_v13 = vadd.f32 %v1149_v58, %v1148_v42  ;;  %v7731_v39 = vmul.f32 0.5, %v1178_v1 }
 0x260   :  { %v5735_v18 = vor.u32 %v6873_v10, %v5732_v12  ;;  %v6937_v21 = vld [vmem:[#allocation15 + $0x704] sm:$0xf]  ;;  %v1161_v55 = vmul.f32 0.125, %v1157_v2  ;;  %2909 = vmatpush.bf16.msra.mxu0 %v5479_v16  ;;  %v7739_v47 = vmul.f32 0.5, %v1168_v37 }
 0x261   :  { %v5988_v22 = vld [vmem:[#allocation15 + $0x720] sm:$0xf0]  ;;  %v1160_v26 = vmul.f32 0.125, %v1150_v13  ;;  %v1180_v50 = vsub.f32 1.5, %v7731_v39 }
 0x262   :  { %v6737_v24 = vld [vmem:[#allocation15 + $0xc4] sm:$0xf]  ;;  %v7733_v28 = vadd.f32 0.8, %v1161_v55  ;;  %v5991_v29 = vor.u32 %v6937_v21, %v5988_v22  ;;  %2923 = vmatpush.bf16.msra.mxu1 %v5735_v18 }
 0x263   :  { %v5188_v27 = vld [vmem:[#allocation15 + $0xe0] sm:$0xf0]  ;;  %v7735_v7 = vadd.f32 0.8, %v1160_v26 }
 0x264   :  { %v5191_v30 = vor.u32 %v6737_v24, %v5188_v27  ;;  %v6801_v17 = vld [vmem:[#allocation15 + $0x2c4] sm:$0xf]  ;;  %7125 = vrsqrt.f32 %v7733_v28  ;;  %2937 = vmatpush.bf16.msra.mxu2 %v5991_v29  ;;  %vm1202_vm5 = vweird.f32 %v7733_v28 }
 0x265   :  { %v5444_v33 = vld [vmem:[#allocation15 + $0x2e0] sm:$0xf0]  ;;  %7127 = vrsqrt.f32 %v7735_v7  ;;  %vm1192_vm6 = vweird.f32 %v7735_v7 }
 0x266   :  { %v6865_v34 = vld [vmem:[#allocation15 + $0x4c4] sm:$0xf]  ;;  %v5447_v4 = vor.u32 %v6801_v17, %v5444_v33  ;;  %2896 = vmatpush.bf16.msrb.mxu3 %v5191_v30 }
 0x267   :  { %v5700_v23 = vld [vmem:[#allocation15 + $0x4e0] sm:$0xf0] }
 0x268   :  { %v6929_v38 = vld [vmem:[#allocation15 + $0x6c4] sm:$0xf]  ;;  %v5703_v42 = vor.u32 %v6865_v34, %v5700_v23  ;;  %2910 = vmatpush.bf16.msra.mxu0 %v5447_v4 }
 0x269   :  { %v5956_v8 = vld [vmem:[#allocation15 + $0x6e0] sm:$0xf0] }
 0x26a   :  { %v6729_v44 = vld [vmem:[#allocation15 + $0x84] sm:$0xf]  ;;  %v5959_v51 = vor.u32 %v6929_v38, %v5956_v8  ;;  %2924 = vmatpush.bf16.msra.mxu1 %v5703_v42  ;;  %v7742_v18 = vpop.eup %7125 }
 0x26b   :  { %v5156_v43 = vld [vmem:[#allocation15 + $0xa0] sm:$0xf0]  ;;  %v7128_v37 = vpop.eup %7127  ;;  %v1197_v26 = vmul.f32 %v7742_v18, %v7733_v28  ;;  %vm1203_vm2 = vweird.f32 %v7742_v18 }
 0x26c   :  { %v6793_v45 = vld [vmem:[#allocation15 + $0x284] sm:$0xf]  ;;  %v5159_v53 = vor.u32 %v6729_v44, %v5156_v43  ;;  %2938 = vmatpush.bf16.msra.mxu2 %v5959_v51  ;;  %v1187_v17 = vmul.f32 %v7128_v37, %v7735_v7  ;;  %v1170_v44 = vsub.f32 1.5, %v7739_v47  ;;  %v1181_v43 = vmul.f32 %v7721_v32, %v1180_v50  ;;  %vm1204_vm8 = vmor %vm1202_vm5, %vm1203_vm2  ;;  %v5322_v47 = vld [vmem:[#allocation15 + $0x1c8] sm:$0xf] }
 0x26d   :  { %v5412_v11 = vld [vmem:[#allocation15 + $0x2a0] sm:$0xf0]  ;;  %v1198_v23 = vmul.f32 %v7742_v18, %v1197_v26  ;;  %vm1193_vm3 = vweird.f32 %v7128_v37  ;;  %v1033_v26 = vpop.f32.mrf.mxu0 }
 0x26e   :  { %v6857_v57 = vld [vmem:[#allocation15 + $0x484] sm:$0xf]  ;;  %v5415_v58 = vor.u32 %v6793_v45, %v5412_v11  ;;  %2897 = vmatpush.bf16.msrb.mxu3 %v5159_v53  ;;  %v1188_v45 = vmul.f32 %v7128_v37, %v1187_v17  ;;  %v1185_v52 = vsel %vm7756_vm1, %v7721_v32, %v1181_v43  ;;  %vm1194_vm9 = vmor %vm1192_vm6, %vm1193_vm3 }
 0x26f   :  { %v5668_v60 = vld [vmem:[#allocation15 + $0x4a0] sm:$0xf0]  ;;  %v1199_v53 = vmul.f32 0.5, %v1198_v23  ;;  %v1210_v32 = vrot.slane %v1185_v52, 7 }
 0x270   :  { %v6921_v63 = vld [vmem:[#allocation15 + $0x684] sm:$0xf]  ;;  %v5671_v0 = vor.u32 %v6857_v57, %v5668_v60  ;;  %2911 = vmatpush.bf16.msra.mxu0 %v5415_v58  ;;  %v1189_v57 = vmul.f32 0.5, %v1188_v45  ;;  %v1171_v60 = vmul.f32 %v7723_v40, %v1170_v44 }
 0x271   :  { %v5924_v61 = vld [vmem:[#allocation15 + $0x6a0] sm:$0xf0]  ;;  %v1200_v50 = vsub.f32 1.5, %v1199_v53 }
 0x272   :  { %v5927_v1 = vor.u32 %v6921_v63, %v5924_v61  ;;  %v6721_v2 = vld [vmem:[#allocation15 + $0x44] sm:$0xf]  ;;  %2925 = vmatpush.bf16.msra.mxu1 %v5671_v0  ;;  %v1190_v63 = vsub.f32 1.5, %v1189_v57  ;;  %v1175_v28 = vsel %vm7767_vm4, %v7723_v40, %v1171_v60  ;;  %v1065_v40 = vld [vmem:[#allocation13] sm:$0xf] }
 0x273   :  { %v5124_v5 = vld [vmem:[#allocation15 + $0x60] sm:$0xf0]  ;;  %v1201_v61 = vmul.f32 %v7742_v18, %v1200_v50  ;;  %v5578_v50 = vld [vmem:[#allocation15 + $0x3c8] sm:$0xf] }
 0x274   :  { %v6785_v6 = vld [vmem:[#allocation15 + $0x244] sm:$0xf]  ;;  %v5127_v10 = vor.u32 %v6721_v2, %v5124_v5  ;;  %2939 = vmatpush.bf16.msra.mxu2 %v5927_v1  ;;  %v1191_v0 = vmul.f32 %v7128_v37, %v1190_v63  ;;  %v964_v1 = vadd.f32 %v7665_v20, %v624_v49  ;;  %v1019_v5 = vpop.f32.mrf.mxu3  ;;  %v1064_v49 = vld [vmem:[%s8301_s9] sm:$0xf]  ;;  %v5834_v60 = vld [vmem:[#allocation15 + $0x5c8] sm:$0xf] }
 0x275   :  { %v5380_v12 = vld [vmem:[#allocation15 + $0x260] sm:$0xf0]  ;;  %v1205_v2 = vsel %vm1204_vm8, %v7742_v18, %v1201_v61  ;;  %v1020_v20 = vadd.f32 %v1019_v5, %v626_v36 }
 0x276   :  { %v6849_v13 = vld [vmem:[#allocation15 + $0x444] sm:$0xf]  ;;  %v5383_v21 = vor.u32 %v6785_v6, %v5380_v12  ;;  %2898 = vmatpush.bf16.msrb.mxu3 %v5127_v10  ;;  %v1195_v6 = vsel %vm1194_vm9, %v7128_v37, %v1191_v0  ;;  %v1047_v10 = vpop.f32.mrf.mxu1  ;;  %v1212_v7 = vrot.slane %v1205_v2, 5  ;;  %v978_v18 = vadd.f32 %v7663_v19, %v964_v1  ;;  %v6902_v2 = vld [vmem:[#allocation15 + $0x5e4] sm:$0xf0] }
 0x277   :  { %v5636_v16 = vld [vmem:[#allocation15 + $0x460] sm:$0xf0]  ;;  %v1211_v12 = vrot.slane %v1195_v6, 6  ;;  %v1241_v19 = vperm.slane %v1065_v40, 3 }
 0x278   :  { %v6913_v22 = vld [vmem:[#allocation15 + $0x644] sm:$0xf]  ;;  %v5639_v27 = vor.u32 %v6849_v13, %v5636_v16  ;;  %2912 = vmatpush.bf16.msra.mxu0 %v5383_v21  ;;  %v992_v13 = vadd.f32 %v7657_v56, %v625_v48  ;;  %v1061_v16 = vpop.f32.mrf.mxu2  ;;  %v1213_v21 = vsel %vm522_vm7, %v1175_v28, %v1210_v32  ;;  %v1110_v56 = vsub.f32 %v978_v18, %v7675_v62  ;;  %v6766_v18 = vld [vmem:[#allocation15 + $0x1a4] sm:$0xf0] }
 0x279   :  { %v5892_v55 = vld [vmem:[#allocation15 + $0x660] sm:$0xf0] }
 0x27a   :  { %v6713_v24 = vld [vmem:[#allocation15 + $0x4] sm:$0xf]  ;;  %v5895_v33 = vor.u32 %v6913_v22, %v5892_v55  ;;  %2926 = vmatpush.bf16.msra.mxu1 %v5639_v27  ;;  %v1215_v22 = vsel %vm1214_vm10, %v1211_v12, %v1212_v7  ;;  %v1048_v55 = vadd.f32 %v1047_v10, %v627_v35  ;;  %v1238_v27 = vperm.slane %v1065_v40, 0  ;;  %v6090_v12 = vld [vmem:[#allocation15 + $0x7c8] sm:$0xf] }
 0x27b   :  { %v5092_v39 = vld [vmem:[#allocation15 + $0x20] sm:$0xf0]  ;;  %v1217_v48 = vsel %vm1216_vm11, %v1213_v21, %v1215_v22  ;;  %v6966_v7 = vld [vmem:[#allocation15 + $0x7e4] sm:$0xf0] }
 0x27c   :  { %v6777_v29 = vld [vmem:[#allocation15 + $0x204] sm:$0xf]  ;;  %v5095_v38 = vor.u32 %v6713_v24, %v5092_v39  ;;  %2940 = vmatpush.bf16.msra.mxu2 %v5895_v33  ;;  %v1006_v24 = vadd.f32 %v7667_v25, %v992_v13  ;;  %v1219_v37 = vmul.f32 %v1217_v48, %v1064_v49  ;;  %v1062_v36 = vadd.f32 %v1061_v16, %v1048_v55  ;;  %v5290_v16 = vld [vmem:[#allocation15 + $0x188] sm:$0xf] }
 0x27d   :  { %v5348_v30 = vld [vmem:[#allocation15 + $0x220] sm:$0xf0]  ;;  %v1239_v39 = vperm.slane %v1065_v40, 1  ;;  %v5835_v55 = vor.u32 %v6902_v2, %v5834_v60  ;;  %v5546_v48 = vld [vmem:[#allocation15 + $0x388] sm:$0xf] }
 0x27e   :  { %v6841_v34 = vld [vmem:[#allocation15 + $0x404] sm:$0xf]  ;;  %v5351_v51 = vor.u32 %v6777_v29, %v5348_v30  ;;  %2899 = vmatpush.bf16.msrb.mxu3 %v5095_v38  ;;  %v1034_v29 = vadd.f32 %v1033_v26, %v1020_v20  ;;  %v1221_v30 = vperm.slane %v1219_v37, 0  ;;  %v1222_v17 = vperm.slane %v1219_v37, 1  ;;  %v6894_v26 = vld [vmem:[#allocation15 + $0x5a4] sm:$0xf0] }
 0x27f   :  { %v5604_v4 = vld [vmem:[#allocation15 + $0x420] sm:$0xf0]  ;;  %v1224_v33 = vperm.slane %v1219_v37, 3  ;;  %v1111_v46 = vsub.f32 %v1006_v24, %v7671_v54  ;;  %v1113_v62 = vsub.f32 %v1062_v36, %v7699_v31  ;;  %v6806_v60 = vld [vmem:[#allocation15 + $0x2e4] sm:$0xf0] }
 0x280   :  { %v6905_v8 = vld [vmem:[#allocation15 + $0x604] sm:$0xf]  ;;  %v5607_v11 = vor.u32 %v6841_v34, %v5604_v4  ;;  %2913 = vmatpush.bf16.msra.mxu0 %v5351_v51  ;;  %v1223_v34 = vperm.slane %v1219_v37, 2  ;;  %v1112_v35 = vsub.f32 %v1034_v29, %v7701_v3  ;;  %v1240_v4 = vperm.slane %v1065_v40, 2  ;;  %v5802_v37 = vld [vmem:[#allocation15 + $0x588] sm:$0xf] }
 0x281   :  { %v5860_v42 = vld [vmem:[#allocation15 + $0x620] sm:$0xf0]  ;;  %v1229_v25 = vmul.f32 %v1221_v30, %v7687_v14  ;;  %v1230_v23 = vmul.f32 %v1222_v17, %v7681_v9  ;;  %v1232_v38 = vmul.f32 %v1224_v33, %v7705_v41  ;;  %v1236_v45 = vmul.f32 %v1224_v33, %v1113_v62  ;;  %v6774_v14 = vld [vmem:[#allocation15 + $0x1e4] sm:$0xf0] }
 0x282   :  { %v5863_v58 = vor.u32 %v6905_v8, %v5860_v42  ;;  %2927 = vmatpush.bf16.msra.mxu1 %v5607_v11  ;;  %v1233_v8 = vmul.f32 %v1221_v30, %v1110_v56  ;;  %v1234_v42 = vmul.f32 %v1222_v17, %v1111_v46  ;;  %v1231_v44 = vmul.f32 %v1223_v34, %v7709_v15  ;;  %v6838_v9 = vld [vmem:[#allocation15 + $0x3e4] sm:$0xf0] }
 0x283   :  { %v1235_v43 = vmul.f32 %v1223_v34, %v1112_v35  ;;  %v1246_v51 = vadd.f32 %v1238_v27, %v1229_v25  ;;  %v1247_v53 = vadd.f32 %v1239_v39, %v1230_v23  ;;  %v1249_v54 = vadd.f32 %v1241_v19, %v1232_v38  ;;  %v6830_v56 = vld [vmem:[#allocation15 + $0x3a4] sm:$0xf0] }
 0x284   :  { %2941 = vmatpush.bf16.msra.mxu2 %v5863_v58  ;;  %v1250_v11 = vadd.f32 %v1238_v27, %v1233_v8  ;;  %v1251_v3 = vadd.f32 %v1239_v39, %v1234_v42  ;;  %v1248_v57 = vadd.f32 %v1240_v4, %v1231_v44  ;;  %v1253_v31 = vadd.f32 %v1241_v19, %v1236_v45  ;;  %v6058_v19 = vld [vmem:[#allocation15 + $0x788] sm:$0xf] }
 0x285   :  { %v1252_v58 = vadd.f32 %v1240_v4, %v1235_v43  ;;  %vm1254_vm12 = vcmp.gt.f32.partialorder %v1246_v51, 0.0  ;;  %vm1255_vm13 = vcmp.gt.f32.partialorder %v1247_v53, 0.0  ;;  %vm1257_vm14 = vcmp.gt.f32.partialorder %v1249_v54, 0.0  ;;  %v6958_v17 = vld [vmem:[#allocation15 + $0x7a4] sm:$0xf0] }
 0x286   :  { %vm1258_vm15 = vcmp.gt.f32.partialorder %v1250_v11, 0.0  ;;  %vm1259_vm0 = vcmp.gt.f32.partialorder %v1251_v3, 0.0  ;;  %v1262_v41 = vmul.f32 0.2, %v1246_v51  ;;  %v1263_v15 = vmul.f32 0.2, %v1247_v53 }
 0x287   :  { %vm1256_vm1 = vcmp.gt.f32.partialorder %v1248_v57, 0.0  ;;  %v1265_v52 = vmul.f32 0.2, %v1249_v54  ;;  %v1266_v63 = vmul.f32 0.2, %v1250_v11  ;;  %v5323_v61 = vor.u32 %v6774_v14, %v5322_v47 }
 0x288   :  { %v1267_v59 = vmul.f32 0.2, %v1251_v3  ;;  %v1270_v0 = vsel %vm1254_vm12, %v1246_v51, %v1262_v41  ;;  %v1271_v32 = vsel %vm1255_vm13, %v1247_v53, %v1263_v15  ;;  %vm1260_vm2 = vcmp.gt.f32.partialorder %v1252_v58, 0.0  ;;  %v5258_v33 = vld [vmem:[#allocation15 + $0x148] sm:$0xf] }
 0x289   :  { %v1264_v1 = vmul.f32 0.2, %v1248_v57  ;;  %v1274_v5 = vsel %vm1258_vm15, %v1250_v11, %v1266_v63  ;;  %v1268_v28 = vmul.f32 0.2, %v1252_v58  ;;  %v5579_v10 = vor.u32 %v6838_v9, %v5578_v50  ;;  %v6758_v34 = vld [vmem:[#allocation15 + $0x164] sm:$0xf0] }
 0x28a   :  { %v1275_v6 = vsel %vm1259_vm0, %v1251_v3, %v1267_v59  ;;  %v7805_v13 = vpack.c.bf16 %v1274_v5, %v1270_v0  ;;  %vm1261_vm3 = vcmp.gt.f32.partialorder %v1253_v31, 0.0  ;;  %v1273_v40 = vsel %vm1257_vm14, %v1249_v54, %v1265_v52  ;;  %v5514_v35 = vld [vmem:[#allocation15 + $0x348] sm:$0xf] }
 0x28b   :  { %v7807_v49 = vpack.c.bf16 %v1275_v6, %v1271_v32  ;;  %v1272_v20 = vsel %vm1256_vm1, %v1248_v57, %v1264_v1  ;;  %v1276_v21 = vsel %vm1260_vm2, %v1252_v58, %v1268_v28  ;;  %v1269_v22 = vmul.f32 0.2, %v1253_v31  ;;  %v6822_v4 = vld [vmem:[#allocation15 + $0x364] sm:$0xf0] }
 0x28c   :  { %v7812_v24 = vpack.c.bf16 %v1276_v21, %v1272_v20  ;;  %2844 = vmatmul.bf16.vlgmr.msra.gmra.mxu3 %v7805_v13  ;;  %v6091_v27 = vor.u32 %v6966_v7, %v6090_v12  ;;  %v5291_v39 = vor.u32 %v6766_v18, %v5290_v16  ;;  %v5547_v30 = vor.u32 %v6830_v56, %v5546_v48  ;;  %v5770_v62 = vld [vmem:[#allocation15 + $0x548] sm:$0xf] }
 0x28d   :  { %2858 = vmatmul.bf16.vlgmr.msrb.gmra.mxu0 %v7807_v49  ;;  %v1277_v36 = vsel %vm1261_vm3, %v1253_v31, %v1269_v22  ;;  %2948 = vmatpush.bf16.msra.mxu3 %v5323_v61  ;;  %v5803_v46 = vor.u32 %v6894_v26, %v5802_v37  ;;  %v6886_v25 = vld [vmem:[#allocation15 + $0x564] sm:$0xf0]  ;;  %v6059_v23 = vor.u32 %v6958_v17, %v6058_v19 }
 0x28e   :  { %2962 = vmatpush.bf16.msrb.mxu0 %v5579_v10  ;;  %v7816_v29 = vpack.c.bf16 %v1277_v36, %v1273_v40  ;;  %2872 = vmatmul.bf16.vlgmr.msrb.gmra.mxu1 %v7812_v24  ;;  %v5259_v38 = vor.u32 %v6758_v34, %v5258_v33  ;;  %v6026_v8 = vld [vmem:[#allocation15 + $0x748] sm:$0xf]  ;;  %v5515_v42 = vor.u32 %v6822_v4, %v5514_v35 }
 0x28f   :  { %2976 = vmatpush.bf16.msrb.mxu1 %v5835_v55  ;;  %v6950_v44 = vld [vmem:[#allocation15 + $0x764] sm:$0xf0]  ;;  %v5771_v51 = vor.u32 %v6886_v25, %v5770_v62  ;;  %v6770_v25 = vld [vmem:[#allocation15 + $0x1cc] sm:$0xf] }
 0x290   :  { %2886 = vmatmul.bf16.vlgmr.msrb.gmra.mxu2 %v7816_v29  ;;  %v5226_v43 = vld [vmem:[#allocation15 + $0x108] sm:$0xf]  ;;  %v6027_v57 = vor.u32 %v6950_v44, %v6026_v8  ;;  %v6834_v8 = vld [vmem:[#allocation15 + $0x3cc] sm:$0xf] }
 0x291   :  { %2990 = vmatpush.bf16.msrb.mxu2 %v6091_v27  ;;  %2949 = vmatpush.bf16.msra.mxu3 %v5291_v39  ;;  %v6750_v45 = vld [vmem:[#allocation15 + $0x124] sm:$0xf0] }
 0x292   :  { %2963 = vmatpush.bf16.msrb.mxu0 %v5547_v30  ;;  %v5482_v53 = vld [vmem:[#allocation15 + $0x308] sm:$0xf]  ;;  %v5227_v58 = vor.u32 %v6750_v45, %v5226_v43  ;;  %v6898_v45 = vld [vmem:[#allocation15 + $0x5cc] sm:$0xf] }
 0x293   :  { %2977 = vmatpush.bf16.msrb.mxu1 %v5803_v46  ;;  %v6814_v54 = vld [vmem:[#allocation15 + $0x324] sm:$0xf0] }
 0x294   :  { %v5738_v11 = vld [vmem:[#allocation15 + $0x508] sm:$0xf]  ;;  %v5483_v47 = vor.u32 %v6814_v54, %v5482_v53 }
 0x295   :  { %v6878_v3 = vld [vmem:[#allocation15 + $0x524] sm:$0xf0]  ;;  %2991 = vmatpush.bf16.msrb.mxu2 %v6059_v23  ;;  %2950 = vmatpush.bf16.msra.mxu3 %v5259_v38  ;;  %v5324_v23 = vld [vmem:[#allocation15 + $0x1e8] sm:$0xf0] }
 0x296   :  { %v5994_v31 = vld [vmem:[#allocation15 + $0x708] sm:$0xf]  ;;  %2964 = vmatpush.bf16.msrb.mxu0 %v5515_v42  ;;  %v5739_v41 = vor.u32 %v6878_v3, %v5738_v11  ;;  %v5580_v42 = vld [vmem:[#allocation15 + $0x3e8] sm:$0xf0]  ;;  %v5327_v3 = vor.u32 %v6770_v25, %v5324_v23 }
 0x297   :  { %v6942_v14 = vld [vmem:[#allocation15 + $0x724] sm:$0xf0]  ;;  %2978 = vmatpush.bf16.msrb.mxu1 %v5771_v51  ;;  %v5836_v51 = vld [vmem:[#allocation15 + $0x5e8] sm:$0xf0] }
 0x298   :  { %v5194_v50 = vld [vmem:[#allocation15 + $0xc8] sm:$0xf]  ;;  %v5995_v59 = vor.u32 %v6942_v14, %v5994_v31  ;;  %v6962_v31 = vld [vmem:[#allocation15 + $0x7cc] sm:$0xf] }
 0x299   :  { %v6742_v9 = vld [vmem:[#allocation15 + $0xe4] sm:$0xf0]  ;;  %2992 = vmatpush.bf16.msrb.mxu2 %v6027_v57  ;;  %2951 = vmatpush.bf16.msra.mxu3 %v5227_v58  ;;  %v5583_v58 = vor.u32 %v6834_v8, %v5580_v42  ;;  %v6762_v14 = vld [vmem:[#allocation15 + $0x18c] sm:$0xf] }
 0x29a   :  { %v5450_v15 = vld [vmem:[#allocation15 + $0x2c8] sm:$0xf]  ;;  %v5195_v61 = vor.u32 %v6742_v9, %v5194_v50  ;;  %2965 = vmatpush.bf16.msrb.mxu0 %v5483_v47  ;;  %v6092_v47 = vld [vmem:[#allocation15 + $0x7e8] sm:$0xf0]  ;;  %v5839_v50 = vor.u32 %v6898_v45, %v5836_v51 }
 0x29b   :  { %v5706_v52 = vld [vmem:[#allocation15 + $0x4c8] sm:$0xf]  ;;  %v5451_v32 = vor.u32 %v6806_v60, %v5450_v15  ;;  %2979 = vmatpush.bf16.msrb.mxu1 %v5739_v41  ;;  %v5292_v9 = vld [vmem:[#allocation15 + $0x1a8] sm:$0xf0] }
 0x29c   :  { %v6870_v63 = vld [vmem:[#allocation15 + $0x4e4] sm:$0xf0]  ;;  %2900 = vmatmul.bf16.vlgmr.msrb.gmra.mxu3 %v7805_v13  ;;  %v6826_v41 = vld [vmem:[#allocation15 + $0x38c] sm:$0xf] }
 0x29d   :  { %v5962_v0 = vld [vmem:[#allocation15 + $0x6c8] sm:$0xf]  ;;  %v5707_v6 = vor.u32 %v6870_v63, %v5706_v52  ;;  %2914 = vmatmul.bf16.vlgmr.msra.gmra.mxu0 %v7807_v49  ;;  %2993 = vmatpush.bf16.msrb.mxu2 %v5995_v59  ;;  %v5548_v15 = vld [vmem:[#allocation15 + $0x3a8] sm:$0xf0]  ;;  %v6095_v59 = vor.u32 %v6962_v31, %v6092_v47 }
 0x29e   :  { %v6934_v1 = vld [vmem:[#allocation15 + $0x6e4] sm:$0xf0]  ;;  %2952 = vmatpush.bf16.msra.mxu3 %v5195_v61  ;;  %2928 = vmatmul.bf16.vlgmr.msra.gmra.mxu1 %v7812_v24  ;;  %v6890_v52 = vld [vmem:[#allocation15 + $0x58c] sm:$0xf]  ;;  %v5295_v61 = vor.u32 %v6762_v14, %v5292_v9 }
 0x29f   :  { %v5162_v2 = vld [vmem:[#allocation15 + $0x88] sm:$0xf]  ;;  %v5963_v20 = vor.u32 %v6934_v1, %v5962_v0  ;;  %2966 = vmatpush.bf16.msrb.mxu0 %v5451_v32  ;;  %2980 = vmatpush.bf16.msrb.mxu1 %v5707_v6  ;;  %v5804_v63 = vld [vmem:[#allocation15 + $0x5a8] sm:$0xf0]  ;;  %v5551_v0 = vor.u32 %v6826_v41, %v5548_v15 }
 0x2a0   :  { %v6734_v5 = vld [vmem:[#allocation15 + $0xa4] sm:$0xf0]  ;;  %2942 = vmatmul.bf16.vlgmr.msra.gmra.mxu2 %v7816_v29  ;;  %v6954_v32 = vld [vmem:[#allocation15 + $0x78c] sm:$0xf] }
 0x2a1   :  { %v5418_v28 = vld [vmem:[#allocation15 + $0x288] sm:$0xf]  ;;  %v5163_v16 = vor.u32 %v6734_v5, %v5162_v2  ;;  %2994 = vmatpush.bf16.msrb.mxu2 %v5963_v20  ;;  %v6060_v1 = vld [vmem:[#allocation15 + $0x7a8] sm:$0xf0]  ;;  %v5807_v5 = vor.u32 %v6890_v52, %v5804_v63 }
 0x2a2   :  { %v6798_v10 = vld [vmem:[#allocation15 + $0x2a4] sm:$0xf0]  ;;  %v6754_v2 = vld [vmem:[#allocation15 + $0x14c] sm:$0xf]  ;;  %v6063_v20 = vor.u32 %v6954_v32, %v6060_v1 }
 0x2a3   :  { %v5674_v12 = vld [vmem:[#allocation15 + $0x488] sm:$0xf]  ;;  %v5419_v40 = vor.u32 %v6798_v10, %v5418_v28  ;;  %2953 = vmatpush.bf16.msra.mxu3 %v5163_v16  ;;  %v5260_v6 = vld [vmem:[#allocation15 + $0x168] sm:$0xf0] }
 0x2a4   :  { %v6862_v7 = vld [vmem:[#allocation15 + $0x4a4] sm:$0xf0]  ;;  %v6818_v28 = vld [vmem:[#allocation15 + $0x34c] sm:$0xf]  ;;  %v5263_v16 = vor.u32 %v6754_v2, %v5260_v6 }
 0x2a5   :  { %v5930_v18 = vld [vmem:[#allocation15 + $0x688] sm:$0xf]  ;;  %v5675_v48 = vor.u32 %v6862_v7, %v5674_v12  ;;  %2967 = vmatpush.bf16.msrb.mxu0 %v5419_v40  ;;  %v5516_v10 = vld [vmem:[#allocation15 + $0x368] sm:$0xf0] }
 0x2a6   :  { %v6926_v21 = vld [vmem:[#allocation15 + $0x6a4] sm:$0xf0]  ;;  %v6882_v12 = vld [vmem:[#allocation15 + $0x54c] sm:$0xf] }
 0x2a7   :  { %v5130_v22 = vld [vmem:[#allocation15 + $0x48] sm:$0xf]  ;;  %v5931_v27 = vor.u32 %v6926_v21, %v5930_v18  ;;  %2981 = vmatpush.bf16.msrb.mxu1 %v5675_v48  ;;  %v5772_v7 = vld [vmem:[#allocation15 + $0x568] sm:$0xf0]  ;;  %v5519_v18 = vor.u32 %v6818_v28, %v5516_v10 }
 0x2a8   :  { %v6726_v55 = vld [vmem:[#allocation15 + $0x64] sm:$0xf0]  ;;  %v6946_v40 = vld [vmem:[#allocation15 + $0x74c] sm:$0xf] }
 0x2a9   :  { %v5386_v56 = vld [vmem:[#allocation15 + $0x248] sm:$0xf]  ;;  %v5131_v39 = vor.u32 %v6726_v55, %v5130_v22  ;;  %2995 = vmatpush.bf16.msrb.mxu2 %v5931_v27  ;;  %v6028_v21 = vld [vmem:[#allocation15 + $0x768] sm:$0xf0]  ;;  %v5775_v55 = vor.u32 %v6882_v12, %v5772_v7 }
 0x2aa   :  { %v6790_v37 = vld [vmem:[#allocation15 + $0x264] sm:$0xf0]  ;;  %v6746_v22 = vld [vmem:[#allocation15 + $0x10c] sm:$0xf]  ;;  %v6031_v27 = vor.u32 %v6946_v40, %v6028_v21  ;;  %v6839_v21 = vld [vmem:[#allocation15 + $0x3ec] sm:$0xf0] }
 0x2ab   :  { %v5642_v26 = vld [vmem:[#allocation15 + $0x448] sm:$0xf]  ;;  %v5387_v33 = vor.u32 %v6790_v37, %v5386_v56  ;;  %2954 = vmatpush.bf16.msra.mxu3 %v5131_v39  ;;  %v5228_v48 = vld [vmem:[#allocation15 + $0x128] sm:$0xf0] }
 0x2ac   :  { %v6854_v36 = vld [vmem:[#allocation15 + $0x464] sm:$0xf0]  ;;  %v6810_v56 = vld [vmem:[#allocation15 + $0x30c] sm:$0xf]  ;;  %v5231_v39 = vor.u32 %v6746_v22, %v5228_v48  ;;  %v5842_v22 = vld [vmem:[#allocation15 + $0x5d0] sm:$0xf] }
 0x2ad   :  { %v5898_v19 = vld [vmem:[#allocation15 + $0x648] sm:$0xf]  ;;  %v5643_v4 = vor.u32 %v6854_v36, %v5642_v26  ;;  %2968 = vmatpush.bf16.msrb.mxu0 %v5387_v33  ;;  %v5484_v37 = vld [vmem:[#allocation15 + $0x328] sm:$0xf0] }
 0x2ae   :  { %v6918_v30 = vld [vmem:[#allocation15 + $0x664] sm:$0xf0]  ;;  %v6874_v26 = vld [vmem:[#allocation15 + $0x50c] sm:$0xf] }
 0x2af   :  { %v5098_v17 = vld [vmem:[#allocation15 + $0x8] sm:$0xf]  ;;  %v5899_v44 = vor.u32 %v6918_v30, %v5898_v19  ;;  %2982 = vmatpush.bf16.msrb.mxu1 %v5643_v4  ;;  %v5740_v36 = vld [vmem:[#allocation15 + $0x528] sm:$0xf0]  ;;  %v5487_v19 = vor.u32 %v6810_v56, %v5484_v37 }
 0x2b0   :  { %v6718_v34 = vld [vmem:[#allocation15 + $0x24] sm:$0xf0]  ;;  %v6938_v30 = vld [vmem:[#allocation15 + $0x70c] sm:$0xf] }
 0x2b1   :  { %v5354_v46 = vld [vmem:[#allocation15 + $0x208] sm:$0xf]  ;;  %v5099_v43 = vor.u32 %v6718_v34, %v5098_v17  ;;  %2996 = vmatpush.bf16.msrb.mxu2 %v5899_v44  ;;  %v5996_v17 = vld [vmem:[#allocation15 + $0x728] sm:$0xf0]  ;;  %v5743_v34 = vor.u32 %v6874_v26, %v5740_v36 }
 0x2b2   :  { %v6782_v35 = vld [vmem:[#allocation15 + $0x224] sm:$0xf0]  ;;  %v6738_v33 = vld [vmem:[#allocation15 + $0xcc] sm:$0xf]  ;;  %v5999_v23 = vor.u32 %v6938_v30, %v5996_v17 }
 0x2b3   :  { %v5610_v62 = vld [vmem:[#allocation15 + $0x408] sm:$0xf]  ;;  %v5355_v53 = vor.u32 %v6782_v35, %v5354_v46  ;;  %2955 = vmatpush.bf16.msra.mxu3 %v5099_v43  ;;  %v5196_v46 = vld [vmem:[#allocation15 + $0xe8] sm:$0xf0] }
 0x2b4   :  { %v6846_v38 = vld [vmem:[#allocation15 + $0x424] sm:$0xf0]  ;;  %v6802_v35 = vld [vmem:[#allocation15 + $0x2cc] sm:$0xf] }
 0x2b5   :  { %v5866_v54 = vld [vmem:[#allocation15 + $0x608] sm:$0xf]  ;;  %v5611_v57 = vor.u32 %v6846_v38, %v5610_v62  ;;  %2969 = vmatpush.bf16.msrb.mxu0 %v5355_v53  ;;  %v5452_v4 = vld [vmem:[#allocation15 + $0x2e8] sm:$0xf0]  ;;  %v5199_v38 = vor.u32 %v6738_v33, %v5196_v46  ;;  %v5298_v33 = vld [vmem:[#allocation15 + $0x190] sm:$0xf] }
 0x2b6   :  { %v6910_v11 = vld [vmem:[#allocation15 + $0x624] sm:$0xf0]  ;;  %2956 = vmatmul.bf16.vlgmr.msra.gmra.mxu3 %v7805_v13  ;;  %v6866_v62 = vld [vmem:[#allocation15 + $0x4cc] sm:$0xf]  ;;  %v5455_v8 = vor.u32 %v6802_v35, %v5452_v4  ;;  %v5554_v35 = vld [vmem:[#allocation15 + $0x390] sm:$0xf] }
 0x2b7   :  { %v5867_v60 = vor.u32 %v6910_v11, %v5866_v54  ;;  %3004 = vmatpush.bf16.msrb.mxu3 %v5327_v3  ;;  %2983 = vmatpush.bf16.msrb.mxu1 %v5611_v57  ;;  %v5708_v25 = vld [vmem:[#allocation15 + $0x4e8] sm:$0xf0]  ;;  %v6831_v4 = vld [vmem:[#allocation15 + $0x3ac] sm:$0xf0] }
 0x2b8   :  { %2970 = vmatmul.bf16.vlgmr.msrb.gmra.mxu0 %v7807_v49  ;;  %v6930_v42 = vld [vmem:[#allocation15 + $0x6cc] sm:$0xf]  ;;  %v5711_v45 = vor.u32 %v6866_v62, %v5708_v25  ;;  %v5810_v25 = vld [vmem:[#allocation15 + $0x590] sm:$0xf] }
 0x2b9   :  { %3018 = vmatpush.bf16.msra.mxu0 %v5583_v58  ;;  %2997 = vmatpush.bf16.msrb.mxu2 %v5867_v60  ;;  %v5964_v44 = vld [vmem:[#allocation15 + $0x6e8] sm:$0xf0] }
 0x2ba   :  { %2984 = vmatmul.bf16.vlgmr.msrb.gmra.mxu1 %v7812_v24  ;;  %v6730_v43 = vld [vmem:[#allocation15 + $0x8c] sm:$0xf]  ;;  %v5967_v57 = vor.u32 %v6930_v42, %v5964_v44  ;;  %v6959_v42 = vld [vmem:[#allocation15 + $0x7ac] sm:$0xf0]  ;;  %v5555_v44 = vor.u32 %v6831_v4, %v5554_v35 }
 0x2bb   :  { %3032 = vmatpush.bf16.msra.mxu1 %v5839_v50  ;;  %3005 = vmatpush.bf16.msrb.mxu3 %v5295_v61  ;;  %v5164_v51 = vld [vmem:[#allocation15 + $0xa8] sm:$0xf0]  ;;  %v5394_v35 = vld [vmem:[#allocation15 + $0x250] sm:$0xf] }
 0x2bc   :  { %2998 = vmatmul.bf16.vlgmr.msrb.gmra.mxu2 %v7816_v29  ;;  %v6794_v53 = vld [vmem:[#allocation15 + $0x28c] sm:$0xf]  ;;  %v5167_v58 = vor.u32 %v6730_v43, %v5164_v51  ;;  %v5266_v43 = vld [vmem:[#allocation15 + $0x150] sm:$0xf] }
 0x2bd   :  { %3046 = vmatpush.bf16.msra.mxu2 %v6095_v59  ;;  %3019 = vmatpush.bf16.msra.mxu0 %v5551_v0  ;;  %v5420_v54 = vld [vmem:[#allocation15 + $0x2a8] sm:$0xf0]  ;;  %v6791_v4 = vld [vmem:[#allocation15 + $0x26c] sm:$0xf0] }
 0x2be   :  { %v6858_v11 = vld [vmem:[#allocation15 + $0x48c] sm:$0xf]  ;;  %v5423_v31 = vor.u32 %v6794_v53, %v5420_v54  ;;  %v5522_v53 = vld [vmem:[#allocation15 + $0x350] sm:$0xf] }
 0x2bf   :  { %3033 = vmatpush.bf16.msra.mxu1 %v5807_v5  ;;  %3006 = vmatpush.bf16.msrb.mxu3 %v5263_v16  ;;  %v5676_v3 = vld [vmem:[#allocation15 + $0x4a8] sm:$0xf0]  ;;  %v6775_v16 = vld [vmem:[#allocation15 + $0x1ec] sm:$0xf0] }
 0x2c0   :  { %v6922_v47 = vld [vmem:[#allocation15 + $0x68c] sm:$0xf]  ;;  %v5679_v9 = vor.u32 %v6858_v11, %v5676_v3  ;;  %v6823_v54 = vld [vmem:[#allocation15 + $0x36c] sm:$0xf0] }
 0x2c1   :  { %3047 = vmatpush.bf16.msra.mxu2 %v6063_v20  ;;  %3020 = vmatpush.bf16.msra.mxu0 %v5519_v18  ;;  %v5932_v14 = vld [vmem:[#allocation15 + $0x6a8] sm:$0xf0]  ;;  %v5330_v20 = vld [vmem:[#allocation15 + $0x1d0] sm:$0xf] }
 0x2c2   :  { %v6722_v50 = vld [vmem:[#allocation15 + $0x4c] sm:$0xf]  ;;  %v5935_v59 = vor.u32 %v6922_v47, %v5932_v14  ;;  %v5586_v18 = vld [vmem:[#allocation15 + $0x3d0] sm:$0xf]  ;;  %v5523_v14 = vor.u32 %v6823_v54, %v5522_v53 }
 0x2c3   :  { %3034 = vmatpush.bf16.msra.mxu1 %v5775_v55  ;;  %3007 = vmatpush.bf16.msrb.mxu3 %v5231_v39  ;;  %v5132_v41 = vld [vmem:[#allocation15 + $0x68] sm:$0xf0]  ;;  %v6903_v55 = vld [vmem:[#allocation15 + $0x5ec] sm:$0xf0]  ;;  %v5587_v30 = vor.u32 %v6839_v21, %v5586_v18 }
 0x2c4   :  { %v6786_v15 = vld [vmem:[#allocation15 + $0x24c] sm:$0xf]  ;;  %v5135_v32 = vor.u32 %v6722_v50, %v5132_v41  ;;  %v6098_v39 = vld [vmem:[#allocation15 + $0x7d0] sm:$0xf]  ;;  %v5843_v17 = vor.u32 %v6903_v55, %v5842_v22 }
 0x2c5   :  { %3048 = vmatpush.bf16.msra.mxu2 %v6031_v27  ;;  %3021 = vmatpush.bf16.msra.mxu0 %v5487_v19  ;;  %v5388_v60 = vld [vmem:[#allocation15 + $0x268] sm:$0xf0]  ;;  %v5331_v27 = vor.u32 %v6775_v16, %v5330_v20  ;;  %v6967_v19 = vld [vmem:[#allocation15 + $0x7ec] sm:$0xf0] }
 0x2c6   :  { %v6850_v52 = vld [vmem:[#allocation15 + $0x44c] sm:$0xf]  ;;  %v5391_v1 = vor.u32 %v6786_v15, %v5388_v60  ;;  %v6099_v62 = vor.u32 %v6967_v19, %v6098_v39  ;;  %v5778_v3 = vld [vmem:[#allocation15 + $0x550] sm:$0xf] }
 0x2c7   :  { %3035 = vmatpush.bf16.msra.mxu1 %v5743_v34  ;;  %3008 = vmatpush.bf16.msrb.mxu3 %v5199_v38  ;;  %v5644_v63 = vld [vmem:[#allocation15 + $0x468] sm:$0xf0]  ;;  %v6767_v34 = vld [vmem:[#allocation15 + $0x1ac] sm:$0xf0] }
 0x2c8   :  { %v6914_v61 = vld [vmem:[#allocation15 + $0x64c] sm:$0xf]  ;;  %v5647_v28 = vor.u32 %v6850_v52, %v5644_v63  ;;  %v5299_v38 = vor.u32 %v6767_v34, %v5298_v33  ;;  %v6951_v47 = vld [vmem:[#allocation15 + $0x76c] sm:$0xf0] }
 0x2c9   :  { %3049 = vmatpush.bf16.msra.mxu2 %v5999_v23  ;;  %3022 = vmatpush.bf16.msra.mxu0 %v5455_v8  ;;  %v5900_v0 = vld [vmem:[#allocation15 + $0x668] sm:$0xf0]  ;;  %v6895_v23 = vld [vmem:[#allocation15 + $0x5ac] sm:$0xf0] }
 0x2ca   :  { %v6714_v2 = vld [vmem:[#allocation15 + $0xc] sm:$0xf]  ;;  %v5903_v40 = vor.u32 %v6914_v61, %v5900_v0  ;;  %v6066_v8 = vld [vmem:[#allocation15 + $0x790] sm:$0xf]  ;;  %v5811_v51 = vor.u32 %v6895_v23, %v5810_v25 }
 0x2cb   :  { %3036 = vmatpush.bf16.msra.mxu1 %v5711_v45  ;;  %3009 = vmatpush.bf16.msrb.mxu3 %v5167_v58  ;;  %v5100_v5 = vld [vmem:[#allocation15 + $0x28] sm:$0xf0]  ;;  %v6759_v45 = vld [vmem:[#allocation15 + $0x16c] sm:$0xf0]  ;;  %v6067_v11 = vor.u32 %v6959_v42, %v6066_v8 }
 0x2cc   :  { %v6778_v6 = vld [vmem:[#allocation15 + $0x20c] sm:$0xf]  ;;  %v5103_v48 = vor.u32 %v6714_v2, %v5100_v5  ;;  %v5267_v58 = vor.u32 %v6759_v45, %v5266_v43  ;;  %v5234_v50 = vld [vmem:[#allocation15 + $0x110] sm:$0xf]  ;;  %v5395_v45 = vor.u32 %v6791_v4, %v5394_v35  ;;  %v6811_v35 = vld [vmem:[#allocation15 + $0x314] sm:$0xf] }
 0x2cd   :  { %3050 = vmatpush.bf16.msra.mxu2 %v5967_v57  ;;  %3023 = vmatpush.bf16.msra.mxu0 %v5423_v31  ;;  %v5356_v10 = vld [vmem:[#allocation15 + $0x228] sm:$0xf0]  ;;  %v6887_v57 = vld [vmem:[#allocation15 + $0x56c] sm:$0xf0] }
 0x2ce   :  { %v6842_v12 = vld [vmem:[#allocation15 + $0x40c] sm:$0xf]  ;;  %v5359_v56 = vor.u32 %v6778_v6, %v5356_v10  ;;  %v6034_v31 = vld [vmem:[#allocation15 + $0x750] sm:$0xf]  ;;  %v5779_v41 = vor.u32 %v6887_v57, %v5778_v3  ;;  %v6771_v57 = vld [vmem:[#allocation15 + $0x1d4] sm:$0xf] }
 0x2cf   :  { %3037 = vmatpush.bf16.msra.mxu1 %v5679_v9  ;;  %v5612_v7 = vld [vmem:[#allocation15 + $0x428] sm:$0xf0]  ;;  %3010 = vmatpush.bf16.msrb.mxu3 %v5135_v32  ;;  %v6751_v9 = vld [vmem:[#allocation15 + $0x12c] sm:$0xf0]  ;;  %v6035_v52 = vor.u32 %v6951_v47, %v6034_v31 }
 0x2d0   :  { %v6906_v37 = vld [vmem:[#allocation15 + $0x60c] sm:$0xf]  ;;  %v5615_v36 = vor.u32 %v6842_v12, %v5612_v7  ;;  %v5490_v15 = vld [vmem:[#allocation15 + $0x310] sm:$0xf]  ;;  %v5235_v61 = vor.u32 %v6751_v9, %v5234_v50  ;;  %v5588_v50 = vld [vmem:[#allocation15 + $0x3f0] sm:$0xf0] }
 0x2d1   :  { %3051 = vmatpush.bf16.msra.mxu2 %v5935_v59  ;;  %3024 = vmatpush.bf16.msra.mxu0 %v5391_v1  ;;  %v5868_v26 = vld [vmem:[#allocation15 + $0x628] sm:$0xf0]  ;;  %v6815_v60 = vld [vmem:[#allocation15 + $0x32c] sm:$0xf0] }
 0x2d2   :  { %v5871_v46 = vor.u32 %v6906_v37, %v5868_v26  ;;  %v5746_v63 = vld [vmem:[#allocation15 + $0x510] sm:$0xf]  ;;  %v5491_v1 = vor.u32 %v6815_v60, %v5490_v15  ;;  %v6899_v15 = vld [vmem:[#allocation15 + $0x5d4] sm:$0xf] }
 0x2d3   :  { %3038 = vmatpush.bf16.msra.mxu1 %v5647_v28  ;;  %3011 = vmatpush.bf16.msrb.mxu3 %v5103_v48  ;;  %v6879_v59 = vld [vmem:[#allocation15 + $0x52c] sm:$0xf0]  ;;  %v5844_v60 = vld [vmem:[#allocation15 + $0x5f0] sm:$0xf0] }
 0x2d4   :  { %v6002_v0 = vld [vmem:[#allocation15 + $0x710] sm:$0xf]  ;;  %v5747_v6 = vor.u32 %v6879_v59, %v5746_v63  ;;  %v6963_v59 = vld [vmem:[#allocation15 + $0x7d4] sm:$0xf] }
 0x2d5   :  { %3052 = vmatpush.bf16.msra.mxu2 %v5903_v40  ;;  %3025 = vmatpush.bf16.msra.mxu0 %v5359_v56  ;;  %v6943_v32 = vld [vmem:[#allocation15 + $0x72c] sm:$0xf0] }
 0x2d6   :  { %3012 = vmatmul.bf16.vlgmr.msrb.gmra.mxu3 %v7805_v13  ;;  %v5202_v2 = vld [vmem:[#allocation15 + $0xd0] sm:$0xf]  ;;  %v6003_v12 = vor.u32 %v6943_v32, %v6002_v0 }
 0x2d7   :  { %3039 = vmatpush.bf16.msra.mxu1 %v5615_v36  ;;  %3060 = vmatpush.bf16.msra.mxu3 %v5331_v27  ;;  %v6743_v5 = vld [vmem:[#allocation15 + $0xec] sm:$0xf0] }
 0x2d8   :  { %3026 = vmatmul.bf16.vlgmr.msra.gmra.mxu0 %v7807_v49  ;;  %v5458_v28 = vld [vmem:[#allocation15 + $0x2d0] sm:$0xf]  ;;  %v5203_v16 = vor.u32 %v6743_v5, %v5202_v2  ;;  %v5847_v2 = vor.u32 %v6899_v15, %v5844_v60  ;;  %v6763_v5 = vld [vmem:[#allocation15 + $0x194] sm:$0xf] }
 0x2d9   :  { %3074 = vmatpush.bf16.msrb.mxu0 %v5587_v30  ;;  %3053 = vmatpush.bf16.msra.mxu2 %v5871_v46  ;;  %v6807_v10 = vld [vmem:[#allocation15 + $0x2ec] sm:$0xf0]  ;;  %v6795_v15 = vld [vmem:[#allocation15 + $0x294] sm:$0xf] }
 0x2da   :  { %3040 = vmatmul.bf16.vlgmr.msra.gmra.mxu1 %v7812_v24  ;;  %v5714_v7 = vld [vmem:[#allocation15 + $0x4d0] sm:$0xf]  ;;  %v5459_v21 = vor.u32 %v6807_v10, %v5458_v28  ;;  %v6827_v28 = vld [vmem:[#allocation15 + $0x394] sm:$0xf] }
 0x2db   :  { %3088 = vmatpush.bf16.msrb.mxu1 %v5843_v17  ;;  %3061 = vmatpush.bf16.msra.mxu3 %v5299_v38  ;;  %v6871_v20 = vld [vmem:[#allocation15 + $0x4ec] sm:$0xf0] }
 0x2dc   :  { %3054 = vmatmul.bf16.vlgmr.msra.gmra.mxu2 %v7816_v29  ;;  %v5970_v18 = vld [vmem:[#allocation15 + $0x6d0] sm:$0xf]  ;;  %v5715_v48 = vor.u32 %v6871_v20, %v5714_v7  ;;  %v6891_v7 = vld [vmem:[#allocation15 + $0x594] sm:$0xf] }
 0x2dd   :  { %3102 = vmatpush.bf16.msrb.mxu2 %v6099_v62  ;;  %3075 = vmatpush.bf16.msrb.mxu0 %v5555_v44  ;;  %v6935_v40 = vld [vmem:[#allocation15 + $0x6ec] sm:$0xf0]  ;;  %v5812_v20 = vld [vmem:[#allocation15 + $0x5b0] sm:$0xf0] }
 0x2de   :  { %v5170_v22 = vld [vmem:[#allocation15 + $0x90] sm:$0xf]  ;;  %v5971_v26 = vor.u32 %v6935_v40, %v5970_v18  ;;  %v6068_v18 = vld [vmem:[#allocation15 + $0x7b0] sm:$0xf0] }
 0x2df   :  { %3089 = vmatpush.bf16.msrb.mxu1 %v5811_v51  ;;  %3062 = vmatpush.bf16.msra.mxu3 %v5267_v58  ;;  %v6735_v55 = vld [vmem:[#allocation15 + $0xac] sm:$0xf0]  ;;  %v5332_v58 = vld [vmem:[#allocation15 + $0x1f0] sm:$0xf0] }
 0x2e0   :  { %v5426_v56 = vld [vmem:[#allocation15 + $0x290] sm:$0xf]  ;;  %v5171_v39 = vor.u32 %v6735_v55, %v5170_v22  ;;  %v5335_v63 = vor.u32 %v6771_v57, %v5332_v58  ;;  %v5815_v22 = vor.u32 %v6891_v7, %v5812_v20  ;;  %v6755_v55 = vld [vmem:[#allocation15 + $0x154] sm:$0xf] }
 0x2e1   :  { %3103 = vmatpush.bf16.msrb.mxu2 %v6067_v11  ;;  %3076 = vmatpush.bf16.msrb.mxu0 %v5523_v14  ;;  %v6799_v37 = vld [vmem:[#allocation15 + $0x2ac] sm:$0xf0]  ;;  %v6835_v14 = vld [vmem:[#allocation15 + $0x3d4] sm:$0xf] }
 0x2e2   :  { %v5682_v36 = vld [vmem:[#allocation15 + $0x490] sm:$0xf]  ;;  %v5427_v17 = vor.u32 %v6799_v37, %v5426_v56  ;;  %v5591_v32 = vor.u32 %v6835_v14, %v5588_v50  ;;  %v6819_v56 = vld [vmem:[#allocation15 + $0x354] sm:$0xf] }
 0x2e3   :  { %3090 = vmatpush.bf16.msrb.mxu1 %v5779_v41  ;;  %3063 = vmatpush.bf16.msra.mxu3 %v5235_v61  ;;  %v6863_v27 = vld [vmem:[#allocation15 + $0x4ac] sm:$0xf0]  ;;  %v6100_v61 = vld [vmem:[#allocation15 + $0x7f0] sm:$0xf0] }
 0x2e4   :  { %v5938_v19 = vld [vmem:[#allocation15 + $0x690] sm:$0xf]  ;;  %v5683_v46 = vor.u32 %v6863_v27, %v5682_v36  ;;  %v6103_v10 = vor.u32 %v6963_v59, %v6100_v61  ;;  %v6883_v36 = vld [vmem:[#allocation15 + $0x554] sm:$0xf] }
 0x2e5   :  { %3104 = vmatpush.bf16.msrb.mxu2 %v6035_v52  ;;  %3077 = vmatpush.bf16.msrb.mxu0 %v5491_v1  ;;  %v6927_v30 = vld [vmem:[#allocation15 + $0x6ac] sm:$0xf0]  ;;  %v5780_v27 = vld [vmem:[#allocation15 + $0x570] sm:$0xf0] }
 0x2e6   :  { %v5138_v33 = vld [vmem:[#allocation15 + $0x50] sm:$0xf]  ;;  %v5939_v62 = vor.u32 %v6927_v30, %v5938_v19  ;;  %v6036_v19 = vld [vmem:[#allocation15 + $0x770] sm:$0xf0] }
 0x2e7   :  { %3091 = vmatpush.bf16.msrb.mxu1 %v5747_v6  ;;  %3064 = vmatpush.bf16.msra.mxu3 %v5203_v16  ;;  %v6727_v34 = vld [vmem:[#allocation15 + $0x6c] sm:$0xf0]  ;;  %v5300_v6 = vld [vmem:[#allocation15 + $0x1b0] sm:$0xf0] }
 0x2e8   :  { %v5650_v25 = vld [vmem:[#allocation15 + $0x450] sm:$0xf]  ;;  %v5139_v8 = vor.u32 %v6727_v34, %v5138_v33  ;;  %v6955_v16 = vld [vmem:[#allocation15 + $0x794] sm:$0xf]  ;;  %v5303_v40 = vor.u32 %v6763_v5, %v5300_v6  ;;  %v5783_v33 = vor.u32 %v6883_v36, %v5780_v27 }
 0x2e9   :  { %3105 = vmatpush.bf16.msrb.mxu2 %v6003_v12  ;;  %3078 = vmatpush.bf16.msrb.mxu0 %v5459_v21  ;;  %v6855_v23 = vld [vmem:[#allocation15 + $0x46c] sm:$0xf0]  ;;  %v5556_v12 = vld [vmem:[#allocation15 + $0x3b0] sm:$0xf0]  ;;  %v6071_v37 = vor.u32 %v6955_v16, %v6068_v18 }
 0x2ea   :  { %v5906_v38 = vld [vmem:[#allocation15 + $0x650] sm:$0xf]  ;;  %v5651_v11 = vor.u32 %v6855_v23, %v5650_v25  ;;  %v5559_v21 = vor.u32 %v6827_v28, %v5556_v12  ;;  %v6747_v34 = vld [vmem:[#allocation15 + $0x114] sm:$0xf] }
 0x2eb   :  { %3092 = vmatpush.bf16.msrb.mxu1 %v5715_v48  ;;  %3065 = vmatpush.bf16.msra.mxu3 %v5171_v39  ;;  %v6919_v42 = vld [vmem:[#allocation15 + $0x66c] sm:$0xf0]  ;;  %v5268_v48 = vld [vmem:[#allocation15 + $0x170] sm:$0xf0] }
 0x2ec   :  { %v5106_v44 = vld [vmem:[#allocation15 + $0x10] sm:$0xf]  ;;  %v5907_v31 = vor.u32 %v6919_v42, %v5906_v38  ;;  %v6947_v39 = vld [vmem:[#allocation15 + $0x754] sm:$0xf]  ;;  %v5271_v30 = vor.u32 %v6755_v55, %v5268_v48 }
 0x2ed   :  { %3106 = vmatpush.bf16.msrb.mxu2 %v5971_v26  ;;  %v6719_v43 = vld [vmem:[#allocation15 + $0x2c] sm:$0xf0]  ;;  %3079 = vmatpush.bf16.msrb.mxu0 %v5427_v17  ;;  %v5524_v26 = vld [vmem:[#allocation15 + $0x370] sm:$0xf0]  ;;  %v6039_v4 = vor.u32 %v6947_v39, %v6036_v19 }
 0x2ee   :  { %v5362_v51 = vld [vmem:[#allocation15 + $0x210] sm:$0xf]  ;;  %v5107_v9 = vor.u32 %v6719_v43, %v5106_v44  ;;  %v5527_v17 = vor.u32 %v6819_v56, %v5524_v26  ;;  %v6875_v25 = vld [vmem:[#allocation15 + $0x514] sm:$0xf] }
 0x2ef   :  { %v6783_v53 = vld [vmem:[#allocation15 + $0x22c] sm:$0xf0]  ;;  %3093 = vmatpush.bf16.msrb.mxu1 %v5683_v46  ;;  %3066 = vmatpush.bf16.msra.mxu3 %v5139_v8  ;;  %v5236_v46 = vld [vmem:[#allocation15 + $0x130] sm:$0xf0] }
 0x2f0   :  { %v5618_v54 = vld [vmem:[#allocation15 + $0x410] sm:$0xf]  ;;  %v5363_v52 = vor.u32 %v6783_v53, %v5362_v51  ;;  %v5748_v23 = vld [vmem:[#allocation15 + $0x530] sm:$0xf0]  ;;  %v5239_v42 = vor.u32 %v6747_v34, %v5236_v46  ;;  %v6840_v46 = vld [vmem:[#allocation15 + $0x3f4] sm:$0xf0] }
 0x2f1   :  { %v6847_v3 = vld [vmem:[#allocation15 + $0x42c] sm:$0xf0]  ;;  %3107 = vmatpush.bf16.msrb.mxu2 %v5939_v62  ;;  %3080 = vmatpush.bf16.msrb.mxu0 %v5395_v45  ;;  %v5492_v62 = vld [vmem:[#allocation15 + $0x330] sm:$0xf0]  ;;  %v5751_v43 = vor.u32 %v6875_v25, %v5748_v23  ;;  %v6106_v23 = vld [vmem:[#allocation15 + $0x7d8] sm:$0xf] }
 0x2f2   :  { %v5874_v47 = vld [vmem:[#allocation15 + $0x610] sm:$0xf]  ;;  %v5619_v0 = vor.u32 %v6847_v3, %v5618_v54  ;;  %v6939_v38 = vld [vmem:[#allocation15 + $0x714] sm:$0xf]  ;;  %v5495_v44 = vor.u32 %v6811_v35, %v5492_v62  ;;  %v5850_v35 = vld [vmem:[#allocation15 + $0x5d8] sm:$0xf] }
 0x2f3   :  { %v6911_v41 = vld [vmem:[#allocation15 + $0x62c] sm:$0xf0]  ;;  %3094 = vmatpush.bf16.msrb.mxu1 %v5651_v11  ;;  %3067 = vmatpush.bf16.msra.mxu3 %v5107_v9  ;;  %v6004_v8 = vld [vmem:[#allocation15 + $0x730] sm:$0xf0] }
 0x2f4   :  { %v5875_v1 = vor.u32 %v6911_v41, %v5874_v47  ;;  %v6739_v45 = vld [vmem:[#allocation15 + $0xd4] sm:$0xf]  ;;  %v6007_v54 = vor.u32 %v6939_v38, %v6004_v8  ;;  %v6968_v38 = vld [vmem:[#allocation15 + $0x7f4] sm:$0xf0] }
 0x2f5   :  { %3108 = vmatpush.bf16.msrb.mxu2 %v5907_v31  ;;  %3081 = vmatpush.bf16.msrb.mxu0 %v5363_v52  ;;  %v5204_v51 = vld [vmem:[#allocation15 + $0xf0] sm:$0xf0] }
 0x2f6   :  { %3068 = vmatmul.bf16.vlgmr.msra.gmra.mxu3 %v7805_v13  ;;  %v6803_v53 = vld [vmem:[#allocation15 + $0x2d4] sm:$0xf]  ;;  %v5207_v47 = vor.u32 %v6739_v45, %v5204_v51  ;;  %v5306_v45 = vld [vmem:[#allocation15 + $0x198] sm:$0xf] }
 0x2f7   :  { %3116 = vmatpush.bf16.msrb.mxu3 %v5335_v63  ;;  %3095 = vmatpush.bf16.msrb.mxu1 %v5619_v0  ;;  %v5460_v11 = vld [vmem:[#allocation15 + $0x2f0] sm:$0xf0]  ;;  %v6768_v51 = vld [vmem:[#allocation15 + $0x1b4] sm:$0xf0] }
 0x2f8   :  { %3082 = vmatmul.bf16.vlgmr.msrb.gmra.mxu0 %v7807_v49  ;;  %v6867_v3 = vld [vmem:[#allocation15 + $0x4d4] sm:$0xf]  ;;  %v5463_v14 = vor.u32 %v6803_v53, %v5460_v11  ;;  %v5562_v53 = vld [vmem:[#allocation15 + $0x398] sm:$0xf] }
 0x2f9   :  { %3130 = vmatpush.bf16.msra.mxu0 %v5591_v32  ;;  %3109 = vmatpush.bf16.msrb.mxu2 %v5875_v1  ;;  %v5716_v57 = vld [vmem:[#allocation15 + $0x4f0] sm:$0xf0]  ;;  %v6832_v11 = vld [vmem:[#allocation15 + $0x3b4] sm:$0xf0] }
 0x2fa   :  { %3096 = vmatmul.bf16.vlgmr.msrb.gmra.mxu1 %v7812_v24  ;;  %v6931_v58 = vld [vmem:[#allocation15 + $0x6d4] sm:$0xf]  ;;  %v5719_v50 = vor.u32 %v6867_v3, %v5716_v57  ;;  %v5818_v3 = vld [vmem:[#allocation15 + $0x598] sm:$0xf] }
 0x2fb   :  { %3144 = vmatpush.bf16.msra.mxu1 %v5847_v2  ;;  %3117 = vmatpush.bf16.msrb.mxu3 %v5303_v40  ;;  %v5972_v31 = vld [vmem:[#allocation15 + $0x6f0] sm:$0xf0]  ;;  %v6896_v57 = vld [vmem:[#allocation15 + $0x5b4] sm:$0xf0] }
 0x2fc   :  { %3110 = vmatmul.bf16.vlgmr.msrb.gmra.mxu2 %v7816_v29  ;;  %v6731_v9 = vld [vmem:[#allocation15 + $0x94] sm:$0xf]  ;;  %v5975_v60 = vor.u32 %v6931_v58, %v5972_v31  ;;  %v6074_v58 = vld [vmem:[#allocation15 + $0x798] sm:$0xf] }
 0x2fd   :  { %3158 = vmatpush.bf16.msra.mxu2 %v6103_v10  ;;  %3131 = vmatpush.bf16.msra.mxu0 %v5559_v21  ;;  %v5172_v41 = vld [vmem:[#allocation15 + $0xb0] sm:$0xf0]  ;;  %v6960_v31 = vld [vmem:[#allocation15 + $0x7b4] sm:$0xf0] }
 0x2fe   :  { %v5428_v52 = vld [vmem:[#allocation15 + $0x2b0] sm:$0xf0]  ;;  %v5175_v32 = vor.u32 %v6731_v9, %v5172_v41  ;;  %v5274_v9 = vld [vmem:[#allocation15 + $0x158] sm:$0xf] }
 0x2ff   :  { %3145 = vmatpush.bf16.msra.mxu1 %v5815_v22  ;;  %3118 = vmatpush.bf16.msrb.mxu3 %v5271_v30  ;;  %v6859_v63 = vld [vmem:[#allocation15 + $0x494] sm:$0xf]  ;;  %v5431_v1 = vor.u32 %v6795_v15, %v5428_v52  ;;  %v5338_v30 = vld [vmem:[#allocation15 + $0x1d8] sm:$0xf] }
 0x300   :  { %v5684_v59 = vld [vmem:[#allocation15 + $0x4b0] sm:$0xf0]  ;;  %v6760_v41 = vld [vmem:[#allocation15 + $0x174] sm:$0xf0] }
 0x301   :  { %3159 = vmatpush.bf16.msra.mxu2 %v6071_v37  ;;  %3132 = vmatpush.bf16.msra.mxu0 %v5527_v17  ;;  %v6923_v61 = vld [vmem:[#allocation15 + $0x694] sm:$0xf]  ;;  %v5687_v2 = vor.u32 %v6859_v63, %v5684_v59  ;;  %v6776_v17 = vld [vmem:[#allocation15 + $0x1f4] sm:$0xf0] }
 0x302   :  { %v5940_v0 = vld [vmem:[#allocation15 + $0x6b0] sm:$0xf0]  ;;  %v5530_v15 = vld [vmem:[#allocation15 + $0x358] sm:$0xf] }
 0x303   :  { %3146 = vmatpush.bf16.msra.mxu1 %v5783_v33  ;;  %3119 = vmatpush.bf16.msrb.mxu3 %v5239_v42  ;;  %v6723_v5 = vld [vmem:[#allocation15 + $0x54] sm:$0xf]  ;;  %v5943_v10 = vor.u32 %v6923_v61, %v5940_v0  ;;  %v5594_v33 = vld [vmem:[#allocation15 + $0x3d8] sm:$0xf]  ;;  %v5339_v42 = vor.u32 %v6776_v17, %v5338_v30 }
 0x304   :  { %v5140_v6 = vld [vmem:[#allocation15 + $0x70] sm:$0xf0]  ;;  %v6824_v52 = vld [vmem:[#allocation15 + $0x374] sm:$0xf0] }
 0x305   :  { %3160 = vmatpush.bf16.msra.mxu2 %v6039_v4  ;;  %3133 = vmatpush.bf16.msra.mxu0 %v5495_v44  ;;  %v6787_v28 = vld [vmem:[#allocation15 + $0x254] sm:$0xf]  ;;  %v5143_v40 = vor.u32 %v6723_v5, %v5140_v6  ;;  %v6904_v4 = vld [vmem:[#allocation15 + $0x5f4] sm:$0xf0]  ;;  %v5595_v44 = vor.u32 %v6840_v46, %v5594_v33 }
 0x306   :  { %v5396_v12 = vld [vmem:[#allocation15 + $0x270] sm:$0xf0]  ;;  %v5786_v63 = vld [vmem:[#allocation15 + $0x558] sm:$0xf] }
 0x307   :  { %3147 = vmatpush.bf16.msra.mxu1 %v5751_v43  ;;  %3120 = vmatpush.bf16.msrb.mxu3 %v5207_v47  ;;  %v6851_v7 = vld [vmem:[#allocation15 + $0x454] sm:$0xf]  ;;  %v5399_v55 = vor.u32 %v6787_v28, %v5396_v12  ;;  %v5851_v43 = vor.u32 %v6904_v4, %v5850_v35  ;;  %v5307_v47 = vor.u32 %v6768_v51, %v5306_v45  ;;  %v6888_v59 = vld [vmem:[#allocation15 + $0x574] sm:$0xf0] }
 0x308   :  { %v5652_v20 = vld [vmem:[#allocation15 + $0x470] sm:$0xf0]  ;;  %v6042_v61 = vld [vmem:[#allocation15 + $0x758] sm:$0xf]  ;;  %v5787_v5 = vor.u32 %v6888_v59, %v5786_v63 }
 0x309   :  { %3161 = vmatpush.bf16.msra.mxu2 %v6007_v54  ;;  %3134 = vmatpush.bf16.msra.mxu0 %v5463_v14  ;;  %v6915_v16 = vld [vmem:[#allocation15 + $0x654] sm:$0xf]  ;;  %v5655_v48 = vor.u32 %v6851_v7, %v5652_v20  ;;  %v6107_v54 = vor.u32 %v6968_v38, %v6106_v23  ;;  %v5563_v14 = vor.u32 %v6832_v11, %v5562_v53  ;;  %v6952_v0 = vld [vmem:[#allocation15 + $0x774] sm:$0xf0] }
 0x30a   :  { %v5908_v18 = vld [vmem:[#allocation15 + $0x670] sm:$0xf0]  ;;  %v2859_v6 = vpop.f32.mrf.mxu0  ;;  %v6752_v28 = vld [vmem:[#allocation15 + $0x134] sm:$0xf0]  ;;  %v6043_v7 = vor.u32 %v6952_v0, %v6042_v61 }
 0x30b   :  { %3148 = vmatpush.bf16.msra.mxu1 %v5719_v50  ;;  %3121 = vmatpush.bf16.msrb.mxu3 %v5175_v32  ;;  %v6715_v21 = vld [vmem:[#allocation15 + $0x14] sm:$0xf]  ;;  %v5911_v36 = vor.u32 %v6915_v16, %v5908_v18  ;;  %v5819_v50 = vor.u32 %v6896_v57, %v5818_v3  ;;  %v5275_v32 = vor.u32 %v6760_v41, %v5274_v9  ;;  %v6816_v20 = vld [vmem:[#allocation15 + $0x334] sm:$0xf0] }
 0x30c   :  { %v5108_v22 = vld [vmem:[#allocation15 + $0x30] sm:$0xf0]  ;;  %v5754_v16 = vld [vmem:[#allocation15 + $0x518] sm:$0xf] }
 0x30d   :  { %3162 = vmatpush.bf16.msra.mxu2 %v5975_v60  ;;  %3135 = vmatpush.bf16.msra.mxu0 %v5431_v1  ;;  %v6779_v56 = vld [vmem:[#allocation15 + $0x214] sm:$0xf]  ;;  %v5111_v34 = vor.u32 %v6715_v21, %v5108_v22  ;;  %v6075_v60 = vor.u32 %v6960_v31, %v6074_v58  ;;  %v5242_v1 = vld [vmem:[#allocation15 + $0x118] sm:$0xf] }
 0x30e   :  { %v5364_v37 = vld [vmem:[#allocation15 + $0x230] sm:$0xf0]  ;;  %v6880_v18 = vld [vmem:[#allocation15 + $0x534] sm:$0xf0] }
 0x30f   :  { %3149 = vmatpush.bf16.msra.mxu1 %v5687_v2  ;;  %v6843_v26 = vld [vmem:[#allocation15 + $0x414] sm:$0xf]  ;;  %3122 = vmatpush.bf16.msrb.mxu3 %v5143_v40  ;;  %v5367_v62 = vor.u32 %v6779_v56, %v5364_v37  ;;  %v5531_v2 = vor.u32 %v6824_v52, %v5530_v15  ;;  %v2873_v40 = vpop.f32.mrf.mxu1  ;;  %v6010_v21 = vld [vmem:[#allocation15 + $0x718] sm:$0xf]  ;;  %v5755_v37 = vor.u32 %v6880_v18, %v5754_v16  ;;  %v2845_v33 = vpop.f32.mrf.mxu3 }
 0x310   :  { %v5620_v27 = vld [vmem:[#allocation15 + $0x430] sm:$0xf0]  ;;  %v6944_v22 = vld [vmem:[#allocation15 + $0x734] sm:$0xf0] }
 0x311   :  { %3163 = vmatpush.bf16.msra.mxu2 %v5943_v10  ;;  %v6907_v39 = vld [vmem:[#allocation15 + $0x614] sm:$0xf]  ;;  %3136 = vmatpush.bf16.msra.mxu0 %v5399_v55  ;;  %v5623_v25 = vor.u32 %v6843_v26, %v5620_v27  ;;  %v5498_v10 = vld [vmem:[#allocation15 + $0x318] sm:$0xf]  ;;  %v5243_v55 = vor.u32 %v6752_v28, %v5242_v1 }
 0x312   :  { %v5876_v19 = vld [vmem:[#allocation15 + $0x630] sm:$0xf0]  ;;  %v5499_v56 = vor.u32 %v6816_v20, %v5498_v10  ;;  %v5210_v26 = vld [vmem:[#allocation15 + $0xd8] sm:$0xf] }
 0x313   :  { %3150 = vmatpush.bf16.msra.mxu1 %v5655_v48  ;;  %v5879_v8 = vor.u32 %v6907_v39, %v5876_v19  ;;  %3123 = vmatpush.bf16.msrb.mxu3 %v5111_v34  ;;  %v7843_v12 = vld [vmem:[%s8304_s12] sm:$0xff]  ;;  %v6011_v39 = vor.u32 %v6944_v22, %v6010_v21 }
 0x314   :  { %v1540_v48 = vperm.slane %v7843_v12, 0  ;;  %v5466_v27 = vld [vmem:[#allocation15 + $0x2d8] sm:$0xf] }
 0x315   :  { %3164 = vmatpush.bf16.msra.mxu2 %v5911_v36  ;;  %3137 = vmatpush.bf16.msra.mxu0 %v5367_v62  ;;  %v6744_v36 = vld [vmem:[#allocation15 + $0xf4] sm:$0xf0] }
 0x316   :  { %3124 = vmatmul.bf16.vlgmr.msrb.gmra.mxu3 %v7805_v13  ;;  %v6808_v19 = vld [vmem:[#allocation15 + $0x2f4] sm:$0xf0]  ;;  %v2846_v35 = vadd.f32 %v2845_v33, %v1540_v48  ;;  %v5211_v4 = vor.u32 %v6744_v36, %v5210_v26  ;;  %v6772_v26 = vld [vmem:[#allocation15 + $0x1dc] sm:$0xf] }
 0x317   :  { %3151 = vmatpush.bf16.msra.mxu1 %v5623_v25  ;;  %3172 = vmatpush.bf16.msra.mxu3 %v5339_v42  ;;  %v5722_v30 = vld [vmem:[#allocation15 + $0x4d8] sm:$0xf]  ;;  %v5467_v62 = vor.u32 %v6808_v19, %v5466_v27  ;;  %v2875_v58 = vpop.f32.mrf.mxu1  ;;  %v2847_v61 = vpop.f32.mrf.mxu3  ;;  %v6836_v27 = vld [vmem:[#allocation15 + $0x3dc] sm:$0xf] }
 0x318   :  { %3138 = vmatmul.bf16.vlgmr.msra.gmra.mxu0 %v7807_v49  ;;  %v6872_v17 = vld [vmem:[#allocation15 + $0x4f4] sm:$0xf0]  ;;  %v2860_v42 = vadd.f32 %v2859_v6, %v2846_v35  ;;  %v1541_v35 = vperm.slane %v7843_v12, 1 }
 0x319   :  { %3165 = vmatpush.bf16.msra.mxu2 %v5879_v8  ;;  %3186 = vmatpush.bf16.msrb.mxu0 %v5595_v44  ;;  %v5978_v34 = vld [vmem:[#allocation15 + $0x6d8] sm:$0xf]  ;;  %v5723_v25 = vor.u32 %v6872_v17, %v5722_v30 }
 0x31a   :  { %3152 = vmatmul.bf16.vlgmr.msra.gmra.mxu1 %v7812_v24  ;;  %v6936_v46 = vld [vmem:[#allocation15 + $0x6f4] sm:$0xf0]  ;;  %v2874_v57 = vadd.f32 %v2873_v40, %v2860_v42 }
 0x31b   :  { %3200 = vmatpush.bf16.msrb.mxu1 %v5851_v43  ;;  %3173 = vmatpush.bf16.msra.mxu3 %v5307_v47  ;;  %v5178_v23 = vld [vmem:[#allocation15 + $0x98] sm:$0xf]  ;;  %v5979_v44 = vor.u32 %v6936_v46, %v5978_v34  ;;  %v2861_v43 = vpop.f32.mrf.mxu0  ;;  %v6900_v34 = vld [vmem:[#allocation15 + $0x5dc] sm:$0xf] }
 0x31c   :  { %3166 = vmatmul.bf16.vlgmr.msra.gmra.mxu2 %v7816_v29  ;;  %v6736_v38 = vld [vmem:[#allocation15 + $0xb4] sm:$0xf0]  ;;  %v5852_v46 = vld [vmem:[#allocation15 + $0x5f8] sm:$0xf0] }
 0x31d   :  { %3214 = vmatpush.bf16.msrb.mxu2 %v6107_v54  ;;  %3187 = vmatpush.bf16.msrb.mxu0 %v5563_v14  ;;  %v5434_v8 = vld [vmem:[#allocation15 + $0x298] sm:$0xf]  ;;  %v2887_v54 = vpop.f32.mrf.mxu2  ;;  %v5179_v31 = vor.u32 %v6736_v38, %v5178_v23  ;;  %v6108_v23 = vld [vmem:[#allocation15 + $0x7f8] sm:$0xf0] }
 0x31e   :  { %v6800_v45 = vld [vmem:[#allocation15 + $0x2b4] sm:$0xf0]  ;;  %v7846_v15 = vadd.f32 %v2887_v54, %v2874_v57  ;;  %v5564_v57 = vld [vmem:[#allocation15 + $0x3b8] sm:$0xf0] }
 0x31f   :  { %3201 = vmatpush.bf16.msrb.mxu1 %v5819_v50  ;;  %3174 = vmatpush.bf16.msra.mxu3 %v5275_v32  ;;  %v5690_v51 = vld [vmem:[#allocation15 + $0x498] sm:$0xf]  ;;  %v5435_v47 = vor.u32 %v6800_v45, %v5434_v8  ;;  %v2929_v42 = vpop.f32.mrf.mxu1  ;;  %v6764_v45 = vld [vmem:[#allocation15 + $0x19c] sm:$0xf]  ;;  %v2901_v54 = vpop.f32.mrf.mxu3 }
 0x320   :  { %v6864_v53 = vld [vmem:[#allocation15 + $0x4b4] sm:$0xf0] }
 0x321   :  { %3215 = vmatpush.bf16.msrb.mxu2 %v6075_v60  ;;  %3188 = vmatpush.bf16.msrb.mxu0 %v5531_v2  ;;  %v5946_v11 = vld [vmem:[#allocation15 + $0x698] sm:$0xf]  ;;  %v5691_v14 = vor.u32 %v6864_v53, %v5690_v51  ;;  %v3303_v2 = vrot.slane %v7846_v15, 4  ;;  %v5855_v53 = vor.u32 %v6900_v34, %v5852_v46 }
 0x322   :  { %v6928_v3 = vld [vmem:[#allocation15 + $0x6b4] sm:$0xf0] }
 0x323   :  { %3202 = vmatpush.bf16.msrb.mxu1 %v5787_v5  ;;  %3175 = vmatpush.bf16.msra.mxu3 %v5243_v55  ;;  %v5146_v50 = vld [vmem:[#allocation15 + $0x58] sm:$0xf]  ;;  %v5947_v60 = vor.u32 %v6928_v3, %v5946_v11  ;;  %v2848_v5 = vadd.f32 %v2847_v61, %v1540_v48  ;;  %v3304_v21 = vadd.f32 %v3303_v2, %v7846_v15  ;;  %v5340_v48 = vld [vmem:[#allocation15 + $0x1f8] sm:$0xf0]  ;;  %v2915_v17 = vpop.f32.mrf.mxu0 }
 0x324   :  { %v6728_v9 = vld [vmem:[#allocation15 + $0x74] sm:$0xf0]  ;;  %v5308_v11 = vld [vmem:[#allocation15 + $0x1b8] sm:$0xf0] }
 0x325   :  { %3216 = vmatpush.bf16.msrb.mxu2 %v6043_v7  ;;  %3189 = vmatpush.bf16.msrb.mxu0 %v5499_v56  ;;  %v5402_v41 = vld [vmem:[#allocation15 + $0x258] sm:$0xf]  ;;  %v5147_v6 = vor.u32 %v6728_v9, %v5146_v50  ;;  %v2862_v22 = vadd.f32 %v2861_v43, %v2848_v5  ;;  %v2889_v36 = vpop.f32.mrf.mxu2  ;;  %v3305_v19 = vrot.slane %v3304_v21, 2  ;;  %v5343_v43 = vor.u32 %v6772_v26, %v5340_v48  ;;  %v6828_v3 = vld [vmem:[#allocation15 + $0x39c] sm:$0xf] }
 0x326   :  { %v6792_v52 = vld [vmem:[#allocation15 + $0x274] sm:$0xf0]  ;;  %v5820_v50 = vld [vmem:[#allocation15 + $0x5b8] sm:$0xf0] }
 0x327   :  { %3203 = vmatpush.bf16.msrb.mxu1 %v5755_v37  ;;  %3176 = vmatpush.bf16.msra.mxu3 %v5211_v4  ;;  %v5658_v63 = vld [vmem:[#allocation15 + $0x458] sm:$0xf]  ;;  %v5403_v7 = vor.u32 %v6792_v52, %v5402_v41  ;;  %v2876_v30 = vadd.f32 %v2875_v58, %v2862_v22  ;;  %v3306_v8 = vadd.f32 %v3305_v19, %v3304_v21  ;;  %v6956_v9 = vld [vmem:[#allocation15 + $0x79c] sm:$0xf]  ;;  %v2931_v34 = vpop.f32.mrf.mxu1 }
 0x328   :  { %v6856_v59 = vld [vmem:[#allocation15 + $0x474] sm:$0xf0]  ;;  %v6076_v41 = vld [vmem:[#allocation15 + $0x7b8] sm:$0xf0] }
 0x329   :  { %3217 = vmatpush.bf16.msrb.mxu2 %v6011_v39  ;;  %3190 = vmatpush.bf16.msrb.mxu0 %v5467_v62  ;;  %v5914_v0 = vld [vmem:[#allocation15 + $0x658] sm:$0xf]  ;;  %v5659_v20 = vor.u32 %v6856_v59, %v5658_v63  ;;  %v5596_v39 = vld [vmem:[#allocation15 + $0x3f8] sm:$0xf0]  ;;  %v7851_v38 = vadd.f32 %v2889_v36, %v2876_v30  ;;  %v3307_v58 = vrot.slane %v3306_v8, 1  ;;  %v5311_v63 = vor.u32 %v6764_v45, %v5308_v11 }
 0x32a   :  { %v6920_v32 = vld [vmem:[#allocation15 + $0x674] sm:$0xf0]  ;;  %v5599_v51 = vor.u32 %v6836_v27, %v5596_v39  ;;  %v6756_v59 = vld [vmem:[#allocation15 + $0x15c] sm:$0xf]  ;;  %v2903_v39 = vpop.f32.mrf.mxu3 }
 0x32b   :  { %3204 = vmatpush.bf16.msrb.mxu1 %v5723_v25  ;;  %v5114_v1 = vld [vmem:[#allocation15 + $0x18] sm:$0xf]  ;;  %3177 = vmatpush.bf16.msra.mxu3 %v5179_v31  ;;  %v5915_v55 = vor.u32 %v6920_v32, %v5914_v0  ;;  %v6964_v25 = vld [vmem:[#allocation15 + $0x7dc] sm:$0xf]  ;;  %v5567_v32 = vor.u32 %v6828_v3, %v5564_v57 }
 0x32c   :  { %v6720_v28 = vld [vmem:[#allocation15 + $0x34] sm:$0xf0]  ;;  %v6111_v31 = vor.u32 %v6964_v25, %v6108_v23  ;;  %v5276_v61 = vld [vmem:[#allocation15 + $0x178] sm:$0xf0] }
 0x32d   :  { %3218 = vmatpush.bf16.msrb.mxu2 %v5979_v44  ;;  %v5370_v10 = vld [vmem:[#allocation15 + $0x218] sm:$0xf]  ;;  %3191 = vmatpush.bf16.msrb.mxu0 %v5435_v47  ;;  %v5115_v33 = vor.u32 %v6720_v28, %v5114_v1  ;;  %v2902_v47 = vadd.f32 %v2901_v54, %v1541_v35  ;;  %v2943_v0 = vpop.f32.mrf.mxu2  ;;  %v6820_v2 = vld [vmem:[#allocation15 + $0x35c] sm:$0xf] }
 0x32e   :  { %v6784_v16 = vld [vmem:[#allocation15 + $0x234] sm:$0xf0]  ;;  %v5532_v5 = vld [vmem:[#allocation15 + $0x378] sm:$0xf0] }
 0x32f   :  { %3205 = vmatpush.bf16.msrb.mxu1 %v5691_v14  ;;  %v5626_v18 = vld [vmem:[#allocation15 + $0x418] sm:$0xf]  ;;  %3178 = vmatpush.bf16.msra.mxu3 %v5147_v6  ;;  %v5371_v4 = vor.u32 %v6784_v16, %v5370_v10  ;;  %v6892_v14 = vld [vmem:[#allocation15 + $0x59c] sm:$0xf]  ;;  %v2916_v52 = vadd.f32 %v2915_v17, %v2902_v47  ;;  %v6079_v10 = vor.u32 %v6956_v9, %v6076_v41 }
 0x330   :  { %v6848_v40 = vld [vmem:[#allocation15 + $0x434] sm:$0xf0]  ;;  %v5823_v1 = vor.u32 %v6892_v14, %v5820_v50  ;;  %v5279_v16 = vor.u32 %v6756_v59, %v5276_v61  ;;  %v5244_v26 = vld [vmem:[#allocation15 + $0x138] sm:$0xf0]  ;;  %v5535_v48 = vor.u32 %v6820_v2, %v5532_v5  ;;  %v1542_v50 = vperm.slane %v7843_v12, 2 }
 0x331   :  { %3219 = vmatpush.bf16.msrb.mxu2 %v5947_v60  ;;  %v5882_v56 = vld [vmem:[#allocation15 + $0x618] sm:$0xf]  ;;  %3192 = vmatpush.bf16.msrb.mxu0 %v5403_v7  ;;  %v5627_v62 = vor.u32 %v6848_v40, %v5626_v18  ;;  %v3308_v60 = vadd.f32 %v3307_v58, %v3306_v8  ;;  %v2930_v28 = vadd.f32 %v2929_v42, %v2916_v52  ;;  %v6884_v7 = vld [vmem:[#allocation15 + $0x55c] sm:$0xf] }
 0x332   :  { %v6912_v37 = vld [vmem:[#allocation15 + $0x634] sm:$0xf0]  ;;  %v6948_v18 = vld [vmem:[#allocation15 + $0x75c] sm:$0xf] }
 0x333   :  { %3206 = vmatpush.bf16.msrb.mxu1 %v5659_v20  ;;  %v5883_v44 = vor.u32 %v6912_v37, %v5882_v56  ;;  %3179 = vmatpush.bf16.msra.mxu3 %v5115_v33  ;;  %v7855_v6 = vmul.f32 0.125, %v3308_v60  ;;  %v5788_v20 = vld [vmem:[#allocation15 + $0x578] sm:$0xf0]  ;;  %v2917_v56 = vpop.f32.mrf.mxu0 }
 0x334   :  { %v6044_v40 = vld [vmem:[#allocation15 + $0x778] sm:$0xf0]  ;;  %v5791_v27 = vor.u32 %v6884_v7, %v5788_v20 }
 0x335   :  { %3220 = vmatpush.bf16.msrb.mxu2 %v5915_v55  ;;  %3193 = vmatpush.bf16.msrb.mxu0 %v5371_v4  ;;  %v7862_v21 = vsub.f32 %v7846_v15, %v7855_v6  ;;  %v3374_v22 = vsub.f32 %v7851_v38, %v7855_v6  ;;  %v7866_v55 = vadd.f32 %v2943_v0, %v2930_v28  ;;  %v6748_v37 = vld [vmem:[#allocation15 + $0x11c] sm:$0xf]  ;;  %v2945_v45 = vpop.f32.mrf.mxu2 }
 0x336   :  { %3180 = vmatmul.bf16.vlgmr.msra.gmra.mxu3 %v7805_v13  ;;  %v6812_v36 = vld [vmem:[#allocation15 + $0x31c] sm:$0xf]  ;;  %v6047_v46 = vor.u32 %v6948_v18, %v6044_v40  ;;  %v2904_v4 = vadd.f32 %v2903_v39, %v1541_v35 }
 0x337   :  { %3207 = vmatpush.bf16.msrb.mxu1 %v5627_v62  ;;  %3228 = vmatpush.bf16.msrb.mxu3 %v5343_v43  ;;  %v5500_v19 = vld [vmem:[#allocation15 + $0x338] sm:$0xf0]  ;;  %v3398_v17 = vmul.f32 %v7862_v21, %v7862_v21  ;;  %v3310_v33 = vrot.slane %v7866_v55, 4  ;;  %v2985_v39 = vpop.f32.mrf.mxu1 }
 0x338   :  { %3194 = vmatmul.bf16.vlgmr.msrb.gmra.mxu0 %v7807_v49  ;;  %v6876_v15 = vld [vmem:[#allocation15 + $0x51c] sm:$0xf]  ;;  %v2918_v42 = vadd.f32 %v2917_v56, %v2904_v4 }
 0x339   :  { %3221 = vmatpush.bf16.msrb.mxu2 %v5883_v44  ;;  %3242 = vmatpush.bf16.msra.mxu0 %v5599_v51  ;;  %v5756_v30 = vld [vmem:[#allocation15 + $0x538] sm:$0xf0]  ;;  %v3415_v23 = vrot.slane %v3398_v17, 4  ;;  %v3311_v8 = vadd.f32 %v3310_v33, %v7866_v55  ;;  %v5247_v44 = vor.u32 %v6748_v37, %v5244_v26  ;;  %v5503_v51 = vor.u32 %v6812_v36, %v5500_v19 }
 0x33a   :  { %3208 = vmatmul.bf16.vlgmr.msrb.gmra.mxu1 %v7812_v24  ;;  %v6940_v62 = vld [vmem:[#allocation15 + $0x71c] sm:$0xf] }
 0x33b   :  { %3256 = vmatpush.bf16.msra.mxu1 %v5855_v53  ;;  %3229 = vmatpush.bf16.msrb.mxu3 %v5311_v63  ;;  %v6012_v25 = vld [vmem:[#allocation15 + $0x738] sm:$0xf0]  ;;  %v5759_v53 = vor.u32 %v6876_v15, %v5756_v30  ;;  %v3416_v58 = vadd.f32 %v3415_v23, %v3398_v17  ;;  %v3312_v35 = vrot.slane %v3311_v8, 2  ;;  %v2971_v20 = vpop.f32.mrf.mxu0 }
 0x33c   :  { %3222 = vmatmul.bf16.vlgmr.msrb.gmra.mxu2 %v7816_v29  ;;  %v6740_v43 = vld [vmem:[#allocation15 + $0xdc] sm:$0xf]  ;;  %v6015_v54 = vor.u32 %v6940_v62, %v6012_v25 }
 0x33d   :  { %3270 = vmatpush.bf16.msra.mxu2 %v6111_v31  ;;  %3243 = vmatpush.bf16.msra.mxu0 %v5567_v32  ;;  %v5212_v11 = vld [vmem:[#allocation15 + $0xf8] sm:$0xf0]  ;;  %v2932_v31 = vadd.f32 %v2931_v34, %v2918_v42  ;;  %v3417_v60 = vrot.slane %v3416_v58, 2  ;;  %v3313_v63 = vadd.f32 %v3312_v35, %v3311_v8 }
 0x33e   :  { %v6804_v3 = vld [vmem:[#allocation15 + $0x2dc] sm:$0xf]  ;;  %v5215_v59 = vor.u32 %v6740_v43, %v5212_v11 }
 0x33f   :  { %3257 = vmatpush.bf16.msra.mxu1 %v5823_v1  ;;  %3230 = vmatpush.bf16.msrb.mxu3 %v5279_v16  ;;  %v5468_v57 = vld [vmem:[#allocation15 + $0x2f8] sm:$0xf0]  ;;  %v7876_v52 = vadd.f32 %v2945_v45, %v2932_v31  ;;  %v2957_v1 = vpop.f32.mrf.mxu3  ;;  %v3314_v7 = vrot.slane %v3313_v63, 1  ;;  %v2999_v42 = vpop.f32.mrf.mxu2 }
 0x340   :  { %v6868_v47 = vld [vmem:[#allocation15 + $0x4dc] sm:$0xf]  ;;  %v5471_v0 = vor.u32 %v6804_v3, %v5468_v57  ;;  %v2958_v18 = vadd.f32 %v2957_v1, %v1542_v50 }
 0x341   :  { %3271 = vmatpush.bf16.msra.mxu2 %v6079_v10  ;;  %3244 = vmatpush.bf16.msra.mxu0 %v5535_v48  ;;  %v5724_v14 = vld [vmem:[#allocation15 + $0x4f8] sm:$0xf0]  ;;  %v3418_v10 = vadd.f32 %v3417_v60, %v3416_v58 }
 0x342   :  { %v6932_v9 = vld [vmem:[#allocation15 + $0x6dc] sm:$0xf]  ;;  %v5727_v32 = vor.u32 %v6868_v47, %v5724_v14  ;;  %v2972_v19 = vadd.f32 %v2971_v20, %v2958_v18 }
 0x343   :  { %3258 = vmatpush.bf16.msra.mxu1 %v5791_v27  ;;  %v5980_v41 = vld [vmem:[#allocation15 + $0x6f8] sm:$0xf0]  ;;  %3231 = vmatpush.bf16.msrb.mxu3 %v5247_v44  ;;  %v3419_v48 = vrot.slane %v3418_v10, 1  ;;  %v3315_v27 = vadd.f32 %v3314_v7, %v3313_v63 }
 0x344   :  { %v6732_v61 = vld [vmem:[#allocation15 + $0x9c] sm:$0xf]  ;;  %v5983_v16 = vor.u32 %v6932_v9, %v5980_v41  ;;  %v2986_v8 = vadd.f32 %v2985_v39, %v2972_v19 }
 0x345   :  { %3272 = vmatpush.bf16.msra.mxu2 %v6047_v46  ;;  %3245 = vmatpush.bf16.msra.mxu0 %v5503_v51  ;;  %v5180_v2 = vld [vmem:[#allocation15 + $0xb8] sm:$0xf0]  ;;  %v3420_v25 = vadd.f32 %v3419_v48, %v3418_v10  ;;  %v7880_v23 = vmul.f32 0.125, %v3315_v27 }
 0x346   :  { %v6796_v5 = vld [vmem:[#allocation15 + $0x29c] sm:$0xf]  ;;  %v5183_v15 = vor.u32 %v6732_v61, %v5180_v2 }
 0x347   :  { %3259 = vmatpush.bf16.msra.mxu1 %v5759_v53  ;;  %v5436_v28 = vld [vmem:[#allocation15 + $0x2b8] sm:$0xf0]  ;;  %3232 = vmatpush.bf16.msrb.mxu3 %v5215_v59  ;;  %v7884_v51 = vsub.f32 %v7866_v55, %v7880_v23  ;;  %v3375_v53 = vsub.f32 %v7876_v52, %v7880_v23  ;;  %v2959_v31 = vpop.f32.mrf.mxu3  ;;  %v3470_v41 = vmul.f32 0.125, %v3420_v25 }
 0x348   :  { %v6860_v40 = vld [vmem:[#allocation15 + $0x49c] sm:$0xf]  ;;  %v5439_v33 = vor.u32 %v6796_v5, %v5436_v28  ;;  %v2960_v63 = vadd.f32 %v2959_v31, %v1542_v50  ;;  %v2973_v5 = vpop.f32.mrf.mxu0 }
 0x349   :  { %3273 = vmatpush.bf16.msra.mxu2 %v6015_v54  ;;  %v5692_v56 = vld [vmem:[#allocation15 + $0x4b8] sm:$0xf0]  ;;  %3246 = vmatpush.bf16.msra.mxu0 %v5471_v0  ;;  %v3000_v54 = vadd.f32 %v2999_v42, %v2986_v8  ;;  %v3399_v55 = vmul.f32 %v7884_v51, %v7884_v51 }
 0x34a   :  { %v6924_v37 = vld [vmem:[#allocation15 + $0x69c] sm:$0xf]  ;;  %v5695_v34 = vor.u32 %v6860_v40, %v5692_v56  ;;  %v2974_v10 = vadd.f32 %v2973_v5, %v2960_v63  ;;  %v2987_v56 = vpop.f32.mrf.mxu1 }
 0x34b   :  { %v5948_v26 = vld [vmem:[#allocation15 + $0x6b8] sm:$0xf0]  ;;  %3260 = vmatpush.bf16.msra.mxu1 %v5727_v32  ;;  %3233 = vmatpush.bf16.msrb.mxu3 %v5183_v15  ;;  %v3317_v60 = vrot.slane %v3000_v54, 4  ;;  %v3422_v1 = vrot.slane %v3399_v55, 4 }
 0x34c   :  { %v6724_v36 = vld [vmem:[#allocation15 + $0x5c] sm:$0xf]  ;;  %v5951_v44 = vor.u32 %v6924_v37, %v5948_v26  ;;  %v2988_v37 = vadd.f32 %v2987_v56, %v2974_v10 }
 0x34d   :  { %v5148_v30 = vld [vmem:[#allocation15 + $0x78] sm:$0xf0]  ;;  %3274 = vmatpush.bf16.msra.mxu2 %v5983_v16  ;;  %3247 = vmatpush.bf16.msra.mxu0 %v5439_v33  ;;  %v3318_v2 = vadd.f32 %v3317_v60, %v3000_v54  ;;  %v7892_v16 = vadd.f32 0.8, %v3470_v41  ;;  %v3423_v18 = vadd.f32 %v3422_v1, %v3399_v55 }
 0x34e   :  { %v6788_v17 = vld [vmem:[#allocation15 + $0x25c] sm:$0xf]  ;;  %v5151_v11 = vor.u32 %v6724_v36, %v5148_v30  ;;  %v3001_v36 = vpop.f32.mrf.mxu2 }
 0x34f   :  { %v5404_v46 = vld [vmem:[#allocation15 + $0x278] sm:$0xf0]  ;;  %3261 = vmatpush.bf16.msra.mxu1 %v5695_v34  ;;  %v3319_v40 = vrot.slane %v3318_v2, 2  ;;  %v3424_v26 = vrot.slane %v3423_v18, 2  ;;  %v7894_v27 = vadd.f32 %v3001_v36, %v2988_v37  ;;  %7129 = vrsqrt.f32 %v7892_v16 }
 0x350   :  { %v6852_v4 = vld [vmem:[#allocation15 + $0x45c] sm:$0xf]  ;;  %v5407_v57 = vor.u32 %v6788_v17, %v5404_v46  ;;  %3234 = vmatpush.bf16.msrb.mxu3 %v5151_v11  ;;  %vm3492_vm9 = vweird.f32 %v7892_v16 }
 0x351   :  { %v5660_v62 = vld [vmem:[#allocation15 + $0x478] sm:$0xf0]  ;;  %3275 = vmatpush.bf16.msra.mxu2 %v5951_v44  ;;  %v3320_v48 = vadd.f32 %v3319_v40, %v3318_v2  ;;  %v3425_v39 = vadd.f32 %v3424_v26, %v3423_v18 }
 0x352   :  { %v6916_v43 = vld [vmem:[#allocation15 + $0x65c] sm:$0xf]  ;;  %v5663_v58 = vor.u32 %v6852_v4, %v5660_v62  ;;  %3248 = vmatpush.bf16.msra.mxu0 %v5407_v57 }
 0x353   :  { %v5916_v45 = vld [vmem:[#allocation15 + $0x678] sm:$0xf0]  ;;  %v3321_v19 = vrot.slane %v3320_v48, 1  ;;  %v3426_v15 = vrot.slane %v3425_v39, 1 }
 0x354   :  { %v6716_v3 = vld [vmem:[#allocation15 + $0x1c] sm:$0xf]  ;;  %v5919_v35 = vor.u32 %v6916_v43, %v5916_v45  ;;  %3262 = vmatpush.bf16.msra.mxu1 %v5663_v58 }
 0x355   :  { %v5116_v47 = vld [vmem:[#allocation15 + $0x38] sm:$0xf0]  ;;  %v3322_v30 = vadd.f32 %v3321_v19, %v3320_v48  ;;  %v3427_v17 = vadd.f32 %v3426_v15, %v3425_v39  ;;  %v7130_v34 = vpop.eup %7129  ;;  %v3027_v42 = vpop.f32.mrf.mxu0 }
 0x356   :  { %v6780_v14 = vld [vmem:[#allocation15 + $0x21c] sm:$0xf]  ;;  %v5119_v28 = vor.u32 %v6716_v3, %v5116_v47  ;;  %3276 = vmatpush.bf16.msra.mxu2 %v5919_v35  ;;  %vm3493_vm5 = vweird.f32 %v7130_v34 }
 0x357   :  { %v5372_v9 = vld [vmem:[#allocation15 + $0x238] sm:$0xf0]  ;;  %v7901_v33 = vmul.f32 0.125, %v3322_v30  ;;  %v3471_v46 = vmul.f32 0.125, %v3427_v17  ;;  %vm3494_vm12 = vmor %vm3492_vm9, %vm3493_vm5 }
 0x358   :  { %v6844_v59 = vld [vmem:[#allocation15 + $0x41c] sm:$0xf]  ;;  %v5375_v7 = vor.u32 %v6780_v14, %v5372_v9  ;;  %3235 = vmatpush.bf16.msrb.mxu3 %v5119_v28 }
 0x359   :  { %v5628_v61 = vld [vmem:[#allocation15 + $0x438] sm:$0xf0]  ;;  %v7904_v4 = vsub.f32 %v3000_v54, %v7901_v33  ;;  %v3013_v44 = vpop.f32.mrf.mxu3  ;;  %v3041_v54 = vpop.f32.mrf.mxu1 }
 0x35a   :  { %v6908_v0 = vld [vmem:[#allocation15 + $0x61c] sm:$0xf]  ;;  %v5631_v20 = vor.u32 %v6844_v59, %v5628_v61  ;;  %3249 = vmatpush.bf16.msra.mxu0 %v5375_v7 }
 0x35b   :  { %v5884_v32 = vld [vmem:[#allocation15 + $0x638] sm:$0xf0]  ;;  %3236 = vmatmul.bf16.vlgmr.msrb.gmra.mxu3 %v7805_v13  ;;  %v3479_v13 = vadd.f32 0.8, %v3471_v46  ;;  %v3400_v25 = vmul.f32 %v7904_v4, %v7904_v4 }
 0x35c   :  { %v5887_v50 = vor.u32 %v6908_v0, %v5884_v32  ;;  %3263 = vmatpush.bf16.msra.mxu1 %v5631_v20 }
 0x35d   :  { %3250 = vmatmul.bf16.vlgmr.msra.gmra.mxu0 %v7807_v49  ;;  %v3487_v49 = vmul.f32 %v7130_v34, %v7892_v16  ;;  %7131 = vrsqrt.f32 %v3479_v13  ;;  %v3029_v32 = vpop.f32.mrf.mxu0  ;;  %vm3502_vm6 = vweird.f32 %v3479_v13 }
 0x35e   :  { %3277 = vmatpush.bf16.msra.mxu2 %v5887_v50 }
 0x35f   :  { %3264 = vmatmul.bf16.vlgmr.msra.gmra.mxu1 %v7812_v24  ;;  %v3429_v24 = vrot.slane %v3400_v25, 4  ;;  %v3488_v8 = vmul.f32 %v7130_v34, %v3487_v49  ;;  %v3055_v35 = vpop.f32.mrf.mxu2 }
 0x361   :  { %3278 = vmatmul.bf16.vlgmr.msra.gmra.mxu2 %v7816_v29  ;;  %v1543_v29 = vperm.slane %v7843_v12, 3  ;;  %v3430_v43 = vadd.f32 %v3429_v24, %v3400_v25  ;;  %v3489_v57 = vmul.f32 0.5, %v3488_v8  ;;  %v3015_v60 = vpop.f32.mrf.mxu3  ;;  %v3043_v10 = vpop.f32.mrf.mxu1 }
 0x363   :  { %v3014_v45 = vadd.f32 %v3013_v44, %v1543_v29  ;;  %v7132_v11 = vpop.eup %7131  ;;  %v3431_v31 = vrot.slane %v3430_v43, 2  ;;  %v3490_v41 = vsub.f32 1.5, %v3489_v57  ;;  %v3016_v61 = vadd.f32 %v3015_v60, %v1543_v29 }
 0x364   :  { %v3497_v58 = vmul.f32 %v7132_v11, %v3479_v13  ;;  %vm3503_vm4 = vweird.f32 %v7132_v11 }
 0x365   :  { %v3028_v3 = vadd.f32 %v3027_v42, %v3014_v45  ;;  %v3432_v63 = vadd.f32 %v3431_v31, %v3430_v43  ;;  %v3030_v2 = vadd.f32 %v3029_v32, %v3016_v61  ;;  %v3491_v5 = vmul.f32 %v7130_v34, %v3490_v41  ;;  %vm3504_vm8 = vmor %vm3502_vm6, %vm3503_vm4 }
 0x366   :  { %v3498_v14 = vmul.f32 %v7132_v11, %v3497_v58 }
 0x367   :  { %v3042_v47 = vadd.f32 %v3041_v54, %v3028_v3  ;;  %v3433_v7 = vrot.slane %v3432_v63, 1  ;;  %v3044_v18 = vadd.f32 %v3043_v10, %v3030_v2  ;;  %v3057_v56 = vpop.f32.mrf.mxu2  ;;  %v3495_v36 = vsel %vm3494_vm12, %v7130_v34, %v3491_v5 }
 0x368   :  { %v3499_v55 = vmul.f32 0.5, %v3498_v14  ;;  %v1544_v3 = vperm.slane %v7843_v12, 4  ;;  %vm3584_vm12 = vcmask 1044484  }
 0x369   :  { %v3056_v9 = vadd.f32 %v3055_v35, %v3042_v47  ;;  %v7913_v37 = vadd.f32 %v3057_v56, %v3044_v18  ;;  %v3434_v39 = vadd.f32 %v3433_v7, %v3432_v63  ;;  %v1545_v18 = vperm.slane %v7843_v12, 5 }
 0x36a   :  { %v3500_v0 = vsub.f32 1.5, %v3499_v55 }
 0x36b   :  { %v3324_v59 = vrot.slane %v3056_v9, 4  ;;  %v3472_v30 = vmul.f32 0.125, %v3434_v39 }
 0x36c   :  { %v3501_v28 = vmul.f32 %v7132_v11, %v3500_v0 }
 0x36d   :  { %v3325_v1 = vadd.f32 %v3324_v59, %v3056_v9  ;;  %v3480_v13 = vadd.f32 0.8, %v3472_v30 }
 0x36e   :  { %v3505_v40 = vsel %vm3504_vm8, %v7132_v11, %v3501_v28 }
 0x36f   :  { %v3326_v20 = vrot.slane %v3325_v1, 2  ;;  %v3574_v50 = vrot.slane %v3505_v40, 7  ;;  %7133 = vrsqrt.f32 %v3480_v13  ;;  %vm3512_vm13 = vweird.f32 %v3480_v13 }
 0x371   :  { %v3327_v26 = vadd.f32 %v3326_v20, %v3325_v1  ;;  %v7916_v48 = vsel %vm522_vm7, %v3495_v36, %v3574_v50 }
 0x373   :  { %v3328_v19 = vrot.slane %v3327_v26, 1 }
 0x375   :  { %v3329_v15 = vadd.f32 %v3328_v19, %v3327_v26  ;;  %v3083_v24 = vpop.f32.mrf.mxu0  ;;  %v7134_v45 = vpop.eup %7133 }
 0x376   :  { %v3507_v57 = vmul.f32 %v7134_v45, %v3480_v13  ;;  %vm3513_vm7 = vweird.f32 %v7134_v45 }
 0x377   :  { %v7918_v17 = vmul.f32 0.125, %v3329_v15  ;;  %v3097_v42 = vpop.f32.mrf.mxu1  ;;  %vm3514_vm15 = vmor %vm3512_vm13, %vm3513_vm7  ;;  %vm3586_vm13 = vcmask 1046534  }
 0x378   :  { %v3508_v41 = vmul.f32 %v7134_v45, %v3507_v57 }
 0x379   :  { %v7921_v46 = vsub.f32 %v3056_v9, %v7918_v17  ;;  %v3069_v29 = vpop.f32.mrf.mxu3 }
 0x37a   :  { %v3509_v61 = vmul.f32 0.5, %v3508_v41  ;;  %v3070_v2 = vadd.f32 %v3069_v29, %v1544_v3 }
 0x37b   :  { %v3401_v25 = vmul.f32 %v7921_v46, %v7921_v46 }
 0x37c   :  { %v3510_v32 = vsub.f32 1.5, %v3509_v61  ;;  %v3084_v7 = vadd.f32 %v3083_v24, %v3070_v2  ;;  %v1546_v2 = vperm.slane %v7843_v12, 6 }
 0x37d   :  { %v3436_v34 = vrot.slane %v3401_v25, 4  ;;  %v3085_v47 = vpop.f32.mrf.mxu0 }
 0x37e   :  { %v3511_v28 = vmul.f32 %v7134_v45, %v3510_v32  ;;  %v3098_v50 = vadd.f32 %v3097_v42, %v3084_v7 }
 0x37f   :  { %v3437_v49 = vadd.f32 %v3436_v34, %v3401_v25  ;;  %v3111_v43 = vpop.f32.mrf.mxu2  ;;  %v3099_v55 = vpop.f32.mrf.mxu1 }
 0x380   :  { %v3515_v40 = vsel %vm3514_vm15, %v7134_v45, %v3511_v28  ;;  %v3112_v25 = vadd.f32 %v3111_v43, %v3098_v50  ;;  %vm3590_vm15 = vcmask 1043456  }
 0x381   :  { %v3438_v8 = vrot.slane %v3437_v49, 2  ;;  %v3071_v58 = vpop.f32.mrf.mxu3  ;;  %v3575_v19 = vrot.slane %v3515_v40, 6 }
 0x382   :  { %v3072_v31 = vadd.f32 %v3071_v58, %v1544_v3 }
 0x383   :  { %v3439_v44 = vadd.f32 %v3438_v8, %v3437_v49 }
 0x384   :  { %v3086_v9 = vadd.f32 %v3085_v47, %v3072_v31 }
 0x385   :  { %v3440_v54 = vrot.slane %v3439_v44, 1 }
 0x386   :  { %v3100_v60 = vadd.f32 %v3099_v55, %v3086_v9 }
 0x387   :  { %v3441_v11 = vadd.f32 %v3440_v54, %v3439_v44  ;;  %v3113_v63 = vpop.f32.mrf.mxu2  ;;  %v3331_v44 = vrot.slane %v3112_v25, 4 }
 0x388   :  { %v7928_v59 = vadd.f32 %v3113_v63, %v3100_v60 }
 0x389   :  { %v3473_v35 = vmul.f32 0.125, %v3441_v11  ;;  %v3332_v3 = vadd.f32 %v3331_v44, %v3112_v25 }
 0x38b   :  { %v3481_v14 = vadd.f32 0.8, %v3473_v35 }
 0x38d   :  { %7135 = vrsqrt.f32 %v3481_v14  ;;  %vm3522_vm0 = vweird.f32 %v3481_v14 }
 0x393   :  { %v7136_v0 = vpop.eup %7135 }
 0x394   :  { %v3517_v1 = vmul.f32 %v7136_v0, %v3481_v14  ;;  %vm3523_vm14 = vweird.f32 %v7136_v0  ;;  %v3333_v14 = vrot.slane %v3332_v3, 2 }
 0x395   :  { %vm3524_vm1 = vmor %vm3522_vm0, %vm3523_vm14  ;;  %v3139_v36 = vpop.f32.mrf.mxu0  ;;  %vm3588_vm14 = vcmask 1045508  }
 0x396   :  { %v3518_v5 = vmul.f32 %v7136_v0, %v3517_v1  ;;  %v3334_v60 = vadd.f32 %v3333_v14, %v3332_v3  ;;  %v6298_v14 = vld [vmem:[#allocation16 + $0x170] sm:$0xf] }
 0x397   :  { %v3153_v34 = vpop.f32.mrf.mxu1 }
 0x398   :  { %v3519_v10 = vmul.f32 0.5, %v3518_v5 }
 0x399   :  { %v3125_v39 = vpop.f32.mrf.mxu3 }
 0x39a   :  { %v3520_v20 = vsub.f32 1.5, %v3519_v10  ;;  %v3126_v30 = vadd.f32 %v3125_v39, %v1545_v18 }
 0x39c   :  { %v3521_v56 = vmul.f32 %v7136_v0, %v3520_v20  ;;  %v3140_v49 = vadd.f32 %v3139_v36, %v3126_v30 }
 0x39d   :  { %v3141_v57 = vpop.f32.mrf.mxu0 }
 0x39e   :  { %v3525_v26 = vsel %vm3524_vm1, %v7136_v0, %v3521_v56  ;;  %v3154_v8 = vadd.f32 %v3153_v34, %v3140_v49  ;;  %v3335_v0 = vrot.slane %v3334_v60, 1 }
 0x39f   :  { %v3576_v15 = vrot.slane %v3525_v26, 5  ;;  %v3167_v29 = vpop.f32.mrf.mxu2  ;;  %v3155_v43 = vpop.f32.mrf.mxu1 }
 0x3a0   :  { %v3168_v42 = vadd.f32 %v3167_v29, %v3154_v8  ;;  %v3336_v1 = vadd.f32 %v3335_v0, %v3334_v60  ;;  %v6362_v60 = vld [vmem:[#allocation16 + $0x1f0] sm:$0xf] }
 0x3a1   :  { %v3582_v13 = vsel %vm1214_vm10, %v3575_v19, %v3576_v15  ;;  %v3127_v45 = vpop.f32.mrf.mxu3 }
 0x3a2   :  { %v7934_v24 = vsel %vm1216_vm11, %v7916_v48, %v3582_v13  ;;  %v3338_v54 = vrot.slane %v3168_v42, 4  ;;  %v3128_v11 = vadd.f32 %v3127_v45, %v1545_v18  ;;  %v7943_v5 = vmul.f32 0.125, %v3336_v1 }
 0x3a4   :  { %v3339_v58 = vadd.f32 %v3338_v54, %v3168_v42  ;;  %v3142_v35 = vadd.f32 %v3141_v57, %v3128_v11  ;;  %v7946_v40 = vsub.f32 %v3112_v25, %v7943_v5 }
 0x3a6   :  { %v3340_v31 = vrot.slane %v3339_v58, 2  ;;  %v3156_v47 = vadd.f32 %v3155_v43, %v3142_v35  ;;  %v3402_v36 = vmul.f32 %v7946_v40, %v7946_v40  ;;  %v6984_v35 = vld [vmem:[#allocation16 + $0x74] sm:$0xf0] }
 0x3a7   :  { %v3169_v9 = vpop.f32.mrf.mxu2 }
 0x3a8   :  { %v7936_v41 = vadd.f32 %v3169_v9, %v3156_v47  ;;  %v3341_v48 = vadd.f32 %v3340_v31, %v3339_v58  ;;  %v3443_v49 = vrot.slane %v3402_v36, 4  ;;  %v6170_v58 = vld [vmem:[#allocation16 + $0x70] sm:$0xf]  ;;  %v7000_v47 = vld [vmem:[#allocation16 + $0xf4] sm:$0xf0] }
 0x3a9   :  { %v6171_v43 = vor.u32 %v6984_v35, %v6170_v58  ;;  %v6234_v31 = vld [vmem:[#allocation16 + $0xf0] sm:$0xf]  ;;  %v6996_v58 = vld [vmem:[#allocation16 + $0xd4] sm:$0xf0] }
 0x3aa   :  { %v3342_v55 = vrot.slane %v3341_v48, 1  ;;  %v3444_v3 = vadd.f32 %v3443_v49, %v3402_v36  ;;  %v6290_v36 = vld [vmem:[#allocation16 + $0x160] sm:$0xf]  ;;  %v6282_v35 = vld [vmem:[#allocation16 + $0x150] sm:$0xf] }
 0x3ab   :  { %4490 = vmatpush.bf16.msra.mxu3 %v6171_v43 }
 0x3ac   :  { %v3343_v63 = vadd.f32 %v3342_v55, %v3341_v48  ;;  %v6235_v48 = vor.u32 %v7000_v47, %v6234_v31  ;;  %v7016_v55 = vld [vmem:[#allocation16 + $0x174] sm:$0xf0]  ;;  %v3445_v0 = vrot.slane %v3444_v3, 2 }
 0x3ad   :  { %v7012_v47 = vld [vmem:[#allocation16 + $0x154] sm:$0xf0] }
 0x3ae   :  { %v7938_v61 = vmul.f32 0.125, %v3343_v63  ;;  %v7032_v63 = vld [vmem:[#allocation16 + $0x1f4] sm:$0xf0]  ;;  %4504 = vmatpush.bf16.msrb.mxu0 %v6235_v48  ;;  %v3446_v49 = vadd.f32 %v3445_v0, %v3444_v3 }
 0x3b0   :  { %v7951_v39 = vsub.f32 %v3168_v42, %v7938_v61 }
 0x3b2   :  { %v3403_v25 = vmul.f32 %v7951_v39, %v7951_v39 }
 0x3b4   :  { %v3450_v42 = vrot.slane %v3403_v25, 4 }
 0x3b5   :  { %v3195_v28 = vpop.f32.mrf.mxu0 }
 0x3b6   :  { %v3451_v1 = vadd.f32 %v3450_v42, %v3403_v25  ;;  %v7969_v42 = vld [vmem:[%s8304_s12] sm:$0xff] }
 0x3b7   :  { %v3209_v20 = vpop.f32.mrf.mxu1 }
 0x3b8   :  { %v3452_v25 = vrot.slane %v3451_v1, 2 }
 0x3b9   :  { %v3181_v10 = vpop.f32.mrf.mxu3 }
 0x3ba   :  { %v3182_v7 = vadd.f32 %v3181_v10, %v1546_v2  ;;  %v3453_v48 = vadd.f32 %v3452_v25, %v3451_v1 }
 0x3bc   :  { %v3196_v18 = vadd.f32 %v3195_v28, %v3182_v7  ;;  %v6363_v28 = vor.u32 %v7032_v63, %v6362_v60  ;;  %v6162_v7 = vld [vmem:[#allocation16 + $0x60] sm:$0xf]  ;;  %v7028_v60 = vld [vmem:[#allocation16 + $0x1d4] sm:$0xf0]  ;;  %v3454_v25 = vrot.slane %v3453_v48, 1 }
 0x3bd   :  { %v3197_v30 = vpop.f32.mrf.mxu0 }
 0x3be   :  { %v3210_v50 = vadd.f32 %v3209_v20, %v3196_v18  ;;  %v6982_v20 = vld [vmem:[#allocation16 + $0x64] sm:$0xf0]  ;;  %4532 = vmatpush.bf16.msrb.mxu2 %v6363_v28  ;;  %v6146_v28 = vld [vmem:[#allocation16 + $0x40] sm:$0xf] }
 0x3bf   :  { %v3223_v56 = vpop.f32.mrf.mxu2  ;;  %v3211_v29 = vpop.f32.mrf.mxu1  ;;  %v6163_v18 = vor.u32 %v6982_v20, %v6162_v7  ;;  %v6978_v20 = vld [vmem:[#allocation16 + $0x44] sm:$0xf0] }
 0x3c0   :  { %v3224_v26 = vadd.f32 %v3223_v56, %v3210_v50  ;;  %v6226_v56 = vld [vmem:[#allocation16 + $0xe0] sm:$0xf]  ;;  %v6998_v50 = vld [vmem:[#allocation16 + $0xe4] sm:$0xf0] }
 0x3c1   :  { %v3183_v12 = vpop.f32.mrf.mxu3  ;;  %4491 = vmatpush.bf16.msra.mxu3 %v6163_v18  ;;  %v6210_v18 = vld [vmem:[#allocation16 + $0xc0] sm:$0xf] }
 0x3c2   :  { %v3345_v19 = vrot.slane %v3224_v26, 4  ;;  %v3184_v15 = vadd.f32 %v3183_v12, %v1546_v2  ;;  %v6299_v2 = vor.u32 %v7016_v55, %v6298_v14  ;;  %v6346_v14 = vld [vmem:[#allocation16 + $0x1d0] sm:$0xf]  ;;  %v6283_v55 = vor.u32 %v7012_v47, %v6282_v35  ;;  %v6976_v35 = vld [vmem:[#allocation16 + $0x34] sm:$0xf0] }
 0x3c4   :  { %v3346_v34 = vadd.f32 %v3345_v19, %v3224_v26  ;;  %v3198_v13 = vadd.f32 %v3197_v30, %v3184_v15  ;;  %4518 = vmatpush.bf16.msrb.mxu1 %v6299_v2  ;;  %v6227_v15 = vor.u32 %v6998_v50, %v6226_v56  ;;  %v7014_v30 = vld [vmem:[#allocation16 + $0x164] sm:$0xf0]  ;;  %v6347_v2 = vor.u32 %v7028_v60, %v6346_v14  ;;  %v6992_v14 = vld [vmem:[#allocation16 + $0xb4] sm:$0xf0]  ;;  %v6586_v19 = vld [vmem:[#allocation16 + $0x3b0] sm:$0xf] }
 0x3c5   :  { %v6994_v56 = vld [vmem:[#allocation16 + $0xc4] sm:$0xf0]  ;;  %v7008_v60 = vld [vmem:[#allocation16 + $0x134] sm:$0xf0] }
 0x3c6   :  { %v3347_v8 = vrot.slane %v3346_v34, 2  ;;  %v3212_v44 = vadd.f32 %v3211_v29, %v3198_v13  ;;  %v7030_v13 = vld [vmem:[#allocation16 + $0x1e4] sm:$0xf0]  ;;  %v6291_v29 = vor.u32 %v7014_v30, %v6290_v36  ;;  %4505 = vmatpush.bf16.msrb.mxu0 %v6227_v15  ;;  %v6147_v15 = vor.u32 %v6978_v20, %v6146_v28  ;;  %v6274_v30 = vld [vmem:[#allocation16 + $0x140] sm:$0xf] }
 0x3c7   :  { %v3225_v45 = vpop.f32.mrf.mxu2  ;;  %v6211_v1 = vor.u32 %v6994_v56, %v6210_v18  ;;  %v6330_v28 = vld [vmem:[#allocation16 + $0x1b0] sm:$0xf]  ;;  %v3455_v20 = vadd.f32 %v3454_v25, %v3453_v48  ;;  %v7006_v25 = vld [vmem:[#allocation16 + $0x124] sm:$0xf0] }
 0x3c8   :  { %v7955_v54 = vadd.f32 %v3225_v45, %v3212_v44  ;;  %v3348_v11 = vadd.f32 %v3347_v8, %v3346_v34  ;;  %v6354_v34 = vld [vmem:[#allocation16 + $0x1e0] sm:$0xf]  ;;  %v6154_v45 = vld [vmem:[#allocation16 + $0x50] sm:$0xf]  ;;  %4519 = vmatpush.bf16.msrb.mxu1 %v6291_v29 }
 0x3c9   :  { %v6355_v8 = vor.u32 %v7030_v13, %v6354_v34  ;;  %v7010_v34 = vld [vmem:[#allocation16 + $0x144] sm:$0xf0] }
 0x3ca   :  { %v3349_v57 = vrot.slane %v3348_v11, 1 }
 0x3cb   :  { %4533 = vmatpush.bf16.msrb.mxu2 %v6355_v8  ;;  %v6275_v8 = vor.u32 %v7010_v34, %v6274_v30  ;;  %v6194_v30 = vld [vmem:[#allocation16 + $0xa0] sm:$0xf] }
 0x3cc   :  { %v3350_v9 = vadd.f32 %v3349_v57, %v3348_v11  ;;  %v6980_v11 = vld [vmem:[#allocation16 + $0x54] sm:$0xf0]  ;;  %v1547_v57 = vperm.slane %v7969_v42, 7  ;;  %4520 = vmatpush.bf16.msrb.mxu1 %v6283_v55  ;;  %v6266_v55 = vld [vmem:[#allocation16 + $0x130] sm:$0xf] }
 0x3cd   :  { %v6155_v3 = vor.u32 %v6980_v11, %v6154_v45  ;;  %v7026_v45 = vld [vmem:[#allocation16 + $0x1c4] sm:$0xf0] }
 0x3ce   :  { %v7957_v10 = vmul.f32 0.125, %v3350_v9  ;;  %v3447_v9 = vrot.slane %v3446_v49, 1 }
 0x3cf   :  { %4492 = vmatpush.bf16.msra.mxu3 %v6155_v3  ;;  %4534 = vmatpush.bf16.msrb.mxu2 %v6347_v2  ;;  %v6267_v2 = vor.u32 %v7008_v60, %v6266_v55 }
 0x3d0   :  { %v7960_v12 = vsub.f32 %v3224_v26, %v7957_v10  ;;  %v6218_v26 = vld [vmem:[#allocation16 + $0xd0] sm:$0xf]  ;;  %v3448_v13 = vadd.f32 %v3447_v9, %v3446_v49  ;;  %4521 = vmatpush.bf16.msrb.mxu1 %v6275_v8 }
 0x3d1   :  { %v6219_v31 = vor.u32 %v6996_v58, %v6218_v26  ;;  %v6138_v58 = vld [vmem:[#allocation16 + $0x30] sm:$0xf] }
 0x3d2   :  { %v3404_v44 = vmul.f32 %v7960_v12, %v7960_v12  ;;  %v6139_v47 = vor.u32 %v6976_v35, %v6138_v58  ;;  %v7022_v35 = vld [vmem:[#allocation16 + $0x1a4] sm:$0xf0] }
 0x3d3   :  { %4506 = vmatpush.bf16.msrb.mxu0 %v6219_v31  ;;  %4493 = vmatpush.bf16.msra.mxu3 %v6147_v15  ;;  %v6130_v15 = vld [vmem:[#allocation16 + $0x20] sm:$0xf] }
 0x3d4   :  { %v3457_v43 = vrot.slane %v3404_v44, 4  ;;  %4522 = vmatpush.bf16.msrb.mxu1 %v6267_v2  ;;  %v6250_v2 = vld [vmem:[#allocation16 + $0x110] sm:$0xf] }
 0x3d6   :  { %v3458_v63 = vadd.f32 %v3457_v43, %v3404_v44  ;;  %v6338_v44 = vld [vmem:[#allocation16 + $0x1c0] sm:$0xf]  ;;  %v6202_v43 = vld [vmem:[#allocation16 + $0xb0] sm:$0xf] }
 0x3d7   :  { %4507 = vmatpush.bf16.msrb.mxu0 %v6211_v1  ;;  %v6339_v3 = vor.u32 %v7026_v45, %v6338_v44  ;;  %4494 = vmatpush.bf16.msra.mxu3 %v6139_v47  ;;  %v6974_v1 = vld [vmem:[#allocation16 + $0x24] sm:$0xf0]  ;;  %v6322_v45 = vld [vmem:[#allocation16 + $0x1a0] sm:$0xf]  ;;  %v6972_v47 = vld [vmem:[#allocation16 + $0x14] sm:$0xf0] }
 0x3d8   :  { %v3459_v50 = vrot.slane %v3458_v63, 2  ;;  %v6131_v8 = vor.u32 %v6974_v1, %v6130_v15  ;;  %v6990_v44 = vld [vmem:[#allocation16 + $0xa4] sm:$0xf0]  ;;  %v6323_v42 = vor.u32 %v7022_v35, %v6322_v45 }
 0x3d9   :  { %4535 = vmatpush.bf16.msrb.mxu2 %v6339_v3  ;;  %v6195_v48 = vor.u32 %v6990_v44, %v6194_v30  ;;  %v6114_v30 = vld [vmem:[#allocation16] sm:$0xf] }
 0x3da   :  { %v3251_v36 = vpop.f32.mrf.mxu0  ;;  %v3460_v11 = vadd.f32 %v3459_v50, %v3458_v63  ;;  %v7024_v63 = vld [vmem:[#allocation16 + $0x1b4] sm:$0xf0] }
 0x3db   :  { %v6331_v56 = vor.u32 %v7024_v63, %v6330_v28  ;;  %4495 = vmatpush.bf16.msra.mxu3 %v6131_v8  ;;  %v7004_v28 = vld [vmem:[#allocation16 + $0x114] sm:$0xf0]  ;;  %v6314_v63 = vld [vmem:[#allocation16 + $0x190] sm:$0xf] }
 0x3dc   :  { %v3265_v26 = vpop.f32.mrf.mxu1  ;;  %v3461_v49 = vrot.slane %v3460_v11, 1 }
 0x3dd   :  { %4536 = vmatpush.bf16.msrb.mxu2 %v6331_v56 }
 0x3de   :  { %v3237_v0 = vpop.f32.mrf.mxu3  ;;  %v3462_v50 = vadd.f32 %v3461_v49, %v3460_v11  ;;  %v3475_v11 = vmul.f32 0.125, %v3455_v20  ;;  %v6186_v49 = vld [vmem:[#allocation16 + $0x90] sm:$0xf] }
 0x3df   :  { %v3238_v7 = vadd.f32 %v3237_v0, %v1547_v57  ;;  %v6203_v0 = vor.u32 %v6992_v14, %v6202_v43 }
 0x3e0   :  { %v7982_v20 = vadd.f32 0.8, %v3475_v11  ;;  %v7002_v11 = vld [vmem:[#allocation16 + $0x104] sm:$0xf0] }
 0x3e1   :  { %v3252_v29 = vadd.f32 %v3251_v36, %v3238_v7  ;;  %v3474_v7 = vmul.f32 0.125, %v3448_v13  ;;  %4508 = vmatpush.bf16.msrb.mxu0 %v6203_v0  ;;  %v6258_v13 = vld [vmem:[#allocation16 + $0x120] sm:$0xf]  ;;  %4537 = vmatpush.bf16.msrb.mxu2 %v6323_v42  ;;  %v6426_v42 = vld [vmem:[#allocation16 + $0x270] sm:$0xf] }
 0x3e2   :  { %v6259_v58 = vor.u32 %v7006_v25, %v6258_v13  ;;  %v6242_v25 = vld [vmem:[#allocation16 + $0x100] sm:$0xf]  ;;  %vm3542_vm5 = vweird.f32 %v7982_v20 }
 0x3e3   :  { %v3266_v31 = vadd.f32 %v3265_v26, %v3252_v29  ;;  %v3476_v26 = vmul.f32 0.125, %v3462_v50  ;;  %v7980_v43 = vadd.f32 0.8, %v3474_v7  ;;  %v6251_v50 = vor.u32 %v7004_v28, %v6250_v2 }
 0x3e4   :  { %v3279_v9 = vpop.f32.mrf.mxu2  ;;  %4523 = vmatpush.bf16.msrb.mxu1 %v6259_v58  ;;  %v3267_v15 = vpop.f32.mrf.mxu1  ;;  %v6243_v35 = vor.u32 %v7002_v11, %v6242_v25  ;;  %v6610_v11 = vld [vmem:[#allocation16 + $0x3e0] sm:$0xf] }
 0x3e5   :  { %v7974_v18 = vadd.f32 %v3279_v9, %v3266_v31  ;;  %v3253_v31 = vpop.f32.mrf.mxu0  ;;  %4509 = vmatpush.bf16.msrb.mxu0 %v6195_v48  ;;  %v6988_v9 = vld [vmem:[#allocation16 + $0x94] sm:$0xf0]  ;;  %v7984_v7 = vadd.f32 0.8, %v3476_v26  ;;  %v6986_v48 = vld [vmem:[#allocation16 + $0x84] sm:$0xf0]  ;;  %7137 = vrsqrt.f32 %v7980_v43  ;;  %vm3532_vm2 = vweird.f32 %v7980_v43 }
 0x3e6   :  { %v3239_v36 = vpop.f32.mrf.mxu3  ;;  %v6187_v0 = vor.u32 %v6988_v9, %v6186_v49  ;;  %v6306_v26 = vld [vmem:[#allocation16 + $0x180] sm:$0xf]  ;;  %7139 = vrsqrt.f32 %v7982_v20  ;;  %v6554_v49 = vld [vmem:[#allocation16 + $0x370] sm:$0xf]  ;;  %v7080_v9 = vld [vmem:[#allocation16 + $0x374] sm:$0xf0] }
 0x3e7   :  { %v3352_v34 = vrot.slane %v7974_v18, 4  ;;  %v3240_v29 = vadd.f32 %v3239_v36, %v1547_v57  ;;  %v6122_v57 = vld [vmem:[#allocation16 + $0x10] sm:$0xf]  ;;  %v7020_v36 = vld [vmem:[#allocation16 + $0x194] sm:$0xf0]  ;;  %7141 = vrsqrt.f32 %v7984_v7  ;;  %vm3552_vm8 = vweird.f32 %v7984_v7 }
 0x3e8   :  { %v6123_v60 = vor.u32 %v6972_v47, %v6122_v57  ;;  %v6315_v1 = vor.u32 %v7020_v36, %v6314_v63  ;;  %4524 = vmatpush.bf16.msrb.mxu1 %v6251_v50  ;;  %v7048_v57 = vld [vmem:[#allocation16 + $0x274] sm:$0xf0]  ;;  %v6490_v47 = vld [vmem:[#allocation16 + $0x2f0] sm:$0xf]  ;;  %v6555_v50 = vor.u32 %v7080_v9, %v6554_v49 }
 0x3e9   :  { %v3353_v3 = vadd.f32 %v3352_v34, %v7974_v18  ;;  %v3254_v55 = vadd.f32 %v3253_v31, %v3240_v29  ;;  %4510 = vmatpush.bf16.msrb.mxu0 %v6187_v0  ;;  %v6970_v34 = vld [vmem:[#allocation16 + $0x4] sm:$0xf0]  ;;  %v6178_v29 = vld [vmem:[#allocation16 + $0x80] sm:$0xf]  ;;  %v6618_v63 = vld [vmem:[#allocation16 + $0x3f0] sm:$0xf] }
 0x3ea   :  { %4496 = vmatpush.bf16.msra.mxu3 %v6123_v60  ;;  %v6115_v13 = vor.u32 %v6970_v34, %v6114_v30  ;;  %4538 = vmatpush.bf16.msrb.mxu2 %v6315_v1  ;;  %v6179_v45 = vor.u32 %v6986_v48, %v6178_v29  ;;  %v7064_v60 = vld [vmem:[#allocation16 + $0x2f4] sm:$0xf0]  ;;  %v7046_v1 = vld [vmem:[#allocation16 + $0x264] sm:$0xf0] }
 0x3eb   :  { %v3354_v14 = vrot.slane %v3353_v3, 2  ;;  %v3268_v8 = vadd.f32 %v3267_v15, %v3254_v55  ;;  %v6427_v55 = vor.u32 %v7048_v57, %v6426_v42  ;;  %v6491_v28 = vor.u32 %v7064_v60, %v6490_v47  ;;  %v6418_v15 = vld [vmem:[#allocation16 + $0x260] sm:$0xf]  ;;  %v7999_v48 = vpop.eup %7137  ;;  %v7044_v42 = vld [vmem:[#allocation16 + $0x254] sm:$0xf0] }
 0x3ec   :  { %4525 = vmatpush.bf16.msrb.mxu1 %v6243_v35  ;;  %v6419_v29 = vor.u32 %v7046_v1, %v6418_v15  ;;  %v6474_v47 = vld [vmem:[#allocation16 + $0x2d0] sm:$0xf]  ;;  %v3527_v60 = vmul.f32 %v7999_v48, %v7980_v43  ;;  %vm3533_vm10 = vweird.f32 %v7999_v48 }
 0x3ed   :  { %v3355_v56 = vadd.f32 %v3354_v14, %v3353_v3  ;;  %v7018_v3 = vld [vmem:[#allocation16 + $0x184] sm:$0xf0]  ;;  %v3281_v14 = vpop.f32.mrf.mxu2  ;;  %4511 = vmatpush.bf16.msrb.mxu0 %v6179_v45  ;;  %vm3534_vm4 = vmor %vm3532_vm2, %vm3533_vm10 }
 0x3ee   :  { %v6307_v31 = vor.u32 %v7018_v3, %v6306_v26  ;;  %4497 = vmatpush.bf16.msra.mxu3 %v6115_v13  ;;  %v7988_v0 = vadd.f32 %v3281_v14, %v3268_v8  ;;  %v6482_v8 = vld [vmem:[#allocation16 + $0x2e0] sm:$0xf]  ;;  %v7078_v45 = vld [vmem:[#allocation16 + $0x364] sm:$0xf0]  ;;  %v8001_v3 = vpop.eup %7139  ;;  %v7060_v14 = vld [vmem:[#allocation16 + $0x2d4] sm:$0xf0] }
 0x3ef   :  { %v3356_v44 = vrot.slane %v3355_v56, 1  ;;  %v6546_v13 = vld [vmem:[#allocation16 + $0x360] sm:$0xf]  ;;  %v7094_v26 = vld [vmem:[#allocation16 + $0x3e4] sm:$0xf0]  ;;  %v6475_v9 = vor.u32 %v7060_v14, %v6474_v47  ;;  %v8009_v15 = vpop.eup %7141  ;;  %vm3543_vm11 = vweird.f32 %v8001_v3 }
 0x3f0   :  { %4539 = vmatpush.bf16.msrb.mxu2 %v6307_v31  ;;  %4574 = vmatpush.bf16.msra.mxu1 %v6555_v50  ;;  %v6611_v35 = vor.u32 %v7094_v26, %v6610_v11  ;;  %v6410_v31 = vld [vmem:[#allocation16 + $0x250] sm:$0xf]  ;;  %v6530_v11 = vld [vmem:[#allocation16 + $0x340] sm:$0xf]  ;;  %v3528_v26 = vmul.f32 %v7999_v48, %v3527_v60  ;;  %vm3553_vm3 = vweird.f32 %v8009_v15  ;;  %vm3544_vm6 = vmor %vm3542_vm5, %vm3543_vm11 }
 0x3f1   :  { %v3357_v58 = vadd.f32 %v3356_v44, %v3355_v56  ;;  %v7096_v56 = vld [vmem:[#allocation16 + $0x3f4] sm:$0xf0]  ;;  %4560 = vmatpush.bf16.msra.mxu0 %v6491_v28  ;;  %v7062_v44 = vld [vmem:[#allocation16 + $0x2e4] sm:$0xf0]  ;;  %v6411_v57 = vor.u32 %v7044_v42, %v6410_v31  ;;  %vm3554_vm9 = vmor %vm3552_vm8, %vm3553_vm3 }
 0x3f2   :  { %4546 = vmatpush.bf16.msrb.mxu3 %v6427_v55  ;;  %v6619_v36 = vor.u32 %v7096_v56, %v6618_v63  ;;  %v6483_v25 = vor.u32 %v7062_v44, %v6482_v8  ;;  %v6538_v55 = vld [vmem:[#allocation16 + $0x350] sm:$0xf]  ;;  %v7076_v28 = vld [vmem:[#allocation16 + $0x354] sm:$0xf0]  ;;  %v3537_v56 = vmul.f32 %v8001_v3, %v7982_v20  ;;  %v6402_v8 = vld [vmem:[#allocation16 + $0x240] sm:$0xf] }
 0x3f3   :  { %v7990_v2 = vmul.f32 0.125, %v3357_v58  ;;  %v6547_v58 = vor.u32 %v7078_v45, %v6546_v13  ;;  %v6602_v63 = vld [vmem:[#allocation16 + $0x3d0] sm:$0xf]  ;;  %v6539_v50 = vor.u32 %v7076_v28, %v6538_v55  ;;  %v7042_v44 = vld [vmem:[#allocation16 + $0x244] sm:$0xf0] }
 0x3f4   :  { %4588 = vmatpush.bf16.msra.mxu2 %v6619_v36  ;;  %v7092_v36 = vld [vmem:[#allocation16 + $0x3d4] sm:$0xf0]  ;;  %v6403_v13 = vor.u32 %v7042_v44, %v6402_v8  ;;  %v6466_v45 = vld [vmem:[#allocation16 + $0x2c0] sm:$0xf]  ;;  %v3538_v47 = vmul.f32 %v8001_v3, %v3537_v56  ;;  %v6394_v28 = vld [vmem:[#allocation16 + $0x230] sm:$0xf] }
 0x3f5   :  { %v7995_v30 = vsub.f32 %v7974_v18, %v7990_v2  ;;  %v3381_v34 = vsub.f32 %v7988_v0, %v7990_v2  ;;  %4561 = vmatpush.bf16.msra.mxu0 %v6483_v25  ;;  %4575 = vmatpush.bf16.msra.mxu1 %v6547_v58  ;;  %v7058_v25 = vld [vmem:[#allocation16 + $0x2c4] sm:$0xf0]  ;;  %v6522_v8 = vld [vmem:[#allocation16 + $0x330] sm:$0xf]  ;;  %v7072_v44 = vld [vmem:[#allocation16 + $0x334] sm:$0xf0] }
 0x3f6   :  { %4547 = vmatpush.bf16.msrb.mxu3 %v6419_v29  ;;  %v6603_v29 = vor.u32 %v7092_v36, %v6602_v63  ;;  %v6467_v42 = vor.u32 %v7058_v25, %v6466_v45  ;;  %v7074_v58 = vld [vmem:[#allocation16 + $0x344] sm:$0xf0]  ;;  %v7040_v63 = vld [vmem:[#allocation16 + $0x234] sm:$0xf0]  ;;  %v6458_v36 = vld [vmem:[#allocation16 + $0x2b0] sm:$0xf] }
 0x3f7   :  { %v3405_v18 = vmul.f32 %v7995_v30, %v7995_v30  ;;  %v6531_v14 = vor.u32 %v7074_v58, %v6530_v11  ;;  %v6395_v60 = vor.u32 %v7040_v63, %v6394_v28  ;;  %v8015_v45 = vmul.f32 0.5, %v3528_v26  ;;  %v6386_v58 = vld [vmem:[#allocation16 + $0x220] sm:$0xf]  ;;  %v7054_v28 = vld [vmem:[#allocation16 + $0x2a4] sm:$0xf0]  ;;  %v8041_v20 = vld [vmem:[%s8306_s14] sm:$0xff] }
 0x3f8   :  { %4589 = vmatpush.bf16.msra.mxu2 %v6611_v35  ;;  %v6594_v35 = vld [vmem:[#allocation16 + $0x3c0] sm:$0xf]  ;;  %v6523_v11 = vor.u32 %v7072_v44, %v6522_v8  ;;  %v6378_v8 = vld [vmem:[#allocation16 + $0x210] sm:$0xf]  ;;  %v7036_v44 = vld [vmem:[#allocation16 + $0x214] sm:$0xf0] }
 0x3f9   :  { %v3464_v49 = vrot.slane %v3405_v18, 4  ;;  %4562 = vmatpush.bf16.msra.mxu0 %v6475_v9  ;;  %4576 = vmatpush.bf16.msra.mxu1 %v6539_v50  ;;  %v7056_v9 = vld [vmem:[#allocation16 + $0x2b4] sm:$0xf0]  ;;  %v6514_v63 = vld [vmem:[#allocation16 + $0x320] sm:$0xf]  ;;  %v3530_v32 = vsub.f32 1.5, %v8015_v45 }
 0x3fa   :  { %4548 = vmatpush.bf16.msrb.mxu3 %v6411_v57  ;;  %v7090_v57 = vld [vmem:[#allocation16 + $0x3c4] sm:$0xf0]  ;;  %v6459_v25 = vor.u32 %v7056_v9, %v6458_v36  ;;  %v7088_v50 = vld [vmem:[#allocation16 + $0x3b4] sm:$0xf0]  ;;  %v8321_v0 = vperm.slane %v8041_v20, 7  ;;  %v8323_v6 = vperm.slane %v8041_v20, 0 }
 0x3fb   :  { %v3465_v1 = vadd.f32 %v3464_v49, %v3405_v18  ;;  %v3547_v18 = vmul.f32 %v8009_v15, %v7984_v7  ;;  %v6595_v49 = vor.u32 %v7090_v57, %v6594_v35  ;;  %v7038_v35 = vld [vmem:[#allocation16 + $0x224] sm:$0xf0]  ;;  %v6450_v57 = vld [vmem:[#allocation16 + $0x2a0] sm:$0xf]  ;;  %v8325_v23 = vperm.slane %v8041_v20, 1 }
 0x3fc   :  { %4590 = vmatpush.bf16.msra.mxu2 %v6603_v29  ;;  %v8017_v29 = vmul.f32 0.5, %v3538_v47  ;;  %v6387_v26 = vor.u32 %v7038_v35, %v6386_v58  ;;  %v6451_v36 = vor.u32 %v7054_v28, %v6450_v57  ;;  %v7070_v9 = vld [vmem:[#allocation16 + $0x324] sm:$0xf0]  ;;  %v6578_v47 = vld [vmem:[#allocation16 + $0x3a0] sm:$0xf] }
 0x3fd   :  { %v3466_v31 = vrot.slane %v3465_v1, 2  ;;  %4563 = vmatpush.bf16.msra.mxu0 %v6467_v42  ;;  %4577 = vmatpush.bf16.msra.mxu1 %v6531_v14  ;;  %v6370_v35 = vld [vmem:[#allocation16 + $0x200] sm:$0xf]  ;;  %v7034_v57 = vld [vmem:[#allocation16 + $0x204] sm:$0xf0] }
 0x3fe   :  { %4549 = vmatpush.bf16.msrb.mxu3 %v6403_v13  ;;  %v6434_v28 = vld [vmem:[#allocation16 + $0x280] sm:$0xf] }
 0x3ff   :  { %v3467_v55 = vadd.f32 %v3466_v31, %v3465_v1  ;;  %v3548_v1 = vmul.f32 %v8009_v15, %v3547_v18  ;;  %v6587_v31 = vor.u32 %v7088_v50, %v6586_v19  ;;  %v3540_v18 = vsub.f32 1.5, %v8017_v29  ;;  %v7052_v50 = vld [vmem:[#allocation16 + $0x294] sm:$0xf0] }
 0x400   :  { %4591 = vmatpush.bf16.msra.mxu2 %v6595_v49  ;;  %v6515_v19 = vor.u32 %v7070_v9, %v6514_v63  ;;  %v7068_v29 = vld [vmem:[#allocation16 + $0x314] sm:$0xf0]  ;;  %v7050_v63 = vld [vmem:[#allocation16 + $0x284] sm:$0xf0] }
 0x401   :  { %v3468_v56 = vrot.slane %v3467_v55, 1  ;;  %4564 = vmatpush.bf16.msra.mxu0 %v6459_v25  ;;  %v3549_v14 = vmul.f32 0.5, %v3548_v1  ;;  %4578 = vmatpush.bf16.msra.mxu1 %v6523_v11  ;;  %v6442_v25 = vld [vmem:[#allocation16 + $0x290] sm:$0xf]  ;;  %v7084_v11 = vld [vmem:[#allocation16 + $0x394] sm:$0xf0] }
 0x402   :  { %4550 = vmatpush.bf16.msrb.mxu3 %v6395_v60  ;;  %v6443_v45 = vor.u32 %v7052_v50, %v6442_v25  ;;  %v6570_v1 = vld [vmem:[#allocation16 + $0x390] sm:$0xf]  ;;  %v3531_v25 = vmul.f32 %v7999_v48, %v3530_v32  ;;  %v3541_v50 = vmul.f32 %v8001_v3, %v3540_v18 }
 0x403   :  { %v3469_v13 = vadd.f32 %v3468_v56, %v3467_v55  ;;  %v7086_v55 = vld [vmem:[#allocation16 + $0x3a4] sm:$0xf0]  ;;  %v6379_v56 = vor.u32 %v7036_v44, %v6378_v8  ;;  %v6571_v58 = vor.u32 %v7084_v11, %v6570_v1  ;;  %v3550_v9 = vsub.f32 1.5, %v3549_v14 }
 0x404   :  { %4592 = vmatpush.bf16.msra.mxu2 %v6587_v31  ;;  %v6579_v60 = vor.u32 %v7086_v55, %v6578_v47  ;;  %v6371_v47 = vor.u32 %v7034_v57, %v6370_v35  ;;  %v6562_v55 = vld [vmem:[#allocation16 + $0x380] sm:$0xf]  ;;  %v7082_v8 = vld [vmem:[#allocation16 + $0x384] sm:$0xf0]  ;;  %v3535_v18 = vsel %vm3534_vm4, %v7999_v48, %v3531_v25  ;;  %v3545_v43 = vsel %vm3544_vm6, %v8001_v3, %v3541_v50  ;;  %v8072_v25 = vld [vmem:[#allocation16 + $0x68] sm:$0xf0] }
 0x405   :  { %v3477_v42 = vmul.f32 0.125, %v3469_v13  ;;  %v6506_v13 = vld [vmem:[#allocation16 + $0x310] sm:$0xf]  ;;  %4565 = vmatpush.bf16.msra.mxu0 %v6451_v36  ;;  %4579 = vmatpush.bf16.msra.mxu1 %v6515_v19  ;;  %v6435_v36 = vor.u32 %v7050_v63, %v6434_v28  ;;  %v3551_v14 = vmul.f32 %v8009_v15, %v3550_v9  ;;  %v3578_v1 = vrot.slane %v3545_v43, 3  ;;  %v8050_v63 = vld [vmem:[#allocation16 + $0x74] sm:$0xf] }
 0x406   :  { %4551 = vmatpush.bf16.msrb.mxu3 %v6387_v26  ;;  %v6507_v31 = vor.u32 %v7068_v29, %v6506_v13  ;;  %v6498_v26 = vld [vmem:[#allocation16 + $0x300] sm:$0xf]  ;;  %v3577_v29 = vrot.slane %v3535_v18, 4  ;;  %v3284_v9 = vld [vmem:[%s8305_s13] sm:$0xff]  ;;  %v8074_v50 = vld [vmem:[#allocation16 + $0xe4] sm:$0xf] }
 0x407   :  { %v8022_v49 = vadd.f32 0.8, %v3477_v42  ;;  %v7066_v42 = vld [vmem:[#allocation16 + $0x304] sm:$0xf0]  ;;  %v3555_v13 = vsel %vm3554_vm9, %v8009_v15, %v3551_v14  ;;  %v8076_v14 = vld [vmem:[#allocation16 + $0xe8] sm:$0xf0] }
 0x408   :  { %4593 = vmatpush.bf16.msra.mxu2 %v6579_v60  ;;  %v6499_v19 = vor.u32 %v7066_v42, %v6498_v26  ;;  %v6563_v60 = vor.u32 %v7082_v8, %v6562_v55  ;;  %v3579_v11 = vrot.slane %v3555_v13, 2  ;;  %v8052_v26 = vld [vmem:[#allocation16 + $0x78] sm:$0xf0]  ;;  %v8054_v42 = vld [vmem:[#allocation16 + $0xf4] sm:$0xf] }
 0x409   :  { %7143 = vrsqrt.f32 %v8022_v49  ;;  %4566 = vmatpush.bf16.msra.mxu0 %v6443_v45  ;;  %4580 = vmatpush.bf16.msra.mxu1 %v6507_v31  ;;  %vm3562_vm0 = vweird.f32 %v8022_v49  ;;  %v8061_v55 = vld [vmem:[#allocation16 + $0x174] sm:$0xf]  ;;  %v8063_v8 = vld [vmem:[#allocation16 + $0x178] sm:$0xf0]  ;;  %v8080_v18 = vld [vmem:[#allocation16 + $0x164] sm:$0xf] }
 0x40a   :  { %4552 = vmatpush.bf16.msrb.mxu3 %v6379_v56  ;;  %v8082_v43 = vld [vmem:[#allocation16 + $0x168] sm:$0xf0]  ;;  %v8084_v13 = vld [vmem:[#allocation16 + $0x1e4] sm:$0xf] }
 0x40c   :  { %4594 = vmatpush.bf16.msra.mxu2 %v6571_v58 }
 0x40d   :  { %4567 = vmatpush.bf16.msra.mxu0 %v6435_v36  ;;  %4581 = vmatpush.bf16.msra.mxu1 %v6499_v19  ;;  %v8065_v36 = vld [vmem:[#allocation16 + $0x1f4] sm:$0xf]  ;;  %v8067_v19 = vld [vmem:[#allocation16 + $0x1f8] sm:$0xf0] }
 0x40e   :  { %4553 = vmatpush.bf16.msrb.mxu3 %v6371_v47 }
 0x40f   :  { %v7144_v44 = vpop.eup %7143 }
 0x410   :  { %v3557_v56 = vmul.f32 %v7144_v44, %v8022_v49  ;;  %4595 = vmatpush.bf16.msra.mxu2 %v6563_v60  ;;  %vm3563_vm7 = vweird.f32 %v7144_v44  ;;  %v8056_v49 = vld [vmem:[#allocation16 + $0xf8] sm:$0xf0]  ;;  %v8069_v60 = vld [vmem:[#allocation16 + $0x64] sm:$0xf] }
 0x411   :  { %vm3564_vm1 = vmor %vm3562_vm0, %vm3563_vm7 }
 0x412   :  { %v3558_v32 = vmul.f32 %v7144_v44, %v3557_v56  ;;  %v3585_v56 = vsel %vm3584_vm12, %v3577_v29, %v3578_v1  ;;  %v8114_v1 = vld [vmem:[#allocation16 + $0x154] sm:$0xf] }
 0x414   :  { %v3559_v45 = vmul.f32 0.5, %v3558_v32 }
 0x416   :  { %v3560_v7 = vsub.f32 1.5, %v3559_v45 }
 0x418   :  { %v3561_v48 = vmul.f32 %v7144_v44, %v3560_v7 }
 0x41a   :  { %v3565_v28 = vsel %vm3564_vm1, %v7144_v44, %v3561_v48  ;;  %v8089_v48 = vld [vmem:[#allocation16 + $0x1e8] sm:$0xf0]  ;;  %v8093_v44 = vld [vmem:[#allocation16 + $0x58] sm:$0xf0] }
 0x41b   :  { %v3580_v47 = vrot.slane %v3565_v28, 1  ;;  %v8091_v28 = vld [vmem:[#allocation16 + $0x54] sm:$0xf] }
 0x41d   :  { %v3587_v32 = vsel %vm3586_vm13, %v3579_v11, %v3580_v47  ;;  %v8101_v47 = vld [vmem:[#allocation16 + $0xd4] sm:$0xf]  ;;  %v8116_v11 = vld [vmem:[#allocation16 + $0x158] sm:$0xf0] }
 0x41e   :  { %v3589_v7 = vsel %vm3588_vm14, %v3585_v56, %v3587_v32  ;;  %8319 = vst [vmem:[#allocation25_spill] sm:$0xff] %v8116_v11 }
 0x41f   :  { %v3591_v29 = vsel %vm3590_vm15, %v7934_v24, %v3589_v7  ;;  %v8112_v7 = vld [vmem:[#allocation16 + $0xd8] sm:$0xf0] }
 0x420   :  { %v8104_v56 = vmul.f32 %v3591_v29, %v3284_v9 }
 0x422   :  { %v3602_v24 = vperm.slane %v8104_v56, 7  ;;  %v3595_v32 = vperm.slane %v8104_v56, 0  ;;  %v3596_v45 = vperm.slane %v8104_v56, 1  ;;  %v3597_v16 = vperm.slane %v8104_v56, 2 }
 0x423   :  { %v3598_v58 = vperm.slane %v8104_v56, 3  ;;  %v3599_v29 = vperm.slane %v8104_v56, 4 }
 0x424   :  { %v3618_v35 = vmul.f32 %v3602_v24, %v7995_v30  ;;  %v3626_v31 = vmul.f32 %v3602_v24, %v3381_v34  ;;  %v3611_v15 = vmul.f32 %v3595_v32, %v7862_v21  ;;  %v3619_v3 = vmul.f32 %v3595_v32, %v3374_v22 }
 0x425   :  { %v3612_v62 = vmul.f32 %v3596_v45, %v7884_v51  ;;  %v3620_v9 = vmul.f32 %v3596_v45, %v3375_v53  ;;  %v3613_v57 = vmul.f32 %v3597_v16, %v7904_v4  ;;  %v8320_v30 = vsub.f32 %v7894_v27, %v7901_v33 }
 0x426   :  { %v8154_v2 = vadd.f32 %v8321_v0, %v3618_v35  ;;  %v8322_v21 = vmov %v8321_v0  ;;  %v3644_v22 = vadd.f32 %v8323_v6, %v3611_v15  ;;  %v8324_v51 = vmov %v8323_v6 }
 0x427   :  { %v3621_v11 = vmul.f32 %v3597_v16, %v8320_v30  ;;  %v3659_v38 = vadd.f32 %v8322_v21, %v3626_v31  ;;  %v3652_v52 = vadd.f32 %v8324_v51, %v3619_v3  ;;  %v3645_v53 = vadd.f32 %v8325_v23, %v3612_v62 }
 0x428   :  { %v8326_v4 = vmov %v8325_v23  ;;  %v8327_v33 = vperm.slane %v8041_v20, 2  ;;  %v3600_v34 = vperm.slane %v8104_v56, 5  ;;  %v8170_v31 = vmul.f32 0.2, %v8154_v2 }
 0x429   :  { %v3653_v27 = vadd.f32 %v8326_v4, %v3620_v9  ;;  %vm3675_vm10 = vcmp.gt.f32.partialorder %v3659_v38, 0.0  ;;  %v3691_v35 = vmul.f32 0.2, %v3659_v38  ;;  %vm3660_vm11 = vcmp.gt.f32.partialorder %v3644_v22, 0.0 }
 0x42a   :  { %v3646_v16 = vadd.f32 %v8327_v33, %v3613_v57  ;;  %v8328_v15 = vmov %v8327_v33  ;;  %vm3668_vm2 = vcmp.gt.f32.partialorder %v3652_v52, 0.0  ;;  %v3676_v3 = vmul.f32 0.2, %v3644_v22 }
 0x42b   :  { %v3654_v45 = vadd.f32 %v8328_v15, %v3621_v11  ;;  %v3684_v62 = vmul.f32 0.2, %v3652_v52  ;;  %v8174_v32 = vsel %vm3675_vm10, %v3659_v38, %v3691_v35  ;;  %vm3661_vm3 = vcmp.gt.f32.partialorder %v3645_v53, 0.0 }
 0x42c   :  { %vm3669_vm4 = vcmp.gt.f32.partialorder %v3653_v27, 0.0  ;;  %v3677_v24 = vmul.f32 0.2, %v3645_v53  ;;  %vm3667_vm5 = vcmp.gt.f32.partialorder %v8154_v2, 0.0  ;;  %v3692_v57 = vsel %vm3660_vm11, %v3644_v22, %v3676_v3 }
 0x42d   :  { %v3700_v9 = vsel %vm3668_vm2, %v3652_v52, %v3684_v62  ;;  %v3685_v30 = vmul.f32 0.2, %v3653_v27  ;;  %vm3662_vm6 = vcmp.gt.f32.partialorder %v3646_v16, 0.0  ;;  %vm3670_vm8 = vcmp.gt.f32.partialorder %v3654_v45, 0.0 }
 0x42e   :  { %v8177_v0 = vpack.c.bf16 %v3700_v9, %v3692_v57  ;;  %v3693_v21 = vsel %vm3661_vm3, %v3645_v53, %v3677_v24  ;;  %v3678_v11 = vmul.f32 0.2, %v3646_v16  ;;  %v3686_v51 = vmul.f32 0.2, %v3654_v45 }
 0x42f   :  { %v3701_v6 = vsel %vm3669_vm4, %v3653_v27, %v3685_v30  ;;  %v3614_v23 = vmul.f32 %v3598_v58, %v7921_v46  ;;  %v8329_v38 = vsub.f32 %v7913_v37, %v7918_v17  ;;  %v3615_v52 = vmul.f32 %v3599_v29, %v7946_v40 }
 0x430   :  { %4498 = vmatmul.bf16.vlgmr.msra.gmra.mxu3 %v8177_v0  ;;  %v8184_v33 = vpack.c.bf16 %v3701_v6, %v3693_v21  ;;  %v3694_v22 = vsel %vm3662_vm6, %v3646_v16, %v3678_v11  ;;  %v8330_v53 = vsub.f32 %v7928_v59, %v7943_v5  ;;  %v3702_v15 = vsel %vm3670_vm8, %v3654_v45, %v3686_v51  ;;  %v6977_v11 = vld [vmem:[#allocation16 + $0x44] sm:$0xf]  ;;  %v6148_v6 = vld [vmem:[#allocation16 + $0x48] sm:$0xf0] }
 0x431   :  { %v3622_v4 = vmul.f32 %v3598_v58, %v8329_v38  ;;  %v8331_v27 = vperm.slane %v8041_v20, 3  ;;  %v8333_v37 = vor.u32 %v8050_v63, %v8052_v26  ;;  %v3616_v17 = vmul.f32 %v3600_v34, %v7951_v39 }
 0x432   :  { %v3623_v35 = vmul.f32 %v3599_v29, %v8330_v53  ;;  %4512 = vmatmul.bf16.vlgmr.msrb.gmra.mxu0 %v8184_v33  ;;  %v8199_v40 = vpack.c.bf16 %v3702_v15, %v3694_v22  ;;  %v8334_v59 = vperm.slane %v8041_v20, 4  ;;  %v8336_v16 = vsub.f32 %v7936_v41, %v7938_v61  ;;  %v6212_v22 = vld [vmem:[#allocation16 + $0xc8] sm:$0xf0]  ;;  %v7027_v15 = vld [vmem:[#allocation16 + $0x1d4] sm:$0xf] }
 0x433   :  { %v3647_v3 = vadd.f32 %v8331_v27, %v3614_v23  ;;  %v8332_v46 = vmov %v8331_v27  ;;  %4602 = vmatpush.bf16.msra.mxu3 %v8333_v37  ;;  %v8337_v39 = vor.u32 %v8054_v42, %v8056_v49  ;;  %v8338_v41 = vor.u32 %v8061_v55, %v8063_v8  ;;  %v6993_v8 = vld [vmem:[#allocation16 + $0xc4] sm:$0xf]  ;;  %v6348_v27 = vld [vmem:[#allocation16 + $0x1d8] sm:$0xf0]  ;;  %v6975_v37 = vld [vmem:[#allocation16 + $0x34] sm:$0xf] }
 0x434   :  { %v3655_v62 = vadd.f32 %v8332_v46, %v3622_v4  ;;  %v3648_v5 = vadd.f32 %v8334_v59, %v3615_v52  ;;  %v8335_v58 = vmov %v8334_v59  ;;  %v3624_v45 = vmul.f32 %v3600_v34, %v8336_v16  ;;  %4526 = vmatmul.bf16.vlgmr.msrb.gmra.mxu1 %v8199_v40 }
 0x435   :  { %v3656_v29 = vadd.f32 %v8335_v58, %v3623_v35  ;;  %vm3663_vm9 = vcmp.gt.f32.partialorder %v3647_v3, 0.0  ;;  %v3679_v63 = vmul.f32 0.2, %v3647_v3  ;;  %4616 = vmatpush.bf16.msrb.mxu0 %v8337_v39  ;;  %4630 = vmatpush.bf16.msrb.mxu1 %v8338_v41  ;;  %v8339_v61 = vor.u32 %v8069_v60, %v8072_v25  ;;  %v6340_v39 = vld [vmem:[#allocation16 + $0x1c8] sm:$0xf0] }
 0x436   :  { %vm3671_vm12 = vcmp.gt.f32.partialorder %v3655_v62, 0.0  ;;  %v3687_v26 = vmul.f32 0.2, %v3655_v62  ;;  %vm3664_vm7 = vcmp.gt.f32.partialorder %v3648_v5, 0.0  ;;  %v3680_v24 = vmul.f32 0.2, %v3648_v5 }
 0x437   :  { %vm3672_vm13 = vcmp.gt.f32.partialorder %v3656_v29, 0.0  ;;  %v3688_v57 = vmul.f32 0.2, %v3656_v29  ;;  %v3695_v9 = vsel %vm3663_vm9, %v3647_v3, %v3679_v63  ;;  %4603 = vmatpush.bf16.msra.mxu3 %v8339_v61  ;;  %v8340_v34 = vperm.slane %v8041_v20, 5  ;;  %v7009_v3 = vld [vmem:[#allocation16 + $0x144] sm:$0xf] }
 0x438   :  { %v3703_v30 = vsel %vm3671_vm12, %v3655_v62, %v3687_v26  ;;  %v3601_v49 = vperm.slane %v8104_v56, 6  ;;  %v3696_v51 = vsel %vm3664_vm7, %v3648_v5, %v3680_v24  ;;  %v8342_v55 = vor.u32 %v8074_v50, %v8076_v14 }
 0x439   :  { %v3649_v42 = vadd.f32 %v8340_v34, %v3616_v17  ;;  %v8221_v21 = vpack.c.bf16 %v3703_v30, %v3695_v9  ;;  %v3704_v23 = vsel %vm3672_vm13, %v3656_v29, %v3688_v57  ;;  %v8341_v38 = vmov %v8340_v34  ;;  %v6140_v17 = vld [vmem:[#allocation16 + $0x38] sm:$0xf0]  ;;  %v6991_v29 = vld [vmem:[#allocation16 + $0xb4] sm:$0xf]  ;;  %v6196_v34 = vld [vmem:[#allocation16 + $0xa8] sm:$0xf0] }
 0x43a   :  { %v3657_v4 = vadd.f32 %v8341_v38, %v3624_v45  ;;  %4617 = vmatpush.bf16.msrb.mxu0 %v8342_v55  ;;  %v8228_v60 = vpack.c.bf16 %v3704_v23, %v3696_v51  ;;  %v3617_v56 = vmul.f32 %v3601_v49, %v7960_v12  ;;  %v8343_v53 = vsub.f32 %v7955_v54, %v7957_v10  ;;  %v7007_v9 = vld [vmem:[#allocation16 + $0x134] sm:$0xf]  ;;  %v6268_v30 = vld [vmem:[#allocation16 + $0x138] sm:$0xf0]  ;;  %v7005_v23 = vld [vmem:[#allocation16 + $0x124] sm:$0xf] }
 0x43b   :  { %vm3665_vm14 = vcmp.gt.f32.partialorder %v3649_v42, 0.0  ;;  %v3681_v25 = vmul.f32 0.2, %v3649_v42  ;;  %4540 = vmatmul.bf16.vlgmr.msrb.gmra.mxu2 %v8221_v21  ;;  %v3699_v50 = vsel %vm3667_vm5, %v8154_v2, %v8170_v31  ;;  %v8344_v14 = vor.u32 %v8065_v36, %v8067_v19  ;;  %v6276_v19 = vld [vmem:[#allocation16 + $0x148] sm:$0xf0] }
 0x43c   :  { %vm3673_vm15 = vcmp.gt.f32.partialorder %v3657_v4, 0.0  ;;  %v3689_v52 = vmul.f32 0.2, %v3657_v4  ;;  %v3625_v35 = vmul.f32 %v3601_v49, %v8343_v53  ;;  %v8345_v12 = vor.u32 %v8080_v18, %v8082_v43  ;;  %v6260_v38 = vld [vmem:[#allocation16 + $0x128] sm:$0xf0] }
 0x43d   :  { %4644 = vmatpush.bf16.msrb.mxu2 %v8344_v14  ;;  %v3697_v46 = vsel %vm3665_vm14, %v3649_v42, %v3681_v25  ;;  %v8346_v54 = vperm.slane %v8041_v20, 6  ;;  %v8248_v62 = vpack.c.bf16 %v8174_v32, %v3699_v50  ;;  %v8347_v2 = vor.u32 %v8091_v28, %v8093_v44  ;;  %v6204_v28 = vld [vmem:[#allocation16 + $0xb8] sm:$0xf0]  ;;  %v8351_v20 = vld [vmem:[#allocation25_spill] sm:$0xff]  ;;  %v6971_v55 = vld [vmem:[#allocation16 + $0x14] sm:$0xf] }
 0x43e   :  { %4631 = vmatpush.bf16.msrb.mxu1 %v8345_v12  ;;  %v6151_v36 = vor.u32 %v6977_v11, %v6148_v6  ;;  %v3705_v31 = vsel %vm3673_vm15, %v3657_v4, %v3689_v52  ;;  %v8349_v59 = vor.u32 %v8101_v47, %v8112_v7  ;;  %v6215_v5 = vor.u32 %v6993_v8, %v6212_v22  ;;  %v7025_v7 = vld [vmem:[#allocation16 + $0x1c4] sm:$0xf]  ;;  %v7023_v11 = vld [vmem:[#allocation16 + $0x1b4] sm:$0xf]  ;;  %v6332_v6 = vld [vmem:[#allocation16 + $0x1b8] sm:$0xf0] }
 0x43f   :  { %v3650_v10 = vadd.f32 %v8346_v54, %v3617_v56  ;;  %4604 = vmatpush.bf16.msra.mxu3 %v8347_v2  ;;  %v8348_v18 = vmov %v8346_v54  ;;  %v8258_v58 = vpack.c.bf16 %v3705_v31, %v3697_v46  ;;  %v8350_v16 = vor.u32 %v8084_v13, %v8089_v48  ;;  %v6973_v13 = vld [vmem:[#allocation16 + $0x24] sm:$0xf]  ;;  %v6132_v48 = vld [vmem:[#allocation16 + $0x28] sm:$0xf0]  ;;  %v6124_v8 = vld [vmem:[#allocation16 + $0x18] sm:$0xf0] }
 0x440   :  { %v3658_v43 = vadd.f32 %v8348_v18, %v3625_v35  ;;  %4618 = vmatpush.bf16.msrb.mxu0 %v8349_v59  ;;  %v8352_v45 = vor.u32 %v8114_v1, %v8351_v20  ;;  %v6351_v63 = vor.u32 %v7027_v15, %v6348_v27  ;;  %v6279_v47 = vor.u32 %v7009_v3, %v6276_v19  ;;  %v6989_v1 = vld [vmem:[#allocation16 + $0xa4] sm:$0xf]  ;;  %v6987_v25 = vld [vmem:[#allocation16 + $0x94] sm:$0xf]  ;;  %v6188_v56 = vld [vmem:[#allocation16 + $0x98] sm:$0xf0] }
 0x441   :  { %vm3666_vm0 = vcmp.gt.f32.partialorder %v3650_v10, 0.0  ;;  %v3682_v32 = vmul.f32 0.2, %v3650_v10  ;;  %4645 = vmatpush.bf16.msrb.mxu2 %v8350_v16  ;;  %v6143_v57 = vor.u32 %v6975_v37, %v6140_v17  ;;  %v6207_v61 = vor.u32 %v6991_v29, %v6204_v28  ;;  %4554 = vmatmul.bf16.vlgmr.msrb.gmra.mxu3 %v8228_v60  ;;  %v7021_v53 = vld [vmem:[#allocation16 + $0x1a4] sm:$0xf] }
 0x442   :  { %vm3674_vm1 = vcmp.gt.f32.partialorder %v3658_v43, 0.0  ;;  %v3690_v44 = vmul.f32 0.2, %v3658_v43  ;;  %4632 = vmatpush.bf16.msrb.mxu1 %v8352_v45  ;;  %v6343_v42 = vor.u32 %v7025_v7, %v6340_v39  ;;  %v6271_v49 = vor.u32 %v7007_v9, %v6268_v30  ;;  %4568 = vmatmul.bf16.vlgmr.msra.gmra.mxu0 %v8258_v58  ;;  %v6324_v35 = vld [vmem:[#allocation16 + $0x1a8] sm:$0xf0] }
 0x443   :  { %v3698_v26 = vsel %vm3666_vm0, %v3650_v10, %v3682_v32  ;;  %4605 = vmatpush.bf16.msra.mxu3 %v6151_v36  ;;  %v6135_v51 = vor.u32 %v6973_v13, %v6132_v48  ;;  %v6199_v4 = vor.u32 %v6989_v1, %v6196_v34  ;;  %v6335_v22 = vor.u32 %v7023_v11, %v6332_v6  ;;  %v7003_v14 = vld [vmem:[#allocation16 + $0x114] sm:$0xf]  ;;  %v6252_v12 = vld [vmem:[#allocation16 + $0x118] sm:$0xf0]  ;;  %v6969_v27 = vld [vmem:[#allocation16 + $0x4] sm:$0xf] }
 0x444   :  { %v3706_v24 = vsel %vm3674_vm1, %v3658_v43, %v3690_v44  ;;  %4619 = vmatpush.bf16.msrb.mxu0 %v6215_v5  ;;  %v6263_v52 = vor.u32 %v7005_v23, %v6260_v38  ;;  %v6127_v50 = vor.u32 %v6971_v55, %v6124_v8  ;;  %v6191_v15 = vor.u32 %v6987_v25, %v6188_v56  ;;  %v6116_v3 = vld [vmem:[#allocation16 + $0x8] sm:$0xf0]  ;;  %v6985_v46 = vld [vmem:[#allocation16 + $0x84] sm:$0xf]  ;;  %v7047_v10 = vld [vmem:[#allocation16 + $0x274] sm:$0xf] }
 0x445   :  { %v8266_v41 = vpack.c.bf16 %v3706_v24, %v3698_v26  ;;  %4646 = vmatpush.bf16.msrb.mxu2 %v6351_v63  ;;  %v6180_v54 = vld [vmem:[#allocation16 + $0x88] sm:$0xf0]  ;;  %v6428_v2 = vld [vmem:[#allocation16 + $0x278] sm:$0xf0]  ;;  %v6327_v36 = vor.u32 %v7021_v53, %v6324_v35  ;;  %v6255_v19 = vor.u32 %v7003_v14, %v6252_v12  ;;  %v7019_v31 = vld [vmem:[#allocation16 + $0x194] sm:$0xf]  ;;  %v6119_v17 = vor.u32 %v6969_v27, %v6116_v3 }
 0x446   :  { %4633 = vmatpush.bf16.msrb.mxu1 %v6279_v47  ;;  %v7063_v18 = vld [vmem:[#allocation16 + $0x2f4] sm:$0xf]  ;;  %v6492_v43 = vld [vmem:[#allocation16 + $0x2f8] sm:$0xf0]  ;;  %v7001_v59 = vld [vmem:[#allocation16 + $0x104] sm:$0xf]  ;;  %v6183_v32 = vor.u32 %v6985_v46, %v6180_v54  ;;  %v6431_v29 = vor.u32 %v7047_v10, %v6428_v2 }
 0x447   :  { %4606 = vmatpush.bf16.msra.mxu3 %v6143_v57  ;;  %4582 = vmatmul.bf16.vlgmr.msra.gmra.mxu1 %v8266_v41  ;;  %v6316_v37 = vld [vmem:[#allocation16 + $0x198] sm:$0xf0]  ;;  %v6244_v5 = vld [vmem:[#allocation16 + $0x108] sm:$0xf0]  ;;  %v7079_v44 = vld [vmem:[#allocation16 + $0x374] sm:$0xf]  ;;  %v6495_v16 = vor.u32 %v7063_v18, %v6492_v43 }
 0x448   :  { %4620 = vmatpush.bf16.msrb.mxu0 %v6207_v61  ;;  %v6556_v28 = vld [vmem:[#allocation16 + $0x378] sm:$0xf0]  ;;  %v7045_v20 = vld [vmem:[#allocation16 + $0x264] sm:$0xf]  ;;  %v6420_v45 = vld [vmem:[#allocation16 + $0x268] sm:$0xf0]  ;;  %v6319_v63 = vor.u32 %v7019_v31, %v6316_v37  ;;  %v6247_v47 = vor.u32 %v7001_v59, %v6244_v5 }
 0x449   :  { %4647 = vmatpush.bf16.msrb.mxu2 %v6343_v42  ;;  %v7061_v7 = vld [vmem:[#allocation16 + $0x2e4] sm:$0xf]  ;;  %v6484_v26 = vld [vmem:[#allocation16 + $0x2e8] sm:$0xf0]  ;;  %v6559_v57 = vor.u32 %v7079_v44, %v6556_v28  ;;  %v7095_v9 = vld [vmem:[#allocation16 + $0x3f4] sm:$0xf]  ;;  %v6423_v61 = vor.u32 %v7045_v20, %v6420_v45 }
 0x44a   :  { %4634 = vmatpush.bf16.msrb.mxu1 %v6271_v49  ;;  %v7017_v39 = vld [vmem:[#allocation16 + $0x184] sm:$0xf]  ;;  %v6308_v24 = vld [vmem:[#allocation16 + $0x188] sm:$0xf0]  ;;  %v6620_v30 = vld [vmem:[#allocation16 + $0x3f8] sm:$0xf0]  ;;  %v6487_v1 = vor.u32 %v7061_v7, %v6484_v26 }
 0x44b   :  { %4607 = vmatpush.bf16.msra.mxu3 %v6135_v51  ;;  %4596 = vmatmul.bf16.vlgmr.msra.gmra.mxu2 %v8248_v62  ;;  %v7077_v13 = vld [vmem:[#allocation16 + $0x364] sm:$0xf]  ;;  %v6548_v48 = vld [vmem:[#allocation16 + $0x368] sm:$0xf0]  ;;  %v7043_v34 = vld [vmem:[#allocation16 + $0x254] sm:$0xf]  ;;  %v6311_v49 = vor.u32 %v7017_v39, %v6308_v24  ;;  %v6623_v51 = vor.u32 %v7095_v9, %v6620_v30 }
 0x44c   :  { %4621 = vmatpush.bf16.msrb.mxu0 %v6199_v4  ;;  %v6412_v42 = vld [vmem:[#allocation16 + $0x258] sm:$0xf0]  ;;  %v7059_v11 = vld [vmem:[#allocation16 + $0x2d4] sm:$0xf]  ;;  %v6551_v23 = vor.u32 %v7077_v13, %v6548_v48  ;;  %v7093_v38 = vld [vmem:[#allocation16 + $0x3e4] sm:$0xf] }
 0x44d   :  { %4648 = vmatpush.bf16.msrb.mxu2 %v6335_v22  ;;  %v6476_v6 = vld [vmem:[#allocation16 + $0x2d8] sm:$0xf0]  ;;  %v6612_v4 = vld [vmem:[#allocation16 + $0x3e8] sm:$0xf0]  ;;  %v6415_v55 = vor.u32 %v7043_v34, %v6412_v42  ;;  %v7075_v8 = vld [vmem:[#allocation16 + $0x354] sm:$0xf] }
 0x44e   :  { %4635 = vmatpush.bf16.msrb.mxu1 %v6263_v52  ;;  %v6540_v25 = vld [vmem:[#allocation16 + $0x358] sm:$0xf0]  ;;  %v6479_v56 = vor.u32 %v7059_v11, %v6476_v6  ;;  %v7041_v22 = vld [vmem:[#allocation16 + $0x244] sm:$0xf]  ;;  %v6404_v52 = vld [vmem:[#allocation16 + $0x248] sm:$0xf0] }
 0x44f   :  { %4608 = vmatpush.bf16.msra.mxu3 %v6127_v50  ;;  %v7057_v53 = vld [vmem:[#allocation16 + $0x2c4] sm:$0xf]  ;;  %v6468_v35 = vld [vmem:[#allocation16 + $0x2c8] sm:$0xf0]  ;;  %v6543_v50 = vor.u32 %v7075_v8, %v6540_v25  ;;  %v7091_v14 = vld [vmem:[#allocation16 + $0x3d4] sm:$0xf]  ;;  %v6407_v12 = vor.u32 %v7041_v22, %v6404_v52 }
 0x450   :  { %4622 = vmatpush.bf16.msrb.mxu0 %v6191_v15  ;;  %v7073_v15 = vld [vmem:[#allocation16 + $0x344] sm:$0xf]  ;;  %v6532_v27 = vld [vmem:[#allocation16 + $0x348] sm:$0xf0]  ;;  %v7039_v3 = vld [vmem:[#allocation16 + $0x234] sm:$0xf] }
 0x451   :  { %4649 = vmatpush.bf16.msrb.mxu2 %v6327_v36  ;;  %v6396_v46 = vld [vmem:[#allocation16 + $0x238] sm:$0xf0]  ;;  %v7055_v54 = vld [vmem:[#allocation16 + $0x2b4] sm:$0xf]  ;;  %v6535_v36 = vor.u32 %v7073_v15, %v6532_v27  ;;  %v6596_v31 = vld [vmem:[#allocation16 + $0x3c8] sm:$0xf0] }
 0x452   :  { %4636 = vmatpush.bf16.msrb.mxu1 %v6255_v19  ;;  %v6460_v10 = vld [vmem:[#allocation16 + $0x2b8] sm:$0xf0]  ;;  %v7089_v19 = vld [vmem:[#allocation16 + $0x3c4] sm:$0xf]  ;;  %v6399_v18 = vor.u32 %v7039_v3, %v6396_v46  ;;  %v7071_v43 = vld [vmem:[#allocation16 + $0x334] sm:$0xf] }
 0x453   :  { %4609 = vmatpush.bf16.msra.mxu3 %v6119_v17  ;;  %v6524_v37 = vld [vmem:[#allocation16 + $0x338] sm:$0xf0]  ;;  %v6463_v17 = vor.u32 %v7055_v54, %v6460_v10  ;;  %v7037_v59 = vld [vmem:[#allocation16 + $0x224] sm:$0xf]  ;;  %v7087_v28 = vld [vmem:[#allocation16 + $0x3b4] sm:$0xf] }
 0x454   :  { %4623 = vmatpush.bf16.msrb.mxu0 %v6183_v32  ;;  %v7053_v5 = vld [vmem:[#allocation16 + $0x2a4] sm:$0xf]  ;;  %v6452_v32 = vld [vmem:[#allocation16 + $0x2a8] sm:$0xf0]  ;;  %v6527_v44 = vor.u32 %v7071_v43, %v6524_v37  ;;  %v7035_v7 = vld [vmem:[#allocation16 + $0x214] sm:$0xf] }
 0x455   :  { %4650 = vmatpush.bf16.msrb.mxu2 %v6319_v63  ;;  %v7069_v45 = vld [vmem:[#allocation16 + $0x324] sm:$0xf]  ;;  %v6516_v63 = vld [vmem:[#allocation16 + $0x328] sm:$0xf0]  ;;  %v6380_v26 = vld [vmem:[#allocation16 + $0x218] sm:$0xf0] }
 0x456   :  { %4637 = vmatpush.bf16.msrb.mxu1 %v6247_v47  ;;  %4610 = vmatmul.bf16.vlgmr.msra.gmra.mxu3 %v8177_v0  ;;  %v6615_v0 = vor.u32 %v7093_v38, %v6612_v4  ;;  %v6455_v47 = vor.u32 %v7053_v5, %v6452_v32  ;;  %v7051_v39 = vld [vmem:[#allocation16 + $0x294] sm:$0xf]  ;;  %v6444_v24 = vld [vmem:[#allocation16 + $0x298] sm:$0xf0]  ;;  %v6519_v9 = vor.u32 %v7069_v45, %v6516_v63  ;;  %v7085_v30 = vld [vmem:[#allocation16 + $0x3a4] sm:$0xf] }
 0x457   :  { %4658 = vmatpush.bf16.msrb.mxu3 %v6431_v29  ;;  %4624 = vmatmul.bf16.vlgmr.msrb.gmra.mxu0 %v8184_v33  ;;  %v6604_v33 = vld [vmem:[#allocation16 + $0x3d8] sm:$0xf0]  ;;  %v6599_v29 = vor.u32 %v7089_v19, %v6596_v31  ;;  %v6383_v13 = vor.u32 %v7035_v7, %v6380_v26  ;;  %v7067_v48 = vld [vmem:[#allocation16 + $0x314] sm:$0xf]  ;;  %v6447_v34 = vor.u32 %v7051_v39, %v6444_v24  ;;  %v7033_v42 = vld [vmem:[#allocation16 + $0x204] sm:$0xf] }
 0x458   :  { %4672 = vmatpush.bf16.msra.mxu0 %v6495_v16  ;;  %v6607_v2 = vor.u32 %v7091_v14, %v6604_v33  ;;  %v6588_v16 = vld [vmem:[#allocation16 + $0x3b8] sm:$0xf0]  ;;  %v7049_v11 = vld [vmem:[#allocation16 + $0x284] sm:$0xf]  ;;  %v6436_v6 = vld [vmem:[#allocation16 + $0x288] sm:$0xf0] }
 0x459   :  { %4638 = vmatmul.bf16.vlgmr.msrb.gmra.mxu1 %v8199_v40  ;;  %4651 = vmatpush.bf16.msrb.mxu2 %v6311_v49  ;;  %v6471_v40 = vor.u32 %v7057_v53, %v6468_v35  ;;  %v6372_v49 = vld [vmem:[#allocation16 + $0x208] sm:$0xf0]  ;;  %v7083_v38 = vld [vmem:[#allocation16 + $0x394] sm:$0xf]  ;;  %v6572_v4 = vld [vmem:[#allocation16 + $0x398] sm:$0xf0] }
 0x45a   :  { %4686 = vmatpush.bf16.msra.mxu1 %v6559_v57  ;;  %v6591_v57 = vor.u32 %v7087_v28, %v6588_v16  ;;  %v7065_v8 = vld [vmem:[#allocation16 + $0x304] sm:$0xf]  ;;  %v6500_v25 = vld [vmem:[#allocation16 + $0x308] sm:$0xf0]  ;;  %v6575_v22 = vor.u32 %v7083_v38, %v6572_v4  ;;  %v3844_v14 = vld [vmem:[#allocation18] sm:$0x3] }
 0x45b   :  { %4659 = vmatpush.bf16.msrb.mxu3 %v6423_v61  ;;  %v6580_v61 = vld [vmem:[#allocation16 + $0x3a8] sm:$0xf0]  ;;  %v6503_v52 = vor.u32 %v7065_v8, %v6500_v25  ;;  %v7081_v53 = vld [vmem:[#allocation16 + $0x384] sm:$0xf]  ;;  %v3847_v24 = vperm.slane %v3844_v14, 1 }
 0x45c   :  { %4673 = vmatpush.bf16.msra.mxu0 %v6487_v1  ;;  %4652 = vmatmul.bf16.vlgmr.msrb.gmra.mxu2 %v8221_v21  ;;  %v6388_v21 = vld [vmem:[#allocation16 + $0x228] sm:$0xf0]  ;;  %v6508_v1 = vld [vmem:[#allocation16 + $0x318] sm:$0xf0] }
 0x45d   :  { %4700 = vmatpush.bf16.msra.mxu2 %v6623_v51  ;;  %v6391_v20 = vor.u32 %v7037_v59, %v6388_v21  ;;  %v6583_v51 = vor.u32 %v7085_v30, %v6580_v61  ;;  %v6564_v35 = vld [vmem:[#allocation16 + $0x388] sm:$0xf0] }
 0x45e   :  { %4687 = vmatpush.bf16.msra.mxu1 %v6551_v23  ;;  %v6511_v23 = vor.u32 %v7067_v48, %v6508_v1 }
 0x45f   :  { %4660 = vmatpush.bf16.msrb.mxu3 %v6415_v55  ;;  %v6375_v55 = vor.u32 %v7033_v42, %v6372_v49 }
 0x460   :  { %4674 = vmatpush.bf16.msra.mxu0 %v6479_v56  ;;  %v6439_v56 = vor.u32 %v7049_v11, %v6436_v6 }
 0x461   :  { %4701 = vmatpush.bf16.msra.mxu2 %v6615_v0  ;;  %v6567_v0 = vor.u32 %v7081_v53, %v6564_v35 }
 0x462   :  { %4688 = vmatpush.bf16.msra.mxu1 %v6543_v50 }
 0x463   :  { %4661 = vmatpush.bf16.msrb.mxu3 %v6407_v12  ;;  %v3846_v12 = vperm.slane %v3844_v14, 0 }
 0x464   :  { %4675 = vmatpush.bf16.msra.mxu0 %v6471_v40 }
 0x465   :  { %4702 = vmatpush.bf16.msra.mxu2 %v6607_v2 }
 0x466   :  { %4689 = vmatpush.bf16.msra.mxu1 %v6535_v36 }
 0x467   :  { %4662 = vmatpush.bf16.msrb.mxu3 %v6399_v18 }
 0x468   :  { %4676 = vmatpush.bf16.msra.mxu0 %v6463_v17 }
 0x469   :  { %4703 = vmatpush.bf16.msra.mxu2 %v6599_v29 }
 0x46a   :  { %4690 = vmatpush.bf16.msra.mxu1 %v6527_v44 }
 0x46b   :  { %4663 = vmatpush.bf16.msrb.mxu3 %v6391_v20 }
 0x46c   :  { %4677 = vmatpush.bf16.msra.mxu0 %v6455_v47 }
 0x46d   :  { %4704 = vmatpush.bf16.msra.mxu2 %v6591_v57 }
 0x46e   :  { %4691 = vmatpush.bf16.msra.mxu1 %v6519_v9 }
 0x46f   :  { %4664 = vmatpush.bf16.msrb.mxu3 %v6383_v13 }
 0x470   :  { %4678 = vmatpush.bf16.msra.mxu0 %v6447_v34 }
 0x471   :  { %4705 = vmatpush.bf16.msra.mxu2 %v6583_v51 }
 0x472   :  { %4692 = vmatpush.bf16.msra.mxu1 %v6511_v23 }
 0x473   :  { %4665 = vmatpush.bf16.msrb.mxu3 %v6375_v55 }
 0x474   :  { %4679 = vmatpush.bf16.msra.mxu0 %v6439_v56 }
 0x475   :  { %4706 = vmatpush.bf16.msra.mxu2 %v6575_v22 }
 0x476   :  { %4693 = vmatpush.bf16.msra.mxu1 %v6503_v52  ;;  %4666 = vmatmul.bf16.vlgmr.msrb.gmra.mxu3 %v8228_v60 }
 0x477   :  { %4680 = vmatmul.bf16.vlgmr.msra.gmra.mxu0 %v8258_v58 }
 0x479   :  { %4694 = vmatmul.bf16.vlgmr.msra.gmra.mxu1 %v8266_v41  ;;  %4707 = vmatpush.bf16.msra.mxu2 %v6567_v0 }
 0x47c   :  { %4708 = vmatmul.bf16.vlgmr.msra.gmra.mxu2 %v8248_v62 }
 0x4af   :  { %v4513_v50 = vpop.f32.mrf.mxu0 }
 0x4b1   :  { %v4527_v33 = vpop.f32.mrf.mxu1 }
 0x4b3   :  { %v4499_v15 = vpop.f32.mrf.mxu3 }
 0x4b4   :  { %v4500_v27 = vadd.f32 %v4499_v15, %v3846_v12 }
 0x4b6   :  { %v4514_v3 = vadd.f32 %v4513_v50, %v4500_v27 }
 0x4b7   :  { %v4515_v40 = vpop.f32.mrf.mxu0 }
 0x4b8   :  { %v4528_v2 = vadd.f32 %v4527_v33, %v4514_v3 }
 0x4b9   :  { %v4529_v46 = vpop.f32.mrf.mxu1 }
 0x4bb   :  { %v4501_v10 = vpop.f32.mrf.mxu3 }
 0x4bc   :  { %v4502_v60 = vadd.f32 %v4501_v10, %v3846_v12 }
 0x4be   :  { %v4541_v54 = vpop.f32.mrf.mxu2  ;;  %v4516_v58 = vadd.f32 %v4515_v40, %v4502_v60 }
 0x4bf   :  { %v4542_v36 = vadd.f32 %v4541_v54, %v4528_v2  ;;  %v4569_v19 = vpop.f32.mrf.mxu0 }
 0x4c0   :  { %v4530_v43 = vadd.f32 %v4529_v46, %v4516_v58 }
 0x4c4   :  { %v4555_v31 = vpop.f32.mrf.mxu3  ;;  %v4583_v62 = vpop.f32.mrf.mxu1 }
 0x4c5   :  { %v4556_v18 = vadd.f32 %v4555_v31, %v4542_v36 }
 0x4c6   :  { %v4543_v41 = vpop.f32.mrf.mxu2 }
 0x4c7   :  { %v4570_v37 = vadd.f32 %v4569_v19, %v4556_v18  ;;  %v4544_v59 = vadd.f32 %v4543_v41, %v4530_v43  ;;  %v4571_v44 = vpop.f32.mrf.mxu0 }
 0x4c9   :  { %v4584_v17 = vadd.f32 %v4583_v62, %v4570_v37 }
 0x4cc   :  { %v4557_v5 = vpop.f32.mrf.mxu3  ;;  %v4585_v16 = vpop.f32.mrf.mxu1 }
 0x4cd   :  { %v4558_v29 = vadd.f32 %v4557_v5, %v4544_v59 }
 0x4ce   :  { %v4597_v21 = vpop.f32.mrf.mxu2 }
 0x4cf   :  { %v4598_v32 = vadd.f32 %v4597_v21, %v4584_v17  ;;  %v4572_v28 = vadd.f32 %v4571_v44, %v4558_v29 }
 0x4d1   :  { %7145 = vtanh.f32 %v4598_v32  ;;  %v4586_v20 = vadd.f32 %v4585_v16, %v4572_v28 }
 0x4d4   :  { %v4625_v26 = vpop.f32.mrf.mxu0 }
 0x4d6   :  { %v4599_v45 = vpop.f32.mrf.mxu2  ;;  %v4639_v57 = vpop.f32.mrf.mxu1 }
 0x4d7   :  { %v7146_v63 = vpop.eup %7145  ;;  %v4600_v47 = vadd.f32 %v4599_v45, %v4586_v20 }
 0x4d8   :  { %4718 = vst [vmem:[%s8309_s17] sm:$0xff] %v7146_v63 }
 0x4d9   :  { %7147 = vtanh.f32 %v4600_v47  ;;  %v4611_v39 = vpop.f32.mrf.mxu3 }
 0x4da   :  { %v4612_v9 = vadd.f32 %v4611_v39, %v3847_v24 }
 0x4dc   :  { %v4626_v61 = vadd.f32 %v4625_v26, %v4612_v9  ;;  %v4627_v13 = vpop.f32.mrf.mxu0 }
 0x4de   :  { %v4641_v1 = vpop.f32.mrf.mxu1  ;;  %v4640_v34 = vadd.f32 %v4639_v57, %v4626_v61 }
 0x4df   :  { %v7148_v7 = vpop.eup %7147  ;;  %v4653_v30 = vpop.f32.mrf.mxu2 }
 0x4e0   :  { %4720 = vst [vmem:[%s8309_s17 + $0x10] sm:$0xff] %v7148_v7  ;;  %v4654_v11 = vadd.f32 %v4653_v30, %v4640_v34 }
 0x4e1   :  { %v4613_v48 = vpop.f32.mrf.mxu3 }
 0x4e2   :  { %v4614_v42 = vadd.f32 %v4613_v48, %v3847_v24 }
 0x4e4   :  { %v4628_v6 = vadd.f32 %v4627_v13, %v4614_v42 }
 0x4e6   :  { %v4642_v55 = vadd.f32 %v4641_v1, %v4628_v6 }
 0x4e7   :  { %v4655_v49 = vpop.f32.mrf.mxu2 }
 0x4e8   :  { %v4656_v22 = vadd.f32 %v4655_v49, %v4642_v55 }
 0x4f4   :  { %v4681_v51 = vpop.f32.mrf.mxu0 }
 0x4f6   :  { %v4695_v4 = vpop.f32.mrf.mxu1 }
 0x4f9   :  { %v4667_v23 = vpop.f32.mrf.mxu3 }
 0x4fa   :  { %v4668_v38 = vadd.f32 %v4667_v23, %v4654_v11 }
 0x4fc   :  { %v4682_v8 = vadd.f32 %v4681_v51, %v4668_v38  ;;  %v4683_v0 = vpop.f32.mrf.mxu0 }
 0x4fe   :  { %v4696_v25 = vadd.f32 %v4695_v4, %v4682_v8  ;;  %v4697_v14 = vpop.f32.mrf.mxu1 }
 0x4ff   :  { %v4709_v56 = vpop.f32.mrf.mxu2 }
 0x500   :  { %v4710_v52 = vadd.f32 %v4709_v56, %v4696_v25 }
 0x501   :  { %v4669_v53 = vpop.f32.mrf.mxu3 }
 0x502   :  { %7149 = vtanh.f32 %v4710_v52  ;;  %v4670_v35 = vadd.f32 %v4669_v53, %v4656_v22 }
 0x504   :  { %v4684_v50 = vadd.f32 %v4683_v0, %v4670_v35 }
 0x506   :  { %v4698_v33 = vadd.f32 %v4697_v14, %v4684_v50 }
 0x507   :  { %v4711_v12 = vpop.f32.mrf.mxu2 }
 0x508   :  { %v7150_v15 = vpop.eup %7149  ;;  %v4712_v27 = vadd.f32 %v4711_v12, %v4698_v33 }
 0x509   :  { %4719 = vst [vmem:[%s8309_s17 + $0x8] sm:$0xff] %v7150_v15 }
 0x50a   :  { %7151 = vtanh.f32 %v4712_v27 }
 0x510   :  { %v7152_v40 = vpop.eup %7151 }
 0x511   :  { %4721 = vst [vmem:[%s8309_s17 + $0x18] sm:$0xff] %v7152_v40 }
 0x512   :  { %4726 = vsyncpa [#allocation3], 1 }
 0x513   :  { %4727 = vsyncpa [#allocation5], 1 }
 0x514   :  { %4728 = vsyncpa [#allocation8], 1 }
 0x515   :  { %4729 = vsyncpa [#allocation11], 1 }
 0x516   :  { %4730 = vsyncpa [#allocation14], 1 }
 0x517   :  { %4731 = vsyncpa [#allocation17], 1 }

</bundles_post_ra>
